<compile_context>
chip_gen: v6e
topology: v6e:2x2x1
jax: 0.10.0
libtpu: 0.0.40
codegen_flags: <defaults>
</compile_context>

<pallas_src>
import math
import functools

import jax
import jax.numpy as jnp
from jax.experimental import pallas as pl
from jax.experimental.pallas import tpu as pltpu


def _cdiv(a, b):
    return -(-a // b)


# ----------------------------- in-kernel helpers -----------------------------

def _layer_norm(x, gamma, beta, eps=1e-5):
    mu = jnp.mean(x, axis=-1, keepdims=True)
    var = jnp.mean((x - mu) ** 2, axis=-1, keepdims=True)
    return (x - mu) * jax.lax.rsqrt(var + eps) * gamma + beta


def _attention(q3, k3, v3, bias, n_heads, head_size):
    """Multi-head attention core (pre output-projection).

    q3: (Bblk, Tq, C) bf16, k3/v3: (Bblk, Tk, C) bf16, bias: (Tq, Tk) f32 additive
    (-1e10 where masked). 1/sqrt(head_size) is pre-folded into the q projection.
    Returns (Bblk, Tq, C) bf16.
    """
    bias_b = bias[None, :, :]
    head_outs = []
    for h in range(n_heads):
        lo = h * head_size
        qs = q3[:, :, lo:lo + head_size]            # (Bblk, Tq, D)
        ks = k3[:, :, lo:lo + head_size]            # (Bblk, Tk, D)
        vs = v3[:, :, lo:lo + head_size]            # (Bblk, Tk, D)
        s = jax.lax.dot_general(qs, ks, (((2,), (2,)), ((0,), (0,))),
                                preferred_element_type=jnp.float32)      # (Bblk,Tq,Tk)
        s = s + bias_b
        m = jnp.max(s, axis=-1, keepdims=True)
        e = jnp.exp(s - m)
        p = e * pl.reciprocal(jnp.sum(e, axis=-1, keepdims=True), approx=True)
        head = jax.lax.dot_general(p.astype(jnp.bfloat16), vs,
                                   (((2,), (1,)), ((0,), (0,))),
                                   preferred_element_type=jnp.float32)   # (Bblk,Tq,D)
        head_outs.append(head.astype(jnp.bfloat16))
    return jnp.concatenate(head_outs, axis=-1)                           # (Bblk,Tq,C)


# --------------------------------- the kernel --------------------------------

def _decoder_block_kernel(n_heads, head_size, ff_chunk,
                          y_ref, feat_ref, sbias_ref, tbias_ref,
                          w_qkv1, b_qkv1, wo1, bo1, g1, be1,
                          wq2, bq2, w_kv2, b_kv2, wo2, bo2, g2, be2,
                          wf1, bf1, wf2, bf2, g3, be3,
                          out_ref):
    y = y_ref[...].astype(jnp.float32)          # (Bblk, T, C)
    tbias = tbias_ref[...]                      # (T, T)
    sbias = sbias_ref[...]                      # (T, S)
    bblk, t, C = y.shape
    s_len = feat_ref.shape[1]
    rows_t = bblk * t

    # 1) masked self-attention (one fused QKV GEMM) + residual + LN1
    y_rows = y.reshape(rows_t, C).astype(jnp.bfloat16)
    qkv = jnp.dot(y_rows, w_qkv1[...], preferred_element_type=jnp.float32) + b_qkv1[...]
    q3 = qkv[:, 0 * C:1 * C].astype(jnp.bfloat16).reshape(bblk, t, C)
    k3 = qkv[:, 1 * C:2 * C].astype(jnp.bfloat16).reshape(bblk, t, C)
    v3 = qkv[:, 2 * C:3 * C].astype(jnp.bfloat16).reshape(bblk, t, C)
    attn = _attention(q3, k3, v3, tbias, n_heads, head_size)
    sa = (jnp.dot(attn.reshape(rows_t, C), wo1[...],
                  preferred_element_type=jnp.float32) + bo1[...]).reshape(bblk, t, C)
    out = _layer_norm(sa + y, g1[...], be1[...])

    # 2) cross-attention (fused KV GEMM on features) + residual + LN2
    out_rows = out.reshape(rows_t, C).astype(jnp.bfloat16)
    feat_rows = feat_ref[...].reshape(bblk * s_len, C).astype(jnp.bfloat16)
    q = jnp.dot(out_rows, wq2[...], preferred_element_type=jnp.float32) + bq2[...]
    kv = jnp.dot(feat_rows, w_kv2[...], preferred_element_type=jnp.float32) + b_kv2[...]
    q3 = q.astype(jnp.bfloat16).reshape(bblk, t, C)
    k3 = kv[:, 0 * C:1 * C].astype(jnp.bfloat16).reshape(bblk, s_len, C)
    v3 = kv[:, 1 * C:2 * C].astype(jnp.bfloat16).reshape(bblk, s_len, C)
    attn = _attention(q3, k3, v3, sbias, n_heads, head_size)
    ca = (jnp.dot(attn.reshape(rows_t, C), wo2[...],
                  preferred_element_type=jnp.float32) + bo2[...]).reshape(bblk, t, C)
    out = _layer_norm(ca + out, g2[...], be2[...])

    # 3) feed-forward, chunked over F (no full (rows, F) f32 tile) + residual + LN3
    F = wf1.shape[1]
    rows = out.reshape(rows_t, C).astype(jnp.bfloat16)
    acc = jnp.zeros((rows_t, C), jnp.float32)
    for lo in range(0, F, ff_chunk):
        hi = min(lo + ff_chunk, F)
        h = jnp.dot(rows, wf1[:, lo:hi],
                    preferred_element_type=jnp.float32) + bf1[:, lo:hi]
        h = jnp.maximum(h, 0.0).astype(jnp.bfloat16)
        acc = acc + jnp.dot(h, wf2[lo:hi, :], preferred_element_type=jnp.float32)
    ff = (acc + bf2[...]).reshape(bblk, t, C)
    out = _layer_norm(ff + out, g3[...], be3[...])

    out_ref[...] = out.astype(out_ref.dtype)


# ----------------------------- parameter preparation ---------------------------

_PREP_ORDER = ["w_qkv1", "b_qkv1", "wo1", "bo1", "g1", "be1",
               "wq2", "bq2", "w_kv2", "b_kv2", "wo2", "bo2", "g2", "be2",
               "wf1", "bf1", "wf2", "bf2", "g3", "be3"]


def prepare_decoder_params(params, n_heads):
    """One-time prep: fold 1/sqrt(D) into q, fuse QKV / KV weights, downcast to bf16."""
    C = params["wq1"].shape[0]
    assert C % n_heads == 0
    scale = jnp.float32(1.0 / math.sqrt(C // n_heads))
    p = {}
    p["w_qkv1"] = jnp.concatenate(
        [params["wq1"] * scale, params["wk1"], params["wv1"]], axis=1).astype(jnp.bfloat16)
    p["b_qkv1"] = jnp.concatenate(
        [params["bq1"] * scale, params["bk1"], params["bv1"]], axis=1).astype(jnp.float32)
    p["wo1"] = params["wo1"].astype(jnp.bfloat16)
    p["bo1"] = params["bo1"]
    p["g1"], p["be1"] = params["g1"], params["be1"]

    p["wq2"] = (params["wq2"] * scale).astype(jnp.bfloat16)
    p["bq2"] = (params["bq2"] * scale).astype(jnp.float32)
    p["w_kv2"] = jnp.concatenate(
        [params["wk2"], params["wv2"]], axis=1).astype(jnp.bfloat16)
    p["b_kv2"] = jnp.concatenate(
        [params["bk2"], params["bv2"]], axis=1).astype(jnp.float32)
    p["wo2"] = params["wo2"].astype(jnp.bfloat16)
    p["bo2"] = params["bo2"]
    p["g2"], p["be2"] = params["g2"], params["be2"]

    p["wf1"] = params["wf1"].astype(jnp.bfloat16)
    p["bf1"] = params["bf1"]
    p["wf2"] = params["wf2"].astype(jnp.bfloat16)
    p["bf2"] = params["bf2"]
    p["g3"], p["be3"] = params["g3"], params["be3"]
    return p


# --------------------------------- the wrapper --------------------------------

def _pick_block_b(B, T, row_target=512, min_steps=2):
    # Target ~row_target matmul rows per grid step, but keep >= min_steps grid steps
    # when B allows (v7x has 2 TensorCores; a 1-step grid leaves one idle).
    bblk = max(1, min(B, _cdiv(row_target, T)))
    while bblk > 1 and _cdiv(B, bblk) < min_steps:
        bblk = _cdiv(bblk, 2)
    return bblk


def _vmem_limit_bytes(bblk, T, S, C, F, ff_chunk, n_heads, weights, consts):
    w_bytes = sum(int(a.size) * a.dtype.itemsize for a in weights + consts)
    rows = bblk * T
    act = 0
    act += 2 * 4 * (2 * bblk * T * C + bblk * S * C)        # double-buffered y/out + features blocks
    act += 4 * rows * 3 * C + 2 * 3 * bblk * max(T, S) * C  # fused qkv f32 + bf16 q/k/v
    act += 2 * 4 * bblk * n_heads * T * max(T, S)           # scores / probs (f32)
    act += 4 * rows * ff_chunk + 4 * rows * C               # FFW chunk + f32 accumulator
    est = 2 * w_bytes + act                                 # weights double-buffered by the pipeline
    try:
        phys = getattr(pltpu.get_tpu_info(), "vmem_capacity_bytes", 64 * 2 ** 20)
    except Exception:
        phys = 64 * 2 ** 20                                 # conservative (v7x per-TC VMEM)
    cap = int(phys * 0.8)
    return int(min(cap, max(32 * 2 ** 20, 2 * est)))


def decoder_block(y, features, src_mask, targ_mask, prep, n_heads,
                  block_b=None, row_target=512):
    B, T, C = y.shape
    S = features.shape[1]
    assert C % n_heads == 0
    head_size = C // n_heads
    F = prep["wf1"].shape[1]

    bblk = _pick_block_b(B, T, row_target) if block_b is None else block_b
    B_pad = _cdiv(B, bblk) * bblk
    if B_pad != B:
        pad = B_pad - B
        y_p = jnp.concatenate([y, jnp.zeros((pad, T, C), y.dtype)], axis=0)
        f_p = jnp.concatenate([features, jnp.zeros((pad, S, C), features.dtype)], axis=0)
    else:
        y_p, f_p = y, features

    # Additive mask bias (computed once per call, tiny): 0 where visible, -1e10 where masked.
    sbias = jnp.where(src_mask == 0, jnp.float32(-1e10), jnp.float32(0.0))
    tbias = jnp.where(targ_mask == 0, jnp.float32(-1e10), jnp.float32(0.0))

    weights = [prep[k] for k in _PREP_ORDER]
    ff_chunk = F if F <= 512 else 512

    def full_spec(a):
        nd = a.ndim
        return pl.BlockSpec(a.shape, lambda b, _nd=nd: (0,) * _nd)

    in_specs = [
        pl.BlockSpec((bblk, T, C), lambda b: (b, 0, 0)),   # y
        pl.BlockSpec((bblk, S, C), lambda b: (b, 0, 0)),   # features
        full_spec(sbias),
        full_spec(tbias),
    ] + [full_spec(w) for w in weights]

    kernel = functools.partial(_decoder_block_kernel, n_heads, head_size, ff_chunk)
    vmem_limit = _vmem_limit_bytes(bblk, T, S, C, F, ff_chunk, n_heads,
                                   weights, [sbias, tbias])

    out = pl.pallas_call(
        kernel,
        out_shape=jax.ShapeDtypeStruct((B_pad, T, C), y.dtype),
        grid=(B_pad // bblk,),
        in_specs=in_specs,
        out_specs=pl.BlockSpec((bblk, T, C), lambda b: (b, 0, 0)),
        compiler_params=pltpu.CompilerParams(
            dimension_semantics=("parallel",),   # independent batch blocks (v7x: 2 TCs)
            vmem_limit_bytes=vmem_limit),
    )(y_p, f_p, sbias, tbias, *weights)
    return out[:B] if B_pad != B else out


# --------------------------- deterministic parameters --------------------------

def init_params(key, n_embed, ff_expansion_factor):
    C = n_embed
    F = ff_expansion_factor * n_embed
    keys = jax.random.split(key, 32)
    ki = iter(range(32))

    def lin(din, dout, scale=0.05):
        w = jax.random.normal(keys[next(ki)], (din, dout), jnp.float32) * scale
        b = jax.random.normal(keys[next(ki)], (1, dout), jnp.float32) * 0.01
        return w, b

    def ln():
        g = 1.0 + 0.1 * jax.random.normal(keys[next(ki)], (1, C), jnp.float32)
        b = 0.1 * jax.random.normal(keys[next(ki)], (1, C), jnp.float32)
        return g, b

    p = {}
    p["wq1"], p["bq1"] = lin(C, C)
    p["wk1"], p["bk1"] = lin(C, C)
    p["wv1"], p["bv1"] = lin(C, C)
    p["wo1"], p["bo1"] = lin(C, C)
    p["g1"], p["be1"] = ln()
    p["wq2"], p["bq2"] = lin(C, C)
    p["wk2"], p["bk2"] = lin(C, C)
    p["wv2"], p["bv2"] = lin(C, C)
    p["wo2"], p["bo2"] = lin(C, C)
    p["g2"], p["be2"] = ln()
    p["wf1"], p["bf1"] = lin(C, F)
    p["wf2"], p["bf2"] = lin(F, C)
    p["g3"], p["be3"] = ln()
    return p


# ------------------------------ pure-JAX reference -----------------------------

def _ref_mha(xq, xkv, mask, wq, bq, wk, bk, wv, bv, wo, bo, n_heads, head_size):
    B, Tq, C = xq.shape
    Tk = xkv.shape[1]
    q = (xq @ wq + bq).reshape(B, Tq, n_heads, head_size).transpose(0, 2, 1, 3)
    k = (xkv @ wk + bk).reshape(B, Tk, n_heads, head_size).transpose(0, 2, 1, 3)
    v = (xkv @ wv + bv).reshape(B, Tk, n_heads, head_size).transpose(0, 2, 1, 3)
    attn = jnp.einsum("bhqd,bhkd->bhqk", q, k) / math.sqrt(head_size)
    attn = jnp.where(mask[None, None] == 0, -1e10, attn)
    attn = jax.nn.softmax(attn, axis=-1)
    out = jnp.einsum("bhqk,bhkd->bhqd", attn, v)
    out = out.transpose(0, 2, 1, 3).reshape(B, Tq, C)
    return out @ wo + bo


def ref_decoder_block(y, features, src_mask, targ_mask, p, n_heads):
    head_size = y.shape[-1] // n_heads
    sa = _ref_mha(y, y, targ_mask, p["wq1"], p["bq1"], p["wk1"], p["bk1"],
                  p["wv1"], p["bv1"], p["wo1"], p["bo1"], n_heads, head_size)
    out = _layer_norm(sa + y, p["g1"], p["be1"])
    ca = _ref_mha(out, features, src_mask, p["wq2"], p["bq2"], p["wk2"], p["bk2"],
                  p["wv2"], p["bv2"], p["wo2"], p["bo2"], n_heads, head_size)
    out = _layer_norm(ca + out, p["g2"], p["be2"])
    h = jnp.maximum(out @ p["wf1"] + p["bf1"], 0.0)
    ff = h @ p["wf2"] + p["bf2"]
    out = _layer_norm(ff + out, p["g3"], p["be3"])
    return out


# ------------------------------------ main -------------------------------------

if __name__ == "__main__":
    # batch, tgt seq, src seq, embed, heads, ff expansion. C=128 / T,S multiples of 8
    # keep the output block lane-dense; B=3 exercises the batch-padding path.
    B, T, S, C, H, FF = 3, 16, 16, 128, 4, 4

    key = jax.random.PRNGKey(0)
    k1, k2, kp = jax.random.split(key, 3)
    y = jax.random.normal(k1, (B, T, C), jnp.float32)
    features = jax.random.normal(k2, (B, S, C), jnp.float32)
    targ_mask = jnp.tril(jnp.ones((T, T), jnp.float32))            # causal
    src_mask = jnp.ones((T, S), jnp.float32).at[:, -1].set(0.0)    # last src pos masked

    params = init_params(kp, C, FF)
    prep = prepare_decoder_params(params, H)    # one-time weight prep (fuse/scale/bf16)

    out = decoder_block(y, features, src_mask, targ_mask, prep, H)
    out = jax.block_until_ready(out)

    ref = ref_decoder_block(y, features, src_mask, targ_mask, params, H)
    max_err = float(jnp.max(jnp.abs(out - ref)))
    # Kernel uses bf16 matmul inputs (f32 accumulation) + approx reciprocal in softmax,
    # so allow bf16-level tolerance against the pure-f32 reference.
    assert jnp.allclose(out, ref, atol=5e-2, rtol=5e-2), f"mismatch, max_err={max_err}"

    print("KERNEL_OK")
</pallas_src>

<mosaic_0001>
module attributes {stable_mosaic.version = 11 : i64} {
  func.func @_decoder_block_kernel(%arg0: i32, %arg1: memref<2x16x128xf32, #tpu.memory_space<vmem>>, %arg2: memref<2x16x128xf32, #tpu.memory_space<vmem>>, %arg3: memref<16x16xf32, #tpu.memory_space<vmem>>, %arg4: memref<16x16xf32, #tpu.memory_space<vmem>>, %arg5: memref<128x384xbf16, #tpu.memory_space<vmem>>, %arg6: memref<1x384xf32, #tpu.memory_space<vmem>>, %arg7: memref<128x128xbf16, #tpu.memory_space<vmem>>, %arg8: memref<1x128xf32, #tpu.memory_space<vmem>>, %arg9: memref<1x128xf32, #tpu.memory_space<vmem>>, %arg10: memref<1x128xf32, #tpu.memory_space<vmem>>, %arg11: memref<128x128xbf16, #tpu.memory_space<vmem>>, %arg12: memref<1x128xf32, #tpu.memory_space<vmem>>, %arg13: memref<128x256xbf16, #tpu.memory_space<vmem>>, %arg14: memref<1x256xf32, #tpu.memory_space<vmem>>, %arg15: memref<128x128xbf16, #tpu.memory_space<vmem>>, %arg16: memref<1x128xf32, #tpu.memory_space<vmem>>, %arg17: memref<1x128xf32, #tpu.memory_space<vmem>>, %arg18: memref<1x128xf32, #tpu.memory_space<vmem>>, %arg19: memref<128x512xbf16, #tpu.memory_space<vmem>>, %arg20: memref<1x512xf32, #tpu.memory_space<vmem>>, %arg21: memref<512x128xbf16, #tpu.memory_space<vmem>>, %arg22: memref<1x128xf32, #tpu.memory_space<vmem>>, %arg23: memref<1x128xf32, #tpu.memory_space<vmem>>, %arg24: memref<1x128xf32, #tpu.memory_space<vmem>>, %arg25: memref<2x16x128xf32, #tpu.memory_space<vmem>>) attributes {dimension_semantics = [#tpu.dimension_semantics<parallel>], iteration_bounds = array<i64: 2>, scalar_prefetch = 0 : i64, scratch_operands = 0 : i64, tpu.core_type = #tpu.core_type<tc>, window_params = [{transform_indices = @transform_0, window_bounds = array<i64: 2, 16, 128>}, {transform_indices = @transform_1, window_bounds = array<i64: 2, 16, 128>}, {pipeline_mode = #tpu.pipeline_mode<synchronous>, transform_indices = @transform_2, window_bounds = array<i64: 16, 16>}, {pipeline_mode = #tpu.pipeline_mode<synchronous>, transform_indices = @transform_3, window_bounds = array<i64: 16, 16>}, {pipeline_mode = #tpu.pipeline_mode<synchronous>, transform_indices = @transform_4, window_bounds = array<i64: 128, 384>}, {pipeline_mode = #tpu.pipeline_mode<synchronous>, transform_indices = @transform_5, window_bounds = array<i64: 1, 384>}, {pipeline_mode = #tpu.pipeline_mode<synchronous>, transform_indices = @transform_6, window_bounds = array<i64: 128, 128>}, {pipeline_mode = #tpu.pipeline_mode<synchronous>, transform_indices = @transform_7, window_bounds = array<i64: 1, 128>}, {pipeline_mode = #tpu.pipeline_mode<synchronous>, transform_indices = @transform_8, window_bounds = array<i64: 1, 128>}, {pipeline_mode = #tpu.pipeline_mode<synchronous>, transform_indices = @transform_9, window_bounds = array<i64: 1, 128>}, {pipeline_mode = #tpu.pipeline_mode<synchronous>, transform_indices = @transform_10, window_bounds = array<i64: 128, 128>}, {pipeline_mode = #tpu.pipeline_mode<synchronous>, transform_indices = @transform_11, window_bounds = array<i64: 1, 128>}, {pipeline_mode = #tpu.pipeline_mode<synchronous>, transform_indices = @transform_12, window_bounds = array<i64: 128, 256>}, {pipeline_mode = #tpu.pipeline_mode<synchronous>, transform_indices = @transform_13, window_bounds = array<i64: 1, 256>}, {pipeline_mode = #tpu.pipeline_mode<synchronous>, transform_indices = @transform_14, window_bounds = array<i64: 128, 128>}, {pipeline_mode = #tpu.pipeline_mode<synchronous>, transform_indices = @transform_15, window_bounds = array<i64: 1, 128>}, {pipeline_mode = #tpu.pipeline_mode<synchronous>, transform_indices = @transform_16, window_bounds = array<i64: 1, 128>}, {pipeline_mode = #tpu.pipeline_mode<synchronous>, transform_indices = @transform_17, window_bounds = array<i64: 1, 128>}, {pipeline_mode = #tpu.pipeline_mode<synchronous>, transform_indices = @transform_18, window_bounds = array<i64: 128, 512>}, {pipeline_mode = #tpu.pipeline_mode<synchronous>, transform_indices = @transform_19, window_bounds = array<i64: 1, 512>}, {pipeline_mode = #tpu.pipeline_mode<synchronous>, transform_indices = @transform_20, window_bounds = array<i64: 512, 128>}, {pipeline_mode = #tpu.pipeline_mode<synchronous>, transform_indices = @transform_21, window_bounds = array<i64: 1, 128>}, {pipeline_mode = #tpu.pipeline_mode<synchronous>, transform_indices = @transform_22, window_bounds = array<i64: 1, 128>}, {pipeline_mode = #tpu.pipeline_mode<synchronous>, transform_indices = @transform_23, window_bounds = array<i64: 1, 128>}, {transform_indices = @transform_24, window_bounds = array<i64: 2, 16, 128>}]} {
    %c0 = arith.constant 0 : index
    %c0_0 = arith.constant 0 : index
    %c0_1 = arith.constant 0 : index
    %0 = vector.load %arg1[%c0, %c0_0, %c0_1] : memref<2x16x128xf32, #tpu.memory_space<vmem>>, vector<2x16x128xf32>
    %c0_2 = arith.constant 0 : index
    %c0_3 = arith.constant 0 : index
    %1 = vector.load %arg4[%c0_2, %c0_3] : memref<16x16xf32, #tpu.memory_space<vmem>>, vector<16x16xf32>
    %c0_4 = arith.constant 0 : index
    %c0_5 = arith.constant 0 : index
    %2 = vector.load %arg3[%c0_4, %c0_5] : memref<16x16xf32, #tpu.memory_space<vmem>>, vector<16x16xf32>
    %3 = vector.shape_cast %0 : vector<2x16x128xf32> to vector<32x128xf32>
    %4 = arith.truncf %3 : vector<32x128xf32> to vector<32x128xbf16>
    %c0_6 = arith.constant 0 : index
    %c0_7 = arith.constant 0 : index
    %5 = vector.load %arg5[%c0_6, %c0_7] : memref<128x384xbf16, #tpu.memory_space<vmem>>, vector<128x384xbf16>
    %cst = arith.constant dense<0.000000e+00> : vector<32x384xf32>
    %6 = tpu.matmul %4, %5, %cst {dimension_numbers = #tpu.dot_dimension_numbers<[1], [0], [0], [1], [0, 0, 1, 1], [], []>} : vector<32x128xbf16>, vector<128x384xbf16>, vector<32x384xf32> -> vector<32x384xf32>
    %c0_8 = arith.constant 0 : index
    %c0_9 = arith.constant 0 : index
    %7 = vector.load %arg6[%c0_8, %c0_9] : memref<1x384xf32, #tpu.memory_space<vmem>>, vector<1x384xf32>
    %8 = vector.broadcast %7 : vector<1x384xf32> to vector<32x384xf32>
    %9 = arith.addf %6, %8 : vector<32x384xf32>
    %10 = vector.extract_strided_slice %9 {offsets = [0, 0], sizes = [32, 128], strides = [1, 1]} : vector<32x384xf32> to vector<32x128xf32>
    %11 = arith.truncf %10 : vector<32x128xf32> to vector<32x128xbf16>
    %12 = vector.shape_cast %11 : vector<32x128xbf16> to vector<2x16x128xbf16>
    %13 = vector.extract_strided_slice %9 {offsets = [0, 128], sizes = [32, 128], strides = [1, 1]} : vector<32x384xf32> to vector<32x128xf32>
    %14 = arith.truncf %13 : vector<32x128xf32> to vector<32x128xbf16>
    %15 = vector.shape_cast %14 : vector<32x128xbf16> to vector<2x16x128xbf16>
    %16 = vector.extract_strided_slice %9 {offsets = [0, 256], sizes = [32, 128], strides = [1, 1]} : vector<32x384xf32> to vector<32x128xf32>
    %17 = arith.truncf %16 : vector<32x128xf32> to vector<32x128xbf16>
    %18 = vector.shape_cast %17 : vector<32x128xbf16> to vector<2x16x128xbf16>
    %19 = vector.shape_cast %1 : vector<16x16xf32> to vector<1x16x16xf32>
    %20 = vector.extract_strided_slice %12 {offsets = [0, 0, 0], sizes = [2, 16, 32], strides = [1, 1, 1]} : vector<2x16x128xbf16> to vector<2x16x32xbf16>
    %21 = vector.extract_strided_slice %15 {offsets = [0, 0, 0], sizes = [2, 16, 32], strides = [1, 1, 1]} : vector<2x16x128xbf16> to vector<2x16x32xbf16>
    %22 = vector.extract_strided_slice %18 {offsets = [0, 0, 0], sizes = [2, 16, 32], strides = [1, 1, 1]} : vector<2x16x128xbf16> to vector<2x16x32xbf16>
    %cst_10 = arith.constant dense<0.000000e+00> : vector<2x16x16xf32>
    %23 = tpu.matmul %20, %21, %cst_10 {dimension_numbers = #tpu.dot_dimension_numbers<[2], [2], [1], [1], [0, 0, 0, 1, 1, 1], [0], [0]>} : vector<2x16x32xbf16>, vector<2x16x32xbf16>, vector<2x16x16xf32> -> vector<2x16x16xf32>
    %24 = vector.broadcast %19 : vector<1x16x16xf32> to vector<2x16x16xf32>
    %25 = arith.addf %23, %24 : vector<2x16x16xf32>
    %cst_11 = arith.constant dense<0xFF800000> : vector<2x16xf32>
    %26 = vector.multi_reduction <maximumf>, %25, %cst_11 [2] : vector<2x16x16xf32> to vector<2x16xf32>
    %27 = vector.shape_cast %26 : vector<2x16xf32> to vector<2x16x1xf32>
    %28 = vector.broadcast %27 : vector<2x16x1xf32> to vector<2x16x16xf32>
    %29 = arith.subf %25, %28 : vector<2x16x16xf32>
    %30 = math.exp %29 : vector<2x16x16xf32>
    %cst_12 = arith.constant dense<0.000000e+00> : vector<2x16xf32>
    %31 = vector.multi_reduction <add>, %30, %cst_12 [2] : vector<2x16x16xf32> to vector<2x16xf32>
    %32 = vector.shape_cast %31 : vector<2x16xf32> to vector<2x16x1xf32>
    %33 = tpu.reciprocal %32 {approx = true} : vector<2x16x1xf32> -> vector<2x16x1xf32>
    %34 = vector.broadcast %33 : vector<2x16x1xf32> to vector<2x16x16xf32>
    %35 = arith.mulf %30, %34 : vector<2x16x16xf32>
    %36 = arith.truncf %35 : vector<2x16x16xf32> to vector<2x16x16xbf16>
    %cst_13 = arith.constant dense<0.000000e+00> : vector<2x16x32xf32>
    %37 = tpu.matmul %36, %22, %cst_13 {dimension_numbers = #tpu.dot_dimension_numbers<[2], [1], [1], [2], [0, 0, 0, 1, 1, 2], [0], [0]>} : vector<2x16x16xbf16>, vector<2x16x32xbf16>, vector<2x16x32xf32> -> vector<2x16x32xf32>
    %38 = arith.truncf %37 : vector<2x16x32xf32> to vector<2x16x32xbf16>
    %39 = vector.extract_strided_slice %12 {offsets = [0, 0, 32], sizes = [2, 16, 32], strides = [1, 1, 1]} : vector<2x16x128xbf16> to vector<2x16x32xbf16>
    %40 = vector.extract_strided_slice %15 {offsets = [0, 0, 32], sizes = [2, 16, 32], strides = [1, 1, 1]} : vector<2x16x128xbf16> to vector<2x16x32xbf16>
    %41 = vector.extract_strided_slice %18 {offsets = [0, 0, 32], sizes = [2, 16, 32], strides = [1, 1, 1]} : vector<2x16x128xbf16> to vector<2x16x32xbf16>
    %cst_14 = arith.constant dense<0.000000e+00> : vector<2x16x16xf32>
    %42 = tpu.matmul %39, %40, %cst_14 {dimension_numbers = #tpu.dot_dimension_numbers<[2], [2], [1], [1], [0, 0, 0, 1, 1, 1], [0], [0]>} : vector<2x16x32xbf16>, vector<2x16x32xbf16>, vector<2x16x16xf32> -> vector<2x16x16xf32>
    %43 = vector.broadcast %19 : vector<1x16x16xf32> to vector<2x16x16xf32>
    %44 = arith.addf %42, %43 : vector<2x16x16xf32>
    %cst_15 = arith.constant dense<0xFF800000> : vector<2x16xf32>
    %45 = vector.multi_reduction <maximumf>, %44, %cst_15 [2] : vector<2x16x16xf32> to vector<2x16xf32>
    %46 = vector.shape_cast %45 : vector<2x16xf32> to vector<2x16x1xf32>
    %47 = vector.broadcast %46 : vector<2x16x1xf32> to vector<2x16x16xf32>
    %48 = arith.subf %44, %47 : vector<2x16x16xf32>
    %49 = math.exp %48 : vector<2x16x16xf32>
    %cst_16 = arith.constant dense<0.000000e+00> : vector<2x16xf32>
    %50 = vector.multi_reduction <add>, %49, %cst_16 [2] : vector<2x16x16xf32> to vector<2x16xf32>
    %51 = vector.shape_cast %50 : vector<2x16xf32> to vector<2x16x1xf32>
    %52 = tpu.reciprocal %51 {approx = true} : vector<2x16x1xf32> -> vector<2x16x1xf32>
    %53 = vector.broadcast %52 : vector<2x16x1xf32> to vector<2x16x16xf32>
    %54 = arith.mulf %49, %53 : vector<2x16x16xf32>
    %55 = arith.truncf %54 : vector<2x16x16xf32> to vector<2x16x16xbf16>
    %cst_17 = arith.constant dense<0.000000e+00> : vector<2x16x32xf32>
    %56 = tpu.matmul %55, %41, %cst_17 {dimension_numbers = #tpu.dot_dimension_numbers<[2], [1], [1], [2], [0, 0, 0, 1, 1, 2], [0], [0]>} : vector<2x16x16xbf16>, vector<2x16x32xbf16>, vector<2x16x32xf32> -> vector<2x16x32xf32>
    %57 = arith.truncf %56 : vector<2x16x32xf32> to vector<2x16x32xbf16>
    %58 = vector.extract_strided_slice %12 {offsets = [0, 0, 64], sizes = [2, 16, 32], strides = [1, 1, 1]} : vector<2x16x128xbf16> to vector<2x16x32xbf16>
    %59 = vector.extract_strided_slice %15 {offsets = [0, 0, 64], sizes = [2, 16, 32], strides = [1, 1, 1]} : vector<2x16x128xbf16> to vector<2x16x32xbf16>
    %60 = vector.extract_strided_slice %18 {offsets = [0, 0, 64], sizes = [2, 16, 32], strides = [1, 1, 1]} : vector<2x16x128xbf16> to vector<2x16x32xbf16>
    %cst_18 = arith.constant dense<0.000000e+00> : vector<2x16x16xf32>
    %61 = tpu.matmul %58, %59, %cst_18 {dimension_numbers = #tpu.dot_dimension_numbers<[2], [2], [1], [1], [0, 0, 0, 1, 1, 1], [0], [0]>} : vector<2x16x32xbf16>, vector<2x16x32xbf16>, vector<2x16x16xf32> -> vector<2x16x16xf32>
    %62 = vector.broadcast %19 : vector<1x16x16xf32> to vector<2x16x16xf32>
    %63 = arith.addf %61, %62 : vector<2x16x16xf32>
    %cst_19 = arith.constant dense<0xFF800000> : vector<2x16xf32>
    %64 = vector.multi_reduction <maximumf>, %63, %cst_19 [2] : vector<2x16x16xf32> to vector<2x16xf32>
    %65 = vector.shape_cast %64 : vector<2x16xf32> to vector<2x16x1xf32>
    %66 = vector.broadcast %65 : vector<2x16x1xf32> to vector<2x16x16xf32>
    %67 = arith.subf %63, %66 : vector<2x16x16xf32>
    %68 = math.exp %67 : vector<2x16x16xf32>
    %cst_20 = arith.constant dense<0.000000e+00> : vector<2x16xf32>
    %69 = vector.multi_reduction <add>, %68, %cst_20 [2] : vector<2x16x16xf32> to vector<2x16xf32>
    %70 = vector.shape_cast %69 : vector<2x16xf32> to vector<2x16x1xf32>
    %71 = tpu.reciprocal %70 {approx = true} : vector<2x16x1xf32> -> vector<2x16x1xf32>
    %72 = vector.broadcast %71 : vector<2x16x1xf32> to vector<2x16x16xf32>
    %73 = arith.mulf %68, %72 : vector<2x16x16xf32>
    %74 = arith.truncf %73 : vector<2x16x16xf32> to vector<2x16x16xbf16>
    %cst_21 = arith.constant dense<0.000000e+00> : vector<2x16x32xf32>
    %75 = tpu.matmul %74, %60, %cst_21 {dimension_numbers = #tpu.dot_dimension_numbers<[2], [1], [1], [2], [0, 0, 0, 1, 1, 2], [0], [0]>} : vector<2x16x16xbf16>, vector<2x16x32xbf16>, vector<2x16x32xf32> -> vector<2x16x32xf32>
    %76 = arith.truncf %75 : vector<2x16x32xf32> to vector<2x16x32xbf16>
    %77 = vector.extract_strided_slice %12 {offsets = [0, 0, 96], sizes = [2, 16, 32], strides = [1, 1, 1]} : vector<2x16x128xbf16> to vector<2x16x32xbf16>
    %78 = vector.extract_strided_slice %15 {offsets = [0, 0, 96], sizes = [2, 16, 32], strides = [1, 1, 1]} : vector<2x16x128xbf16> to vector<2x16x32xbf16>
    %79 = vector.extract_strided_slice %18 {offsets = [0, 0, 96], sizes = [2, 16, 32], strides = [1, 1, 1]} : vector<2x16x128xbf16> to vector<2x16x32xbf16>
    %cst_22 = arith.constant dense<0.000000e+00> : vector<2x16x16xf32>
    %80 = tpu.matmul %77, %78, %cst_22 {dimension_numbers = #tpu.dot_dimension_numbers<[2], [2], [1], [1], [0, 0, 0, 1, 1, 1], [0], [0]>} : vector<2x16x32xbf16>, vector<2x16x32xbf16>, vector<2x16x16xf32> -> vector<2x16x16xf32>
    %81 = vector.broadcast %19 : vector<1x16x16xf32> to vector<2x16x16xf32>
    %82 = arith.addf %80, %81 : vector<2x16x16xf32>
    %cst_23 = arith.constant dense<0xFF800000> : vector<2x16xf32>
    %83 = vector.multi_reduction <maximumf>, %82, %cst_23 [2] : vector<2x16x16xf32> to vector<2x16xf32>
    %84 = vector.shape_cast %83 : vector<2x16xf32> to vector<2x16x1xf32>
    %85 = vector.broadcast %84 : vector<2x16x1xf32> to vector<2x16x16xf32>
    %86 = arith.subf %82, %85 : vector<2x16x16xf32>
    %87 = math.exp %86 : vector<2x16x16xf32>
    %cst_24 = arith.constant dense<0.000000e+00> : vector<2x16xf32>
    %88 = vector.multi_reduction <add>, %87, %cst_24 [2] : vector<2x16x16xf32> to vector<2x16xf32>
    %89 = vector.shape_cast %88 : vector<2x16xf32> to vector<2x16x1xf32>
    %90 = tpu.reciprocal %89 {approx = true} : vector<2x16x1xf32> -> vector<2x16x1xf32>
    %91 = vector.broadcast %90 : vector<2x16x1xf32> to vector<2x16x16xf32>
    %92 = arith.mulf %87, %91 : vector<2x16x16xf32>
    %93 = arith.truncf %92 : vector<2x16x16xf32> to vector<2x16x16xbf16>
    %cst_25 = arith.constant dense<0.000000e+00> : vector<2x16x32xf32>
    %94 = tpu.matmul %93, %79, %cst_25 {dimension_numbers = #tpu.dot_dimension_numbers<[2], [1], [1], [2], [0, 0, 0, 1, 1, 2], [0], [0]>} : vector<2x16x16xbf16>, vector<2x16x32xbf16>, vector<2x16x32xf32> -> vector<2x16x32xf32>
    %95 = arith.truncf %94 : vector<2x16x32xf32> to vector<2x16x32xbf16>
    %96 = tpu.concatenate %38, %57, %76, %95 in 2 : vector<2x16x32xbf16>, vector<2x16x32xbf16>, vector<2x16x32xbf16>, vector<2x16x32xbf16> -> vector<2x16x128xbf16>
    %97 = vector.shape_cast %96 : vector<2x16x128xbf16> to vector<32x128xbf16>
    %c0_26 = arith.constant 0 : index
    %c0_27 = arith.constant 0 : index
    %98 = vector.load %arg7[%c0_26, %c0_27] : memref<128x128xbf16, #tpu.memory_space<vmem>>, vector<128x128xbf16>
    %cst_28 = arith.constant dense<0.000000e+00> : vector<32x128xf32>
    %99 = tpu.matmul %97, %98, %cst_28 {dimension_numbers = #tpu.dot_dimension_numbers<[1], [0], [0], [1], [0, 0, 1, 1], [], []>} : vector<32x128xbf16>, vector<128x128xbf16>, vector<32x128xf32> -> vector<32x128xf32>
    %c0_29 = arith.constant 0 : index
    %c0_30 = arith.constant 0 : index
    %100 = vector.load %arg8[%c0_29, %c0_30] : memref<1x128xf32, #tpu.memory_space<vmem>>, vector<1x128xf32>
    %101 = vector.broadcast %100 : vector<1x128xf32> to vector<32x128xf32>
    %102 = arith.addf %99, %101 : vector<32x128xf32>
    %103 = vector.shape_cast %102 : vector<32x128xf32> to vector<2x16x128xf32>
    %104 = arith.addf %103, %0 : vector<2x16x128xf32>
    %c0_31 = arith.constant 0 : index
    %c0_32 = arith.constant 0 : index
    %105 = vector.load %arg9[%c0_31, %c0_32] : memref<1x128xf32, #tpu.memory_space<vmem>>, vector<1x128xf32>
    %c0_33 = arith.constant 0 : index
    %c0_34 = arith.constant 0 : index
    %106 = vector.load %arg10[%c0_33, %c0_34] : memref<1x128xf32, #tpu.memory_space<vmem>>, vector<1x128xf32>
    %cst_35 = arith.constant dense<0.000000e+00> : vector<2x16xf32>
    %107 = vector.multi_reduction <add>, %104, %cst_35 [2] : vector<2x16x128xf32> to vector<2x16xf32>
    %108 = vector.shape_cast %107 : vector<2x16xf32> to vector<2x16x1xf32>
    %cst_36 = arith.constant 1.280000e+02 : f32
    %109 = vector.broadcast %cst_36 : f32 to vector<2x16x1xf32>
    %110 = arith.divf %108, %109 : vector<2x16x1xf32>
    %111 = vector.broadcast %110 : vector<2x16x1xf32> to vector<2x16x128xf32>
    %112 = arith.subf %104, %111 : vector<2x16x128xf32>
    %113 = arith.mulf %112, %112 : vector<2x16x128xf32>
    %cst_37 = arith.constant dense<0.000000e+00> : vector<2x16xf32>
    %114 = vector.multi_reduction <add>, %113, %cst_37 [2] : vector<2x16x128xf32> to vector<2x16xf32>
    %115 = vector.shape_cast %114 : vector<2x16xf32> to vector<2x16x1xf32>
    %cst_38 = arith.constant 1.280000e+02 : f32
    %116 = vector.broadcast %cst_38 : f32 to vector<2x16x1xf32>
    %117 = arith.divf %115, %116 : vector<2x16x1xf32>
    %118 = vector.broadcast %110 : vector<2x16x1xf32> to vector<2x16x128xf32>
    %119 = arith.subf %104, %118 : vector<2x16x128xf32>
    %cst_39 = arith.constant 9.99999974E-6 : f32
    %120 = vector.broadcast %cst_39 : f32 to vector<2x16x1xf32>
    %121 = arith.addf %117, %120 : vector<2x16x1xf32>
    %122 = math.rsqrt %121 : vector<2x16x1xf32>
    %123 = vector.broadcast %122 : vector<2x16x1xf32> to vector<2x16x128xf32>
    %124 = arith.mulf %119, %123 : vector<2x16x128xf32>
    %125 = vector.shape_cast %105 : vector<1x128xf32> to vector<1x1x128xf32>
    %126 = vector.broadcast %125 : vector<1x1x128xf32> to vector<2x16x128xf32>
    %127 = arith.mulf %124, %126 : vector<2x16x128xf32>
    %128 = vector.shape_cast %106 : vector<1x128xf32> to vector<1x1x128xf32>
    %129 = vector.broadcast %128 : vector<1x1x128xf32> to vector<2x16x128xf32>
    %130 = arith.addf %127, %129 : vector<2x16x128xf32>
    %131 = vector.shape_cast %130 : vector<2x16x128xf32> to vector<32x128xf32>
    %132 = arith.truncf %131 : vector<32x128xf32> to vector<32x128xbf16>
    %c0_40 = arith.constant 0 : index
    %c0_41 = arith.constant 0 : index
    %c0_42 = arith.constant 0 : index
    %133 = vector.load %arg2[%c0_40, %c0_41, %c0_42] : memref<2x16x128xf32, #tpu.memory_space<vmem>>, vector<2x16x128xf32>
    %134 = vector.shape_cast %133 : vector<2x16x128xf32> to vector<32x128xf32>
    %135 = arith.truncf %134 : vector<32x128xf32> to vector<32x128xbf16>
    %c0_43 = arith.constant 0 : index
    %c0_44 = arith.constant 0 : index
    %136 = vector.load %arg11[%c0_43, %c0_44] : memref<128x128xbf16, #tpu.memory_space<vmem>>, vector<128x128xbf16>
    %cst_45 = arith.constant dense<0.000000e+00> : vector<32x128xf32>
    %137 = tpu.matmul %132, %136, %cst_45 {dimension_numbers = #tpu.dot_dimension_numbers<[1], [0], [0], [1], [0, 0, 1, 1], [], []>} : vector<32x128xbf16>, vector<128x128xbf16>, vector<32x128xf32> -> vector<32x128xf32>
    %c0_46 = arith.constant 0 : index
    %c0_47 = arith.constant 0 : index
    %138 = vector.load %arg12[%c0_46, %c0_47] : memref<1x128xf32, #tpu.memory_space<vmem>>, vector<1x128xf32>
    %139 = vector.broadcast %138 : vector<1x128xf32> to vector<32x128xf32>
    %140 = arith.addf %137, %139 : vector<32x128xf32>
    %c0_48 = arith.constant 0 : index
    %c0_49 = arith.constant 0 : index
    %141 = vector.load %arg13[%c0_48, %c0_49] : memref<128x256xbf16, #tpu.memory_space<vmem>>, vector<128x256xbf16>
    %cst_50 = arith.constant dense<0.000000e+00> : vector<32x256xf32>
    %142 = tpu.matmul %135, %141, %cst_50 {dimension_numbers = #tpu.dot_dimension_numbers<[1], [0], [0], [1], [0, 0, 1, 1], [], []>} : vector<32x128xbf16>, vector<128x256xbf16>, vector<32x256xf32> -> vector<32x256xf32>
    %c0_51 = arith.constant 0 : index
    %c0_52 = arith.constant 0 : index
    %143 = vector.load %arg14[%c0_51, %c0_52] : memref<1x256xf32, #tpu.memory_space<vmem>>, vector<1x256xf32>
    %144 = vector.broadcast %143 : vector<1x256xf32> to vector<32x256xf32>
    %145 = arith.addf %142, %144 : vector<32x256xf32>
    %146 = arith.truncf %140 : vector<32x128xf32> to vector<32x128xbf16>
    %147 = vector.shape_cast %146 : vector<32x128xbf16> to vector<2x16x128xbf16>
    %148 = vector.extract_strided_slice %145 {offsets = [0, 0], sizes = [32, 128], strides = [1, 1]} : vector<32x256xf32> to vector<32x128xf32>
    %149 = arith.truncf %148 : vector<32x128xf32> to vector<32x128xbf16>
    %150 = vector.shape_cast %149 : vector<32x128xbf16> to vector<2x16x128xbf16>
    %151 = vector.extract_strided_slice %145 {offsets = [0, 128], sizes = [32, 128], strides = [1, 1]} : vector<32x256xf32> to vector<32x128xf32>
    %152 = arith.truncf %151 : vector<32x128xf32> to vector<32x128xbf16>
    %153 = vector.shape_cast %152 : vector<32x128xbf16> to vector<2x16x128xbf16>
    %154 = vector.shape_cast %2 : vector<16x16xf32> to vector<1x16x16xf32>
    %155 = vector.extract_strided_slice %147 {offsets = [0, 0, 0], sizes = [2, 16, 32], strides = [1, 1, 1]} : vector<2x16x128xbf16> to vector<2x16x32xbf16>
    %156 = vector.extract_strided_slice %150 {offsets = [0, 0, 0], sizes = [2, 16, 32], strides = [1, 1, 1]} : vector<2x16x128xbf16> to vector<2x16x32xbf16>
    %157 = vector.extract_strided_slice %153 {offsets = [0, 0, 0], sizes = [2, 16, 32], strides = [1, 1, 1]} : vector<2x16x128xbf16> to vector<2x16x32xbf16>
    %cst_53 = arith.constant dense<0.000000e+00> : vector<2x16x16xf32>
    %158 = tpu.matmul %155, %156, %cst_53 {dimension_numbers = #tpu.dot_dimension_numbers<[2], [2], [1], [1], [0, 0, 0, 1, 1, 1], [0], [0]>} : vector<2x16x32xbf16>, vector<2x16x32xbf16>, vector<2x16x16xf32> -> vector<2x16x16xf32>
    %159 = vector.broadcast %154 : vector<1x16x16xf32> to vector<2x16x16xf32>
    %160 = arith.addf %158, %159 : vector<2x16x16xf32>
    %cst_54 = arith.constant dense<0xFF800000> : vector<2x16xf32>
    %161 = vector.multi_reduction <maximumf>, %160, %cst_54 [2] : vector<2x16x16xf32> to vector<2x16xf32>
    %162 = vector.shape_cast %161 : vector<2x16xf32> to vector<2x16x1xf32>
    %163 = vector.broadcast %162 : vector<2x16x1xf32> to vector<2x16x16xf32>
    %164 = arith.subf %160, %163 : vector<2x16x16xf32>
    %165 = math.exp %164 : vector<2x16x16xf32>
    %cst_55 = arith.constant dense<0.000000e+00> : vector<2x16xf32>
    %166 = vector.multi_reduction <add>, %165, %cst_55 [2] : vector<2x16x16xf32> to vector<2x16xf32>
    %167 = vector.shape_cast %166 : vector<2x16xf32> to vector<2x16x1xf32>
    %168 = tpu.reciprocal %167 {approx = true} : vector<2x16x1xf32> -> vector<2x16x1xf32>
    %169 = vector.broadcast %168 : vector<2x16x1xf32> to vector<2x16x16xf32>
    %170 = arith.mulf %165, %169 : vector<2x16x16xf32>
    %171 = arith.truncf %170 : vector<2x16x16xf32> to vector<2x16x16xbf16>
    %cst_56 = arith.constant dense<0.000000e+00> : vector<2x16x32xf32>
    %172 = tpu.matmul %171, %157, %cst_56 {dimension_numbers = #tpu.dot_dimension_numbers<[2], [1], [1], [2], [0, 0, 0, 1, 1, 2], [0], [0]>} : vector<2x16x16xbf16>, vector<2x16x32xbf16>, vector<2x16x32xf32> -> vector<2x16x32xf32>
    %173 = arith.truncf %172 : vector<2x16x32xf32> to vector<2x16x32xbf16>
    %174 = vector.extract_strided_slice %147 {offsets = [0, 0, 32], sizes = [2, 16, 32], strides = [1, 1, 1]} : vector<2x16x128xbf16> to vector<2x16x32xbf16>
    %175 = vector.extract_strided_slice %150 {offsets = [0, 0, 32], sizes = [2, 16, 32], strides = [1, 1, 1]} : vector<2x16x128xbf16> to vector<2x16x32xbf16>
    %176 = vector.extract_strided_slice %153 {offsets = [0, 0, 32], sizes = [2, 16, 32], strides = [1, 1, 1]} : vector<2x16x128xbf16> to vector<2x16x32xbf16>
    %cst_57 = arith.constant dense<0.000000e+00> : vector<2x16x16xf32>
    %177 = tpu.matmul %174, %175, %cst_57 {dimension_numbers = #tpu.dot_dimension_numbers<[2], [2], [1], [1], [0, 0, 0, 1, 1, 1], [0], [0]>} : vector<2x16x32xbf16>, vector<2x16x32xbf16>, vector<2x16x16xf32> -> vector<2x16x16xf32>
    %178 = vector.broadcast %154 : vector<1x16x16xf32> to vector<2x16x16xf32>
    %179 = arith.addf %177, %178 : vector<2x16x16xf32>
    %cst_58 = arith.constant dense<0xFF800000> : vector<2x16xf32>
    %180 = vector.multi_reduction <maximumf>, %179, %cst_58 [2] : vector<2x16x16xf32> to vector<2x16xf32>
    %181 = vector.shape_cast %180 : vector<2x16xf32> to vector<2x16x1xf32>
    %182 = vector.broadcast %181 : vector<2x16x1xf32> to vector<2x16x16xf32>
    %183 = arith.subf %179, %182 : vector<2x16x16xf32>
    %184 = math.exp %183 : vector<2x16x16xf32>
    %cst_59 = arith.constant dense<0.000000e+00> : vector<2x16xf32>
    %185 = vector.multi_reduction <add>, %184, %cst_59 [2] : vector<2x16x16xf32> to vector<2x16xf32>
    %186 = vector.shape_cast %185 : vector<2x16xf32> to vector<2x16x1xf32>
    %187 = tpu.reciprocal %186 {approx = true} : vector<2x16x1xf32> -> vector<2x16x1xf32>
    %188 = vector.broadcast %187 : vector<2x16x1xf32> to vector<2x16x16xf32>
    %189 = arith.mulf %184, %188 : vector<2x16x16xf32>
    %190 = arith.truncf %189 : vector<2x16x16xf32> to vector<2x16x16xbf16>
    %cst_60 = arith.constant dense<0.000000e+00> : vector<2x16x32xf32>
    %191 = tpu.matmul %190, %176, %cst_60 {dimension_numbers = #tpu.dot_dimension_numbers<[2], [1], [1], [2], [0, 0, 0, 1, 1, 2], [0], [0]>} : vector<2x16x16xbf16>, vector<2x16x32xbf16>, vector<2x16x32xf32> -> vector<2x16x32xf32>
    %192 = arith.truncf %191 : vector<2x16x32xf32> to vector<2x16x32xbf16>
    %193 = vector.extract_strided_slice %147 {offsets = [0, 0, 64], sizes = [2, 16, 32], strides = [1, 1, 1]} : vector<2x16x128xbf16> to vector<2x16x32xbf16>
    %194 = vector.extract_strided_slice %150 {offsets = [0, 0, 64], sizes = [2, 16, 32], strides = [1, 1, 1]} : vector<2x16x128xbf16> to vector<2x16x32xbf16>
    %195 = vector.extract_strided_slice %153 {offsets = [0, 0, 64], sizes = [2, 16, 32], strides = [1, 1, 1]} : vector<2x16x128xbf16> to vector<2x16x32xbf16>
    %cst_61 = arith.constant dense<0.000000e+00> : vector<2x16x16xf32>
    %196 = tpu.matmul %193, %194, %cst_61 {dimension_numbers = #tpu.dot_dimension_numbers<[2], [2], [1], [1], [0, 0, 0, 1, 1, 1], [0], [0]>} : vector<2x16x32xbf16>, vector<2x16x32xbf16>, vector<2x16x16xf32> -> vector<2x16x16xf32>
    %197 = vector.broadcast %154 : vector<1x16x16xf32> to vector<2x16x16xf32>
    %198 = arith.addf %196, %197 : vector<2x16x16xf32>
    %cst_62 = arith.constant dense<0xFF800000> : vector<2x16xf32>
    %199 = vector.multi_reduction <maximumf>, %198, %cst_62 [2] : vector<2x16x16xf32> to vector<2x16xf32>
    %200 = vector.shape_cast %199 : vector<2x16xf32> to vector<2x16x1xf32>
    %201 = vector.broadcast %200 : vector<2x16x1xf32> to vector<2x16x16xf32>
    %202 = arith.subf %198, %201 : vector<2x16x16xf32>
    %203 = math.exp %202 : vector<2x16x16xf32>
    %cst_63 = arith.constant dense<0.000000e+00> : vector<2x16xf32>
    %204 = vector.multi_reduction <add>, %203, %cst_63 [2] : vector<2x16x16xf32> to vector<2x16xf32>
    %205 = vector.shape_cast %204 : vector<2x16xf32> to vector<2x16x1xf32>
    %206 = tpu.reciprocal %205 {approx = true} : vector<2x16x1xf32> -> vector<2x16x1xf32>
    %207 = vector.broadcast %206 : vector<2x16x1xf32> to vector<2x16x16xf32>
    %208 = arith.mulf %203, %207 : vector<2x16x16xf32>
    %209 = arith.truncf %208 : vector<2x16x16xf32> to vector<2x16x16xbf16>
    %cst_64 = arith.constant dense<0.000000e+00> : vector<2x16x32xf32>
    %210 = tpu.matmul %209, %195, %cst_64 {dimension_numbers = #tpu.dot_dimension_numbers<[2], [1], [1], [2], [0, 0, 0, 1, 1, 2], [0], [0]>} : vector<2x16x16xbf16>, vector<2x16x32xbf16>, vector<2x16x32xf32> -> vector<2x16x32xf32>
    %211 = arith.truncf %210 : vector<2x16x32xf32> to vector<2x16x32xbf16>
    %212 = vector.extract_strided_slice %147 {offsets = [0, 0, 96], sizes = [2, 16, 32], strides = [1, 1, 1]} : vector<2x16x128xbf16> to vector<2x16x32xbf16>
    %213 = vector.extract_strided_slice %150 {offsets = [0, 0, 96], sizes = [2, 16, 32], strides = [1, 1, 1]} : vector<2x16x128xbf16> to vector<2x16x32xbf16>
    %214 = vector.extract_strided_slice %153 {offsets = [0, 0, 96], sizes = [2, 16, 32], strides = [1, 1, 1]} : vector<2x16x128xbf16> to vector<2x16x32xbf16>
    %cst_65 = arith.constant dense<0.000000e+00> : vector<2x16x16xf32>
    %215 = tpu.matmul %212, %213, %cst_65 {dimension_numbers = #tpu.dot_dimension_numbers<[2], [2], [1], [1], [0, 0, 0, 1, 1, 1], [0], [0]>} : vector<2x16x32xbf16>, vector<2x16x32xbf16>, vector<2x16x16xf32> -> vector<2x16x16xf32>
    %216 = vector.broadcast %154 : vector<1x16x16xf32> to vector<2x16x16xf32>
    %217 = arith.addf %215, %216 : vector<2x16x16xf32>
    %cst_66 = arith.constant dense<0xFF800000> : vector<2x16xf32>
    %218 = vector.multi_reduction <maximumf>, %217, %cst_66 [2] : vector<2x16x16xf32> to vector<2x16xf32>
    %219 = vector.shape_cast %218 : vector<2x16xf32> to vector<2x16x1xf32>
    %220 = vector.broadcast %219 : vector<2x16x1xf32> to vector<2x16x16xf32>
    %221 = arith.subf %217, %220 : vector<2x16x16xf32>
    %222 = math.exp %221 : vector<2x16x16xf32>
    %cst_67 = arith.constant dense<0.000000e+00> : vector<2x16xf32>
    %223 = vector.multi_reduction <add>, %222, %cst_67 [2] : vector<2x16x16xf32> to vector<2x16xf32>
    %224 = vector.shape_cast %223 : vector<2x16xf32> to vector<2x16x1xf32>
    %225 = tpu.reciprocal %224 {approx = true} : vector<2x16x1xf32> -> vector<2x16x1xf32>
    %226 = vector.broadcast %225 : vector<2x16x1xf32> to vector<2x16x16xf32>
    %227 = arith.mulf %222, %226 : vector<2x16x16xf32>
    %228 = arith.truncf %227 : vector<2x16x16xf32> to vector<2x16x16xbf16>
    %cst_68 = arith.constant dense<0.000000e+00> : vector<2x16x32xf32>
    %229 = tpu.matmul %228, %214, %cst_68 {dimension_numbers = #tpu.dot_dimension_numbers<[2], [1], [1], [2], [0, 0, 0, 1, 1, 2], [0], [0]>} : vector<2x16x16xbf16>, vector<2x16x32xbf16>, vector<2x16x32xf32> -> vector<2x16x32xf32>
    %230 = arith.truncf %229 : vector<2x16x32xf32> to vector<2x16x32xbf16>
    %231 = tpu.concatenate %173, %192, %211, %230 in 2 : vector<2x16x32xbf16>, vector<2x16x32xbf16>, vector<2x16x32xbf16>, vector<2x16x32xbf16> -> vector<2x16x128xbf16>
    %232 = vector.shape_cast %231 : vector<2x16x128xbf16> to vector<32x128xbf16>
    %c0_69 = arith.constant 0 : index
    %c0_70 = arith.constant 0 : index
    %233 = vector.load %arg15[%c0_69, %c0_70] : memref<128x128xbf16, #tpu.memory_space<vmem>>, vector<128x128xbf16>
    %cst_71 = arith.constant dense<0.000000e+00> : vector<32x128xf32>
    %234 = tpu.matmul %232, %233, %cst_71 {dimension_numbers = #tpu.dot_dimension_numbers<[1], [0], [0], [1], [0, 0, 1, 1], [], []>} : vector<32x128xbf16>, vector<128x128xbf16>, vector<32x128xf32> -> vector<32x128xf32>
    %c0_72 = arith.constant 0 : index
    %c0_73 = arith.constant 0 : index
    %235 = vector.load %arg16[%c0_72, %c0_73] : memref<1x128xf32, #tpu.memory_space<vmem>>, vector<1x128xf32>
    %236 = vector.broadcast %235 : vector<1x128xf32> to vector<32x128xf32>
    %237 = arith.addf %234, %236 : vector<32x128xf32>
    %238 = vector.shape_cast %237 : vector<32x128xf32> to vector<2x16x128xf32>
    %239 = arith.addf %238, %130 : vector<2x16x128xf32>
    %c0_74 = arith.constant 0 : index
    %c0_75 = arith.constant 0 : index
    %240 = vector.load %arg17[%c0_74, %c0_75] : memref<1x128xf32, #tpu.memory_space<vmem>>, vector<1x128xf32>
    %c0_76 = arith.constant 0 : index
    %c0_77 = arith.constant 0 : index
    %241 = vector.load %arg18[%c0_76, %c0_77] : memref<1x128xf32, #tpu.memory_space<vmem>>, vector<1x128xf32>
    %cst_78 = arith.constant dense<0.000000e+00> : vector<2x16xf32>
    %242 = vector.multi_reduction <add>, %239, %cst_78 [2] : vector<2x16x128xf32> to vector<2x16xf32>
    %243 = vector.shape_cast %242 : vector<2x16xf32> to vector<2x16x1xf32>
    %cst_79 = arith.constant 1.280000e+02 : f32
    %244 = vector.broadcast %cst_79 : f32 to vector<2x16x1xf32>
    %245 = arith.divf %243, %244 : vector<2x16x1xf32>
    %246 = vector.broadcast %245 : vector<2x16x1xf32> to vector<2x16x128xf32>
    %247 = arith.subf %239, %246 : vector<2x16x128xf32>
    %248 = arith.mulf %247, %247 : vector<2x16x128xf32>
    %cst_80 = arith.constant dense<0.000000e+00> : vector<2x16xf32>
    %249 = vector.multi_reduction <add>, %248, %cst_80 [2] : vector<2x16x128xf32> to vector<2x16xf32>
    %250 = vector.shape_cast %249 : vector<2x16xf32> to vector<2x16x1xf32>
    %cst_81 = arith.constant 1.280000e+02 : f32
    %251 = vector.broadcast %cst_81 : f32 to vector<2x16x1xf32>
    %252 = arith.divf %250, %251 : vector<2x16x1xf32>
    %253 = vector.broadcast %245 : vector<2x16x1xf32> to vector<2x16x128xf32>
    %254 = arith.subf %239, %253 : vector<2x16x128xf32>
    %cst_82 = arith.constant 9.99999974E-6 : f32
    %255 = vector.broadcast %cst_82 : f32 to vector<2x16x1xf32>
    %256 = arith.addf %252, %255 : vector<2x16x1xf32>
    %257 = math.rsqrt %256 : vector<2x16x1xf32>
    %258 = vector.broadcast %257 : vector<2x16x1xf32> to vector<2x16x128xf32>
    %259 = arith.mulf %254, %258 : vector<2x16x128xf32>
    %260 = vector.shape_cast %240 : vector<1x128xf32> to vector<1x1x128xf32>
    %261 = vector.broadcast %260 : vector<1x1x128xf32> to vector<2x16x128xf32>
    %262 = arith.mulf %259, %261 : vector<2x16x128xf32>
    %263 = vector.shape_cast %241 : vector<1x128xf32> to vector<1x1x128xf32>
    %264 = vector.broadcast %263 : vector<1x1x128xf32> to vector<2x16x128xf32>
    %265 = arith.addf %262, %264 : vector<2x16x128xf32>
    %266 = vector.shape_cast %265 : vector<2x16x128xf32> to vector<32x128xf32>
    %267 = arith.truncf %266 : vector<32x128xf32> to vector<32x128xbf16>
    %cst_83 = arith.constant 0.000000e+00 : f32
    %268 = vector.broadcast %cst_83 : f32 to vector<32x128xf32>
    %c0_84 = arith.constant 0 : index
    %c0_85 = arith.constant 0 : index
    %269 = vector.load %arg19[%c0_84, %c0_85] : memref<128x512xbf16, #tpu.memory_space<vmem>>, vector<128x512xbf16>
    %cst_86 = arith.constant dense<0.000000e+00> : vector<32x512xf32>
    %270 = tpu.matmul %267, %269, %cst_86 {dimension_numbers = #tpu.dot_dimension_numbers<[1], [0], [0], [1], [0, 0, 1, 1], [], []>} : vector<32x128xbf16>, vector<128x512xbf16>, vector<32x512xf32> -> vector<32x512xf32>
    %c0_87 = arith.constant 0 : index
    %c0_88 = arith.constant 0 : index
    %271 = vector.load %arg20[%c0_87, %c0_88] : memref<1x512xf32, #tpu.memory_space<vmem>>, vector<1x512xf32>
    %272 = vector.broadcast %271 : vector<1x512xf32> to vector<32x512xf32>
    %273 = arith.addf %270, %272 : vector<32x512xf32>
    %cst_89 = arith.constant 0.000000e+00 : f32
    %274 = vector.broadcast %cst_89 : f32 to vector<32x512xf32>
    %275 = arith.maximumf %273, %274 : vector<32x512xf32>
    %276 = arith.truncf %275 : vector<32x512xf32> to vector<32x512xbf16>
    %c0_90 = arith.constant 0 : index
    %c0_91 = arith.constant 0 : index
    %277 = vector.load %arg21[%c0_90, %c0_91] : memref<512x128xbf16, #tpu.memory_space<vmem>>, vector<512x128xbf16>
    %cst_92 = arith.constant dense<0.000000e+00> : vector<32x128xf32>
    %278 = tpu.matmul %276, %277, %cst_92 {dimension_numbers = #tpu.dot_dimension_numbers<[1], [0], [0], [1], [0, 0, 1, 1], [], []>} : vector<32x512xbf16>, vector<512x128xbf16>, vector<32x128xf32> -> vector<32x128xf32>
    %279 = arith.addf %268, %278 : vector<32x128xf32>
    %c0_93 = arith.constant 0 : index
    %c0_94 = arith.constant 0 : index
    %280 = vector.load %arg22[%c0_93, %c0_94] : memref<1x128xf32, #tpu.memory_space<vmem>>, vector<1x128xf32>
    %281 = vector.broadcast %280 : vector<1x128xf32> to vector<32x128xf32>
    %282 = arith.addf %279, %281 : vector<32x128xf32>
    %283 = vector.shape_cast %282 : vector<32x128xf32> to vector<2x16x128xf32>
    %284 = arith.addf %283, %265 : vector<2x16x128xf32>
    %c0_95 = arith.constant 0 : index
    %c0_96 = arith.constant 0 : index
    %285 = vector.load %arg23[%c0_95, %c0_96] : memref<1x128xf32, #tpu.memory_space<vmem>>, vector<1x128xf32>
    %c0_97 = arith.constant 0 : index
    %c0_98 = arith.constant 0 : index
    %286 = vector.load %arg24[%c0_97, %c0_98] : memref<1x128xf32, #tpu.memory_space<vmem>>, vector<1x128xf32>
    %cst_99 = arith.constant dense<0.000000e+00> : vector<2x16xf32>
    %287 = vector.multi_reduction <add>, %284, %cst_99 [2] : vector<2x16x128xf32> to vector<2x16xf32>
    %288 = vector.shape_cast %287 : vector<2x16xf32> to vector<2x16x1xf32>
    %cst_100 = arith.constant 1.280000e+02 : f32
    %289 = vector.broadcast %cst_100 : f32 to vector<2x16x1xf32>
    %290 = arith.divf %288, %289 : vector<2x16x1xf32>
    %291 = vector.broadcast %290 : vector<2x16x1xf32> to vector<2x16x128xf32>
    %292 = arith.subf %284, %291 : vector<2x16x128xf32>
    %293 = arith.mulf %292, %292 : vector<2x16x128xf32>
    %cst_101 = arith.constant dense<0.000000e+00> : vector<2x16xf32>
    %294 = vector.multi_reduction <add>, %293, %cst_101 [2] : vector<2x16x128xf32> to vector<2x16xf32>
    %295 = vector.shape_cast %294 : vector<2x16xf32> to vector<2x16x1xf32>
    %cst_102 = arith.constant 1.280000e+02 : f32
    %296 = vector.broadcast %cst_102 : f32 to vector<2x16x1xf32>
    %297 = arith.divf %295, %296 : vector<2x16x1xf32>
    %298 = vector.broadcast %290 : vector<2x16x1xf32> to vector<2x16x128xf32>
    %299 = arith.subf %284, %298 : vector<2x16x128xf32>
    %cst_103 = arith.constant 9.99999974E-6 : f32
    %300 = vector.broadcast %cst_103 : f32 to vector<2x16x1xf32>
    %301 = arith.addf %297, %300 : vector<2x16x1xf32>
    %302 = math.rsqrt %301 : vector<2x16x1xf32>
    %303 = vector.broadcast %302 : vector<2x16x1xf32> to vector<2x16x128xf32>
    %304 = arith.mulf %299, %303 : vector<2x16x128xf32>
    %305 = vector.shape_cast %285 : vector<1x128xf32> to vector<1x1x128xf32>
    %306 = vector.broadcast %305 : vector<1x1x128xf32> to vector<2x16x128xf32>
    %307 = arith.mulf %304, %306 : vector<2x16x128xf32>
    %308 = vector.shape_cast %286 : vector<1x128xf32> to vector<1x1x128xf32>
    %309 = vector.broadcast %308 : vector<1x1x128xf32> to vector<2x16x128xf32>
    %310 = arith.addf %307, %309 : vector<2x16x128xf32>
    %c0_104 = arith.constant 0 : index
    %c0_105 = arith.constant 0 : index
    %c0_106 = arith.constant 0 : index
    %311 = vector.load %arg25[%c0_104, %c0_105, %c0_106] : memref<2x16x128xf32, #tpu.memory_space<vmem>>, vector<2x16x128xf32>
    tpu.vector_store %arg25[%c0_104, %c0_105, %c0_106], %310 {strides = array<i32>} : memref<2x16x128xf32, #tpu.memory_space<vmem>>, vector<2x16x128xf32>,
    return
  }
  func.func @transform_0(%arg0: i32) -> (i32, i32, i32) {
    %c0_i32 = arith.constant 0 : i32
    %c0_i32_0 = arith.constant 0 : i32
    %c0_i32_1 = arith.constant 0 : i32
    return %arg0, %c0_i32, %c0_i32_0 : i32, i32, i32
  }
  func.func @transform_1(%arg0: i32) -> (i32, i32, i32) {
    %c0_i32 = arith.constant 0 : i32
    %c0_i32_0 = arith.constant 0 : i32
    %c0_i32_1 = arith.constant 0 : i32
    return %arg0, %c0_i32, %c0_i32_0 : i32, i32, i32
  }
  func.func @transform_2(%arg0: i32) -> (i32, i32) {
    %c0_i32 = arith.constant 0 : i32
    %c0_i32_0 = arith.constant 0 : i32
    %c0_i32_1 = arith.constant 0 : i32
    return %c0_i32, %c0_i32_0 : i32, i32
  }
  func.func @transform_3(%arg0: i32) -> (i32, i32) {
    %c0_i32 = arith.constant 0 : i32
    %c0_i32_0 = arith.constant 0 : i32
    %c0_i32_1 = arith.constant 0 : i32
    return %c0_i32, %c0_i32_0 : i32, i32
  }
  func.func @transform_4(%arg0: i32) -> (i32, i32) {
    %c0_i32 = arith.constant 0 : i32
    %c0_i32_0 = arith.constant 0 : i32
    %c0_i32_1 = arith.constant 0 : i32
    return %c0_i32, %c0_i32_0 : i32, i32
  }
  func.func @transform_5(%arg0: i32) -> (i32, i32) {
    %c0_i32 = arith.constant 0 : i32
    %c0_i32_0 = arith.constant 0 : i32
    %c0_i32_1 = arith.constant 0 : i32
    return %c0_i32, %c0_i32_0 : i32, i32
  }
  func.func @transform_6(%arg0: i32) -> (i32, i32) {
    %c0_i32 = arith.constant 0 : i32
    %c0_i32_0 = arith.constant 0 : i32
    %c0_i32_1 = arith.constant 0 : i32
    return %c0_i32, %c0_i32_0 : i32, i32
  }
  func.func @transform_7(%arg0: i32) -> (i32, i32) {
    %c0_i32 = arith.constant 0 : i32
    %c0_i32_0 = arith.constant 0 : i32
    %c0_i32_1 = arith.constant 0 : i32
    return %c0_i32, %c0_i32_0 : i32, i32
  }
  func.func @transform_8(%arg0: i32) -> (i32, i32) {
    %c0_i32 = arith.constant 0 : i32
    %c0_i32_0 = arith.constant 0 : i32
    %c0_i32_1 = arith.constant 0 : i32
    return %c0_i32, %c0_i32_0 : i32, i32
  }
  func.func @transform_9(%arg0: i32) -> (i32, i32) {
    %c0_i32 = arith.constant 0 : i32
    %c0_i32_0 = arith.constant 0 : i32
    %c0_i32_1 = arith.constant 0 : i32
    return %c0_i32, %c0_i32_0 : i32, i32
  }
  func.func @transform_10(%arg0: i32) -> (i32, i32) {
    %c0_i32 = arith.constant 0 : i32
    %c0_i32_0 = arith.constant 0 : i32
    %c0_i32_1 = arith.constant 0 : i32
    return %c0_i32, %c0_i32_0 : i32, i32
  }
  func.func @transform_11(%arg0: i32) -> (i32, i32) {
    %c0_i32 = arith.constant 0 : i32
    %c0_i32_0 = arith.constant 0 : i32
    %c0_i32_1 = arith.constant 0 : i32
    return %c0_i32, %c0_i32_0 : i32, i32
  }
  func.func @transform_12(%arg0: i32) -> (i32, i32) {
    %c0_i32 = arith.constant 0 : i32
    %c0_i32_0 = arith.constant 0 : i32
    %c0_i32_1 = arith.constant 0 : i32
    return %c0_i32, %c0_i32_0 : i32, i32
  }
  func.func @transform_13(%arg0: i32) -> (i32, i32) {
    %c0_i32 = arith.constant 0 : i32
    %c0_i32_0 = arith.constant 0 : i32
    %c0_i32_1 = arith.constant 0 : i32
    return %c0_i32, %c0_i32_0 : i32, i32
  }
  func.func @transform_14(%arg0: i32) -> (i32, i32) {
    %c0_i32 = arith.constant 0 : i32
    %c0_i32_0 = arith.constant 0 : i32
    %c0_i32_1 = arith.constant 0 : i32
    return %c0_i32, %c0_i32_0 : i32, i32
  }
  func.func @transform_15(%arg0: i32) -> (i32, i32) {
    %c0_i32 = arith.constant 0 : i32
    %c0_i32_0 = arith.constant 0 : i32
    %c0_i32_1 = arith.constant 0 : i32
    return %c0_i32, %c0_i32_0 : i32, i32
  }
  func.func @transform_16(%arg0: i32) -> (i32, i32) {
    %c0_i32 = arith.constant 0 : i32
    %c0_i32_0 = arith.constant 0 : i32
    %c0_i32_1 = arith.constant 0 : i32
    return %c0_i32, %c0_i32_0 : i32, i32
  }
  func.func @transform_17(%arg0: i32) -> (i32, i32) {
    %c0_i32 = arith.constant 0 : i32
    %c0_i32_0 = arith.constant 0 : i32
    %c0_i32_1 = arith.constant 0 : i32
    return %c0_i32, %c0_i32_0 : i32, i32
  }
  func.func @transform_18(%arg0: i32) -> (i32, i32) {
    %c0_i32 = arith.constant 0 : i32
    %c0_i32_0 = arith.constant 0 : i32
    %c0_i32_1 = arith.constant 0 : i32
    return %c0_i32, %c0_i32_0 : i32, i32
  }
  func.func @transform_19(%arg0: i32) -> (i32, i32) {
    %c0_i32 = arith.constant 0 : i32
    %c0_i32_0 = arith.constant 0 : i32
    %c0_i32_1 = arith.constant 0 : i32
    return %c0_i32, %c0_i32_0 : i32, i32
  }
  func.func @transform_20(%arg0: i32) -> (i32, i32) {
    %c0_i32 = arith.constant 0 : i32
    %c0_i32_0 = arith.constant 0 : i32
    %c0_i32_1 = arith.constant 0 : i32
    return %c0_i32, %c0_i32_0 : i32, i32
  }
  func.func @transform_21(%arg0: i32) -> (i32, i32) {
    %c0_i32 = arith.constant 0 : i32
    %c0_i32_0 = arith.constant 0 : i32
    %c0_i32_1 = arith.constant 0 : i32
    return %c0_i32, %c0_i32_0 : i32, i32
  }
  func.func @transform_22(%arg0: i32) -> (i32, i32) {
    %c0_i32 = arith.constant 0 : i32
    %c0_i32_0 = arith.constant 0 : i32
    %c0_i32_1 = arith.constant 0 : i32
    return %c0_i32, %c0_i32_0 : i32, i32
  }
  func.func @transform_23(%arg0: i32) -> (i32, i32) {
    %c0_i32 = arith.constant 0 : i32
    %c0_i32_0 = arith.constant 0 : i32
    %c0_i32_1 = arith.constant 0 : i32
    return %c0_i32, %c0_i32_0 : i32, i32
  }
  func.func @transform_24(%arg0: i32) -> (i32, i32, i32) {
    %c0_i32 = arith.constant 0 : i32
    %c0_i32_0 = arith.constant 0 : i32
    %c0_i32_1 = arith.constant 0 : i32
    return %arg0, %c0_i32, %c0_i32_0 : i32, i32, i32
  }
}

</mosaic_0001>

<bundles_post_ra>
// kernel: tpu_custom_call.1
= control target key start
LH: loop header
LB: loop body
LE: loop exit
PB: predicated region body
PF: predicated region fallthrough
CT: control target
= control target key end

     0   :  { %s7499_s0 = inlined_call_operand.hbm [shape: f32[4,16,128], index: 0, kind: input, shape index: {}]   ;;  %s7500_s1 = inlined_call_operand.hbm [shape: f32[4,16,128], index: 1, kind: input, shape index: {}]   ;;  %s7501_s2 = inlined_call_operand.hbm [shape: f32[16,16], index: 2, kind: input, shape index: {}]   ;;  %s7502_s3 = inlined_call_operand.hbm [shape: f32[16,16], index: 3, kind: input, shape index: {}]   ;;  %s7503_s4 = inlined_call_operand.hbm [shape: bf16[128,384], index: 4, kind: input, shape index: {}]   ;;  %s7504_s5 = inlined_call_operand.vmem [shape: f32[1,384], index: 5, kind: input, shape index: {}]   ;;  %s7505_s6 = inlined_call_operand.hbm [shape: bf16[128,128], index: 6, kind: input, shape index: {}]   ;;  %s7506_s7 = inlined_call_operand.vmem [shape: f32[1,128], index: 7, kind: input, shape index: {}]   ;;  %s7507_s8 = inlined_call_operand.vmem [shape: f32[1,128], index: 8, kind: input, shape index: {}]   ;;  %s7508_s9 = inlined_call_operand.vmem [shape: f32[1,128], index: 9, kind: input, shape index: {}]   ;;  %s7509_s10 = inlined_call_operand.hbm [shape: bf16[128,128], index: 10, kind: input, shape index: {}]   ;;  %s7510_s11 = inlined_call_operand.vmem [shape: f32[1,128], index: 11, kind: input, shape index: {}]   ;;  %s7511_s12 = inlined_call_operand.hbm [shape: bf16[128,256], index: 12, kind: input, shape index: {}]   ;;  %s7512_s13 = inlined_call_operand.vmem [shape: f32[1,256], index: 13, kind: input, shape index: {}]   ;;  %s7513_s14 = inlined_call_operand.hbm [shape: bf16[128,128], index: 14, kind: input, shape index: {}]   ;;  %s7514_s15 = inlined_call_operand.vmem [shape: f32[1,128], index: 15, kind: input, shape index: {}]   ;;  %s7515_s16 = inlined_call_operand.vmem [shape: f32[1,128], index: 16, kind: input, shape index: {}]   ;;  %s7516_s17 = inlined_call_operand.vmem [shape: f32[1,128], index: 17, kind: input, shape index: {}]   ;;  %s7517_s18 = inlined_call_operand.hbm [shape: bf16[128,512], index: 18, kind: input, shape index: {}]   ;;  %s7518_s19 = inlined_call_operand.vmem [shape: f32[1,512], index: 19, kind: input, shape index: {}]   ;;  %s7519_s20 = inlined_call_operand.hbm [shape: bf16[512,128], index: 20, kind: input, shape index: {}]   ;;  %s7520_s21 = inlined_call_operand.vmem [shape: f32[1,128], index: 21, kind: input, shape index: {}]   ;;  %s7521_s22 = inlined_call_operand.vmem [shape: f32[1,128], index: 22, kind: input, shape index: {}]   ;;  %s7522_s23 = inlined_call_operand.vmem [shape: f32[1,128], index: 23, kind: input, shape index: {}]   ;;  %s7523_s24 = inlined_call_operand.hbm [shape: f32[4,16,128], index: 24, kind: output, shape index: {}]  }
   0x1   :  { %7545 = sst [smem:[#allocation35_spill]] %s7499_s0 }
   0x2   :  { %7546 = sst [smem:[#allocation36_spill]] %s7500_s1 }
   0x3   :  { %7547 = sst [smem:[#allocation37_spill]] %s7501_s2 }
   0x4   :  { %7548 = sst [smem:[#allocation38_spill]] %s7502_s3 }
   0x5   :  { %7549 = sst [smem:[#allocation39_spill]] %s7503_s4 }
   0x6   :  { %7550 = sst [smem:[#allocation40_spill]] %s7504_s5 }
   0x7   :  { %7551 = sst [smem:[#allocation41_spill]] %s7505_s6 }
   0x8   :  { %7552 = sst [smem:[#allocation42_spill]] %s7506_s7 }
   0x9   :  { %7553 = sst [smem:[#allocation43_spill]] %s7507_s8 }
   0xa   :  { %7554 = sst [smem:[#allocation44_spill]] %s7509_s10 }
   0xb   :  { %7555 = sst [smem:[#allocation45_spill]] %s7511_s12 }
   0xc   :  { %7556 = sst [smem:[#allocation46_spill]] %s7513_s14 }
   0xd   :  { %7557 = sst [smem:[#allocation47_spill]] %s7517_s18 }
   0xe   :  { %7558 = sst [smem:[#allocation48_spill]] %s7518_s19 }
   0xf   :  { %7559 = sst [smem:[#allocation49_spill]] %s7519_s20 }
  0x10   :  { %7560 = sst [smem:[#allocation50_spill]] %s7520_s21 }
  0x11   :  { %7561 = sst [smem:[#allocation51_spill]] %s7521_s22 }
  0x12   :  { %7562 = sst [smem:[#allocation52_spill]] %s7522_s23 }
  0x13   :  { %7563 = sst [smem:[#allocation53_spill]] %s7523_s24 }
  0x14   :  { %29 = vsyncpa [#allocation3], 0 }
  0x15   :  { %31 = vsyncpa [#allocation3 + $0x1], 0 }
  0x16   :  { %32 = vsyncpa [#allocation6], 0 }
  0x17   :  { %34 = vsyncpa [#allocation6 + $0x1], 0 }
  0x18   :  { %35 = vsyncpa [#allocation9], 0 }
  0x19   :  { %36 = vsyncpa [#allocation12], 0 }
  0x1a   :  { %37 = vsyncpa [#allocation15], 0 }
  0x1b   :  { %38 = vsyncpa [#allocation18], 0 }
  0x1c   :  { %39 = vsyncpa [#allocation4], 0 }
  0x1d   :  { %41 = vsyncpa [#allocation4 + $0x1], 0  ;;  %s6542_s5 = smov 0   ;;  %s6544_s26 = smov 0  }
  0x1e   :  { %s6546_s27 = smov 0   ;;  %s6548_s28 = smov 0  }
  0x1f LB: > { %7564 = sst [smem:[#allocation29_spill]] %s6375_s5  ;;  %s6389_s6 = smov [#allocation7]   ;;  %s6387_s28 = sphi %s6548_s28, %s7617_s28   ;;  %s6383_s27 = sphi %s6546_s27, %s7619_s27   ;;  %s6379_s26 = sphi %s6544_s26, %s7621_s26   ;;  %s6375_s5 = sphi %s6542_s5, %s7620_s5  }
  0x20   : > { %7565 = sst [smem:[#allocation30_spill]] %s6383_s27  ;;  %s604_s2 = sshll.u32 %s6389_s6, 4  ;;  %s605_s2 = int_to_ptr.vmem [resolvable:$true] %s604_s2 }
  0x21   : > { %s6563_s29 = sadd.s32 4294967295, %s6387_s28   ;;  %p4889_p0 = scmp.ge.s32.totalorder %s6387_s28, 1 }
  0x22   : > { %p7542_p1 = scmp.eq.s32.totalorder %s6563_s29, 0  ;;  %p592_p2 = scmp.lt.s32.totalorder %s6387_s28, 3 }
  0x23   : > { %s6390_s7 = smov [#allocation8]   ;;  %s6391_s25 = smov [#allocation11]  }
  0x24   : > { %p6568_p3 = pnand %p4889_p0, %p592_p2  ;;  %s617_s30 = sshll.u32 %s6390_s7, 4  ;;  %s6581_s30 = int_to_ptr.vmem [resolvable:$true] %s617_s30 }
  0x25   : > { %s646_s8 = sshll.u32 %s6391_s25, 4  ;;  %s6020_s1 = scalar_lea.vmem %s605_s2, 256  ;;  %s6583_s8 = int_to_ptr.vmem [resolvable:$true] %s646_s8 }
  0x26   : > { %p5577_p5 = pneg %p6568_p3  ;;  %p6021_p8 = scmp.ne.s32.totalorder %s605_s2, %s6020_s1 }
  0x27   : > { %p6028_p11 = scmp.lt.s32.totalorder %s605_s2, %s605_s2  ;;  %p6029_p12 = scmp.lt.s32.totalorder %s6020_s1, %s6020_s1 }
  0x28   : > { %p6577_p6 = pnand %p5577_p5, %p7542_p1 }
  0x29   : > { %p6030_p13 = por %p6029_p12, %p6028_p11 }
  0x2a   : > { %p6587_p7 = pneg %p6577_p6 }
  0x2c   : > { %p6023_p9 = pnand %p6021_p8, %p6587_p7 }
  0x2e   : > { %p6024_p10 = pneg %p6023_p9 }
  0x30   : > { %p6031_p0 = pnand %p6030_p13, %p6024_p10 }
  0x32   : > { %6034 = shalt.err (!%p6031_p0)
}
  0x33   : > { %s7527_s6 = smov 128   ;;  %s7529_s7 = smov 8  }
  0x34   : > { %s7569_s23 = sld [smem:[#allocation37_spill]]  ;;  %s6046_s22 = scalar_lea.vmem %s6581_s30, 256 }
  0x35   : > { %p6047_p2 = scmp.ne.s32.totalorder %s6581_s30, %s6046_s22  ;;  %p6054_p9 = scmp.lt.s32.totalorder %s6581_s30, %s6581_s30 }
  0x36   : > { %p6055_p10 = scmp.lt.s32.totalorder %s6046_s22, %s6046_s22 }
  0x37   : > { %p6049_p5 = pnand %p6047_p2, %p6587_p7 }
  0x38   : > { %p6056_p11 = por %p6055_p10, %p6054_p9 }
  0x39   : > { %p6050_p8 = pneg %p6049_p5 }
  0x3a   : > { %5580 = dma.hbm_to_vmem [thread:$0]  (!%p6577_p6), %s7569_s23, 256, %s605_s2, [#allocation6], %s7527_s6, %s7527_s6, %s7529_s7  }
  0x3b   : > { %p6057_p12 = pnand %p6056_p11, %p6050_p8 }
  0x3d   : > { %6060 = shalt.err (!%p6057_p12)
}
  0x3e   : > { %s7570_s23 = sld [smem:[#allocation38_spill]]  ;;  %s6072_s2 = scalar_lea.vmem %s6583_s8, 1024 }
  0x3f   : > { %p6073_p13 = scmp.ne.s32.totalorder %s6583_s8, %s6072_s2  ;;  %p6080_p5 = scmp.lt.s32.totalorder %s6583_s8, %s6583_s8 }
  0x40   : > { %p6081_p8 = scmp.lt.s32.totalorder %s6072_s2, %s6072_s2 }
  0x41   : > { %p6075_p0 = pnand %p6073_p13, %p6587_p7 }
  0x42   : > { %p6082_p9 = por %p6081_p8, %p6080_p5 }
  0x43   : > { %p6076_p2 = pneg %p6075_p0 }
  0x44   : > { %5583 = dma.hbm_to_vmem [thread:$0]  (!%p6577_p6), %s7570_s23, 256, %s6581_s30, [#allocation9], %s7527_s6, %s7527_s6, %s7529_s7  }
  0x45   : > { %p6083_p10 = pnand %p6082_p9, %p6076_p2 }
  0x47   : > { %6086 = shalt.err (!%p6083_p10)
}
  0x48   : > { %s7531_s22 = smov 64   ;;  %s7533_s25 = smov 4  }
  0x49   : > { %s7571_s24 = sld [smem:[#allocation41_spill]]  ;;  %s6396_s23 = smov [#allocation14]  }
  0x4a   : > { %s684_s6 = sshll.u32 %s6396_s23, 4  ;;  %s6397_s2 = smov [#allocation17]   ;;  %s685_s6 = int_to_ptr.vmem [resolvable:$true] %s684_s6 }
  0x4b   : > { %s722_s7 = sshll.u32 %s6397_s2, 4  ;;  %s6098_s21 = scalar_lea.vmem %s685_s6, 2048  ;;  %s723_s7 = int_to_ptr.vmem [resolvable:$true] %s722_s7 }
  0x4c   : > { %p6099_p11 = scmp.ne.s32.totalorder %s685_s6, %s6098_s21  ;;  %p6106_p0 = scmp.lt.s32.totalorder %s685_s6, %s685_s6 }
  0x4d   : > { %p6107_p2 = scmp.lt.s32.totalorder %s6098_s21, %s6098_s21 }
  0x4e   : > { %p6101_p12 = pnand %p6099_p11, %p6587_p7 }
  0x4f   : > { %5589 = dma.hbm_to_vmem [thread:$0]  (!%p6577_p6), %s7571_s24, 1024, %s6583_s8, [#allocation12], %s7531_s22, %s7531_s22, %s7533_s25  }
  0x50   : > { %p6102_p13 = pneg %p6101_p12  ;;  %p6108_p5 = por %p6107_p2, %p6106_p0 }
  0x52   : > { %p6109_p8 = pnand %p6108_p5, %p6102_p13 }
  0x54   : > { %6112 = shalt.err (!%p6109_p8)
}
  0x55   : > { %s7572_s19 = smov 8   ;;  %s7573_s30 = smov 128  }
  0x56   : > { %s7574_s12 = sld [smem:[#allocation45_spill]]  ;;  %s6124_s24 = scalar_lea.vmem %s723_s7, 4096 }
  0x57   : > { %p6125_p9 = scmp.ne.s32.totalorder %s723_s7, %s6124_s24  ;;  %p6132_p12 = scmp.lt.s32.totalorder %s723_s7, %s723_s7 }
  0x58   : > { %p6133_p0 = scmp.lt.s32.totalorder %s6124_s24, %s6124_s24 }
  0x59   : > { %p6127_p10 = pnand %p6125_p9, %p6587_p7 }
  0x5a   : > { %p6134_p13 = por %p6133_p0, %p6132_p12 }
  0x5b   : > { %p6128_p11 = pneg %p6127_p10 }
  0x5c   : > { %5595 = dma.hbm_to_vmem [thread:$0]  (!%p6577_p6), %s7574_s12, 2048, %s685_s6, [#allocation15], %s7573_s30, %s7573_s30, %s7572_s19  }
  0x5d   : > { %p6135_p2 = pnand %p6134_p13, %p6128_p11 }
  0x5f   : > { %6138 = shalt.err (!%p6135_p2)
}
  0x60   : > { %s6398_s21 = smov 256   ;;  %s6399_s23 = smov 16  }
  0x61   : > { %s7575_s18 = sld [smem:[#allocation47_spill]]  ;;  %s6400_s6 = smov [#allocation10]  }
  0x62   : > { %s630_s1 = sshll.u32 %s6400_s6, 4  ;;  %s631_s1 = int_to_ptr.vmem [resolvable:$true] %s630_s1 }
  0x63   : > { %s6150_s22 = scalar_lea.vmem %s631_s1, 3072  ;;  %p6158_p10 = scmp.lt.s32.totalorder %s631_s1, %s631_s1 }
  0x64   : > { %p6151_p5 = scmp.ne.s32.totalorder %s631_s1, %s6150_s22  ;;  %p6159_p11 = scmp.lt.s32.totalorder %s6150_s22, %s6150_s22 }
  0x66   : > { %p6153_p8 = pnand %p6151_p5, %p6587_p7  ;;  %p6160_p12 = por %p6159_p11, %p6158_p10 }
  0x67   : > { %5601 = dma.hbm_to_vmem [thread:$0]  (!%p6577_p6), %s7575_s18, 4096, %s723_s7, [#allocation18], %s6398_s21, %s6398_s21, %s6399_s23  }
  0x68   : > { %p6154_p9 = pneg %p6153_p8 }
  0x6a   : > { %p6161_p0 = pnand %p6160_p12, %p6154_p9 }
  0x6c   : > { %6164 = shalt.err (!%p6161_p0)
}
  0x6d   : > { %s6401_s24 = smov 192   ;;  %s6402_s25 = smov 12  }
  0x6e   : > { %s7576_s21 = sld [smem:[#allocation39_spill]]  ;;  %s6403_s23 = smov [#allocation13]  }
  0x6f   : > { %s668_s8 = sshll.u32 %s6403_s23, 4  ;;  %s6404_s6 = smov [#allocation16]   ;;  %s669_s8 = int_to_ptr.vmem [resolvable:$true] %s668_s8 }
  0x70   : > { %s700_s12 = sshll.u32 %s6404_s6, 4  ;;  %s6176_s18 = scalar_lea.vmem %s669_s8, 1024  ;;  %s701_s12 = int_to_ptr.vmem [resolvable:$true] %s700_s12 }
  0x71   : > { %p6177_p13 = scmp.ne.s32.totalorder %s669_s8, %s6176_s18  ;;  %p6184_p8 = scmp.lt.s32.totalorder %s669_s8, %s669_s8 }
  0x72   : > { %p6185_p9 = scmp.lt.s32.totalorder %s6176_s18, %s6176_s18 }
  0x73   : > { %p6179_p2 = pnand %p6177_p13, %p6587_p7 }
  0x74   : > { %5586 = dma.hbm_to_vmem [thread:$0]  (!%p6577_p6), %s7576_s21, 3072, %s631_s1, [#allocation9], %s6401_s24, %s6401_s24, %s6402_s25  }
  0x75   : > { %p6180_p5 = pneg %p6179_p2  ;;  %p6186_p10 = por %p6185_p9, %p6184_p8 }
  0x77   : > { %p6187_p11 = pnand %p6186_p10, %p6180_p5 }
  0x79   : > { %6190 = shalt.err (!%p6187_p11)
}
  0x7a   : > { %s7577_s22 = smov 4   ;;  %s7578_s25 = smov 64  }
  0x7b   : > { %s7579_s10 = sld [smem:[#allocation44_spill]]  ;;  %s6202_s2 = scalar_lea.vmem %s701_s12, 1024 }
  0x7c   : > { %p6203_p12 = scmp.ne.s32.totalorder %s701_s12, %s6202_s2  ;;  %p6210_p2 = scmp.lt.s32.totalorder %s701_s12, %s701_s12 }
  0x7d   : > { %p6211_p4 = scmp.lt.s32.totalorder %s6202_s2, %s6202_s2 }
  0x7e   : > { %p6205_p0 = pnand %p6203_p12, %p6587_p7 }
  0x7f   : > { %p6212_p8 = por %p6211_p4, %p6210_p2 }
  0x80   : > { %p6206_p13 = pneg %p6205_p0 }
  0x81   : > { %5592 = dma.hbm_to_vmem [thread:$0]  (!%p6577_p6), %s7579_s10, 1024, %s669_s8, [#allocation12], %s7578_s25, %s7578_s25, %s7577_s22  }
  0x82   : > { %p6213_p5 = pnand %p6212_p8, %p6206_p13 }
  0x84   : > { %6216 = shalt.err (!%p6213_p5)
}
  0x85   : > { %s7580_s14 = sld [smem:[#allocation46_spill]]  ;;  %s6405_s21 = smov [#allocation19]  }
  0x86   : > { %s738_s23 = sshll.u32 %s6405_s21, 4  ;;  %s739_s23 = int_to_ptr.vmem [resolvable:$true] %s738_s23 }
  0x87   : > { %s6228_s8 = scalar_lea.vmem %s739_s23, 4096  ;;  %p6236_p11 = scmp.lt.s32.totalorder %s739_s23, %s739_s23 }
  0x88   : > { %p6229_p9 = scmp.ne.s32.totalorder %s739_s23, %s6228_s8  ;;  %p6237_p12 = scmp.lt.s32.totalorder %s6228_s8, %s6228_s8 }
  0x8a   : > { %p6231_p10 = pnand %p6229_p9, %p6587_p7  ;;  %p6238_p0 = por %p6237_p12, %p6236_p11 }
  0x8b   : > { %5598 = dma.hbm_to_vmem [thread:$0]  (!%p6577_p6), %s7580_s14, 1024, %s701_s12, [#allocation15], %s7578_s25, %s7578_s25, %s7577_s22  }
  0x8c   : > { %p6232_p4 = pneg %p6231_p10 }
  0x8e   : > { %p6239_p13 = pnand %p6238_p0, %p6232_p4 }
  0x90   : > { %6242 = shalt.err (!%p6239_p13)
}
  0x91   : > { %s7581_s20 = sld [smem:[#allocation49_spill]]  ;;  %s4888_s3 = sadd.s32 4294967294, %s6387_s28  }
  0x92   : > { %s6687_s4 = sadd.s32 1, %s6387_s28   ;;  %s54_s1 = sadd.s32 1, %s6383_s27 }
  0x93   : > { %7582 = sst [smem:[#allocation31_spill]] %s6687_s4  ;;  %s51_s24 = ssub.s32 %s6387_s28, %s6687_s4 }
  0x94   : > { %p61_p7 = scmp.ne.s32.totalorder %s6383_s27, %s6379_s26  ;;  %p52_p2 = scmp.eq.s32.totalorder %s51_s24, 0 }
  0x95   : > { %p62_p8 = scmp.eq.s32.totalorder %s6387_s28, 0  ;;  %p67_p5 = scmp.ne.s32.totalorder %s6379_s26, %s6375_s5 }
  0x96   : > { %p579_p9 = scmp.eq.s32.totalorder %s6563_s29, 1  ;;  %p585_p11 = scmp.eq.s32.totalorder %s4888_s3, 1 }
  0x97   : > { %5604 = dma.hbm_to_vmem [thread:$0]  (!%p6577_p6), %s7581_s20, 4096, %s739_s23, [#allocation18], %s7578_s25, %s7578_s25, %s7577_s22  }
  0x98   : > { %s6699_s2 = scalar_select %p52_p2, %s6383_s27, %s54_s1  }
  0x99   : > { %p63_p10 = por %p62_p8, %p61_p7  ;;  %p6703_p4 = por %p7542_p1, %p67_p5 }
  0x9a   : > { %7583 = sst [smem:[#allocation32_spill]] %s6699_s2  ;;  %p6707_p6 = por %p579_p9, %p61_p7 }
  0x9b   : > { %s7584_s18 = scalar_select %p6703_p4, 1, 0 }
  0x9c   : > { %s7585_s22 = scalar_select %p6707_p6, 1, 0 }
  0x9d   : > { %p5625_p12 = scmp.lt.s32.totalorder %s6387_s28, 2  ;;  %s761_s25 = sand.u32 1, %s6383_s27  }
  0x9e   : > { %7586 = sst [smem:[#allocation33_spill]] %s7585_s22  ;;  %p6713_p0 = por %p585_p11, %p67_p5 }
  0x9f   : > { %s6717_s21 = sshll.u32 %s761_s25, 5  ;;  %s5098_s23 = sshll.u32 %s6387_s28, 9 }
  0xa0   : > { %s7587_s7 = scalar_select %p6713_p0, 1, 0 }
  0xa1   : > { %s7589_s12 = sld [smem:[#allocation35_spill]]  ;;  %s765_s24 = scalar_lea.vmem [#allocation2], %s6717_s21 }
  0xa2   : > { %7588 = sst [smem:[#allocation34_spill]] %s7587_s7  ;;  %s773_s3 = sshll.u32 %s765_s24, 4  ;;  %s6730_s3 = int_to_ptr.vmem [resolvable:$true] %s773_s3 }
  0xa3   : > { %p6726_p13 = pnand %p5625_p12, %p63_p10  ;;  %s7591_s2 = sld [smem:[#allocation36_spill]] }
  0xa4   : > { %s6737_s8 = scalar_lea.sflag [#allocation3], %s761_s25 }
  0xa5   : > { %p6245_p2 = pneg %p6726_p13 }
  0xa7   : > { %s6723_s1 = scalar_lea.hbm %s7589_s12, %s5098_s23  ;;  %s6248_s7 = scalar_lea.hbm %s7589_s12, 1024 }
  0xa8   : > { %s6243_s6 = scalar_lea.hbm %s6723_s1, 512  ;;  %p6249_p9 = scmp.lt.s32.totalorder %s6723_s1, %s7589_s12 }
  0xa9   : > { %s6735_s27 = scalar_lea.hbm %s7591_s2, %s5098_s23  ;;  %p6244_p7 = scmp.ne.s32.totalorder %s6723_s1, %s6243_s6 }
  0xaa   : > { %p6250_p10 = scmp.lt.s32.totalorder %s6248_s7, %s6243_s6 }
  0xab   : > { %p6246_p8 = pnand %p6245_p2, %p6244_p7 }
  0xac   : > { %p6251_p11 = por %p6250_p10, %p6249_p9 }
  0xad   : > { %p6247_p5 = pneg %p6246_p8 }
  0xaf   : > { %p6252_p12 = pnand %p6251_p11, %p6247_p5 }
  0xb1   : > { %6255 = shalt.err (!%p6252_p12)
}
  0xb2   : > { %s6256_s14 = scalar_lea.vmem %s6730_s3, 512  ;;  %s6406_s20 = smov [#allocation2]  }
  0xb3   : > { %p6257_p1 = scmp.ne.s32.totalorder %s6730_s3, %s6256_s14  ;;  %s6261_s4 = sshll.u32 %s6406_s20, 4  ;;  %s6262_s4 = int_to_ptr.vmem [resolvable:$false] %s6261_s4 }
  0xb4   : > { %s6263_s25 = scalar_lea.vmem %s6262_s4, 1024  ;;  %p6264_p0 = scmp.lt.s32.totalorder %s6730_s3, %s6262_s4 }
  0xb5   : > { %p6259_p7 = pnand %p6257_p1, %p6245_p2  ;;  %p6265_p6 = scmp.lt.s32.totalorder %s6263_s25, %s6256_s14 }
  0xb7   : > { %p6260_p8 = pneg %p6259_p7  ;;  %p6266_p4 = por %p6265_p6, %p6264_p0 }
  0xb9   : > { %p6267_p9 = pnand %p6266_p4, %p6260_p8 }
  0xbb   : > { %6270 = shalt.err (!%p6267_p9)
}
  0xbc   : > { %5608 = dma.hbm_to_vmem [thread:$0]  (!%p6726_p13), %s6723_s1, 512, %s6730_s3, %s6737_s8, %s7573_s30, %s7573_s30, %s7572_s19  }
  0xbd   : > { %s787_s5 = scalar_lea.vmem [#allocation5], %s6717_s21  ;;  %s783_s7 = sand.u32 1, %s6387_s28  }
  0xbe   : > { %s795_s22 = sshll.u32 %s787_s5, 4  ;;  %s784_s23 = scalar_lea.sflag [#allocation6], %s783_s7  ;;  %s6769_s22 = int_to_ptr.vmem [resolvable:$true] %s795_s22 }
  0xbf   : > { %s6271_s6 = scalar_lea.hbm %s6735_s27, 512  ;;  %s6276_s20 = scalar_lea.hbm %s7591_s2, 1024 }
  0xc0   : > { %p6272_p1 = scmp.ne.s32.totalorder %s6735_s27, %s6271_s6  ;;  %p6277_p0 = scmp.lt.s32.totalorder %s6735_s27, %s7591_s2 }
  0xc1   : > { %p6278_p5 = scmp.lt.s32.totalorder %s6276_s20, %s6271_s6 }
  0xc2   : > { %p6274_p4 = pnand %p6272_p1, %p6245_p2 }
  0xc3   : > { %p6279_p10 = por %p6278_p5, %p6277_p0 }
  0xc4   : > { %p6275_p6 = pneg %p6274_p4 }
  0xc6   : > { %p6280_p11 = pnand %p6279_p10, %p6275_p6 }
  0xc8   : > { %6283 = shalt.err (!%p6280_p11)
}
  0xc9   : > { %s6284_s21 = scalar_lea.vmem %s6769_s22, 512  ;;  %s6407_s1 = smov [#allocation5]  }
  0xca   : > { %p6285_p12 = scmp.ne.s32.totalorder %s6769_s22, %s6284_s21  ;;  %s6289_s3 = sshll.u32 %s6407_s1, 4  ;;  %s6290_s3 = int_to_ptr.vmem [resolvable:$false] %s6289_s3 }
  0xcb   : > { %s6291_s8 = scalar_lea.vmem %s6290_s3, 1024  ;;  %p6292_p9 = scmp.lt.s32.totalorder %s6769_s22, %s6290_s3 }
  0xcc   : > { %p6287_p7 = pnand %p6285_p12, %p6245_p2  ;;  %p6293_p1 = scmp.lt.s32.totalorder %s6291_s8, %s6284_s21 }
  0xce   : > { %p6288_p8 = pneg %p6287_p7  ;;  %p6294_p4 = por %p6293_p1, %p6292_p9 }
  0xd0   : > { %p6295_p0 = pnand %p6294_p4, %p6288_p8 }
  0xd2   : > { %6298 = shalt.err (!%p6295_p0)
}
  0xd3   : > { %5611 = dma.hbm_to_vmem [thread:$0]  (!%p6726_p13), %s6735_s27, 512, %s6769_s22, %s784_s23, %s7573_s30, %s7573_s30, %s7572_s19  }
  0xd4   : > { %807 = sbr.rel (%p6568_p3) target bundleno = 7600 (0x1db0), region = 116  ;;  %s6799_s5 = sand.u32 (!%p6568_p3), 1, %s6379_s26  }
  0xd5   : > { %s6802_s7 = sshll.u32 (!%p6568_p3), %s6799_s5, 5  ;;  %s810_s6 = scalar_lea.sflag (!%p6568_p3), [#allocation3], %s6799_s5 }
  0xd6   : > { %s6806_s10 = scalar_lea.vmem (!%p6568_p3), [#allocation2], %s6802_s7  ;;  %p7592_p2 = scmp.ne.s32.totalorder (!%p6568_p3), %s7584_s18, 0 }
  0xd9   : > { %6342 = dma.done.wait (%p7592_p2), %s810_s6, 512  }
  0xda   : > { %6344 = vsyncadd (%p7592_p2), %s810_s6, 4294966784  ;;  %s818_s19 = sand.u32 1, %s6563_s29   ;;  %s6814_s0 = scalar_lea.vmem [#allocation5], %s6802_s7 }
  0xdb   : > { %s819_s27 = scalar_lea.sflag [#allocation6], %s818_s19 }
  0xdc   : > { %6346 = dma.done.wait (%p7592_p2), %s819_s27, 512  }
  0xdd   : > { %6348 = vsyncadd (%p7592_p2), %s819_s27, 4294966784  ;;  %p7593_p3 = scmp.eq.s32.totalorder %s6563_s29, 0 }
  0xdf   : > { %6350 = dma.done.wait (%p7593_p3), [#allocation6], 256   ;;  %p7594_p13 = pmov %p7593_p3 }
  0xe0   : > { %p7595_p6 = pmov %p7593_p3 }
  0xe1   : > { %6352 = vsyncadd (%p7594_p13), [#allocation6], 4294967040 }
  0xe2   : > { %6354 = dma.done.wait (%p7595_p6), [#allocation9], 3328   ;;  %p7596_p5 = pmov %p7593_p3 }
  0xe3   : > { %p7597_p10 = pmov %p7593_p3 }
  0xe4   : > { %6356 = vsyncadd (%p7596_p5), [#allocation9], 4294963968 }
  0xe5   : > { %6358 = dma.done.wait (%p7597_p10), [#allocation12], 2048   ;;  %p7598_p11 = pmov %p7593_p3 }
  0xe6   : > { %p7599_p12 = pmov %p7593_p3 }
  0xe7   : > { %6360 = vsyncadd (%p7598_p11), [#allocation12], 4294965248 }
  0xe8   : > { %6362 = dma.done.wait (%p7599_p12), [#allocation15], 3072   ;;  %p7600_p7 = pmov %p7593_p3 }
  0xe9   : > { %p7601_p8 = pmov %p7593_p3 }
  0xea   : > { %6364 = vsyncadd (%p7600_p7), [#allocation15], 4294964224 }
  0xeb   : > { %6366 = dma.done.wait (%p7601_p8), [#allocation18], 8192   ;;  %p7602_p9 = pmov %p7593_p3 }
  0xec   : > { %v6408_v0 = vmov 0   ;;  %v5693_v1 = vld [vmem:[#allocation10 + $0xac] ss:$12 sps:$4 sm:$0xff]   ;;  %v5695_v2 = vld [vmem:[#allocation10 + $0xa8] ss:$12 sps:$4 sm:$0xff]   ;;  %v932_v8 = vld [vmem:[%s6806_s10] sm:$0xff]  ;;  %v976_v32 = vlaneseq }
  0xed   : > { %6368 = vsyncadd (%p7602_p9), [#allocation18], 4294959104  ;;  %1151 = vmatprep.mubr.bf16.mxu0 %v6408_v0  ;;  %1119 = vmatprep.subr.bf16.mxu0 %v5693_v1  ;;  %v5696_v3 = vld [vmem:[#allocation10 + $0x94] ss:$12 sps:$4 sm:$0xff]   ;;  %v5698_v4 = vld [vmem:[#allocation10 + $0x90] ss:$12 sps:$4 sm:$0xff]  }
  0xee   : > { %1120 = vmatpush1.bf16.msra.mxu0 %v5695_v2  ;;  %v5699_v5 = vld [vmem:[#allocation10 + $0x7c] ss:$12 sps:$4 sm:$0xff]   ;;  %v5701_v6 = vld [vmem:[#allocation10 + $0x78] ss:$12 sps:$4 sm:$0xff]   ;;  %v5704_v9 = vld [vmem:[#allocation10 + $0x60] ss:$12 sps:$4 sm:$0xff]  }
  0xef   : > { %1121 = vmatprep.subr.bf16.mxu0 %v5696_v3  ;;  %v5702_v7 = vld [vmem:[#allocation10 + $0x64] ss:$12 sps:$4 sm:$0xff]   ;;  %v5705_v10 = vld [vmem:[#allocation10 + $0x4c] ss:$12 sps:$4 sm:$0xff]   ;;  %v5707_v15 = vld [vmem:[#allocation10 + $0x48] ss:$12 sps:$4 sm:$0xff]  }
  0xf0   : > { %v933_v11 = vld [vmem:[%s6806_s10 + $0x8] sm:$0xff]  ;;  %v5717_v13 = vld [vmem:[#allocation10 + $0xb0] ss:$12 sps:$4 sm:$0xff]   ;;  %v5718_v14 = vld [vmem:[#allocation10 + $0x98] ss:$12 sps:$4 sm:$0xff]   ;;  %v6409_v31 = vmov 0.0  }
  0xf1   : > { %v940_v12 = vpack.c.bf16 %v933_v11, %v932_v8  ;;  %5263 = vmatprep.subr.bf16.mxu1 %v5717_v13  ;;  %v5708_v16 = vld [vmem:[#allocation10 + $0x34] ss:$12 sps:$4 sm:$0xff]   ;;  %v5710_v18 = vld [vmem:[#allocation10 + $0x30] ss:$12 sps:$4 sm:$0xff]   ;;  %v5713_v21 = vld [vmem:[#allocation10 + $0x18] ss:$12 sps:$4 sm:$0xff]  }
  0xf2   : > { %1122 = vmatpush1.bf16.msra.mxu0 %v5698_v4  ;;  %5264 = vmatpush3.bf16.msra.mxu1 %v5717_v13  ;;  %v5719_v17 = vld [vmem:[#allocation10 + $0x80] ss:$12 sps:$4 sm:$0xff]   ;;  %v5711_v19 = vld [vmem:[#allocation10 + $0x1c] ss:$12 sps:$4 sm:$0xff]   ;;  %v5714_v22 = vld [vmem:[#allocation10 + $0x4] ss:$12 sps:$4 sm:$0xff]  }
  0xf3   : > { %1123 = vmatprep.subr.bf16.mxu0 %v5699_v5  ;;  %5279 = vmatprep.mubr.bf16.mxu1 %v940_v12  ;;  %v5720_v20 = vld [vmem:[#allocation10 + $0x68] ss:$12 sps:$4 sm:$0xff]   ;;  %v5721_v23 = vld [vmem:[#allocation10 + $0x50] ss:$12 sps:$4 sm:$0xff]   ;;  %v5716_v24 = vld [vmem:[#allocation10] ss:$12 sps:$4 sm:$0xff]  }
  0xf4   : > { %5265 = vmatprep.subr.bf16.mxu1 %v5718_v14  ;;  %v5722_v25 = vld [vmem:[#allocation10 + $0x38] ss:$12 sps:$4 sm:$0xff]   ;;  %v5723_v26 = vld [vmem:[#allocation10 + $0x20] ss:$12 sps:$4 sm:$0xff]   ;;  %v934_v27 = vld [vmem:[%s6806_s10 + $0x10] sm:$0xff]  ;;  %vm6410_vm0 = vmmov 0  }
  0xf5   : > { %v935_v28 = vld [vmem:[%s6806_s10 + $0x18] sm:$0xff]  ;;  %v5724_v30 = vld [vmem:[#allocation10 + $0x8] ss:$12 sps:$4 sm:$0xff]   ;;  %v6852_v33 = vshrl.u32 %v976_v32, 7  ;;  %s7603_s22 = sld [smem:[#allocation40_spill]]  ;;  %vm1227_vm1 = vcmask 261120  }
  0xf6   : > { %1124 = vmatpush1.bf16.msra.mxu0 %v5701_v6  ;;  %5266 = vmatpush3.bf16.msra.mxu1 %v5718_v14  ;;  %v941_v29 = vpack.c.bf16 %v935_v28, %v934_v27  ;;  %vm1322_vm2 = vcmask 130048   ;;  %v6899_v14 = vld [vmem:[#allocation8 + $0x8] sm:$0xff]  ;;  %s6411_s23 = smov 96   ;;  %s6412_s24 = smov 64   ;;  %vm2221_vm3 = vcmask 523264   ;;  %vm2226_vm4 = vcmask 785408  }
  0xf7   : > { %1125 = vmatprep.subr.bf16.mxu0 %v5702_v7  ;;  %5267 = vmatprep.subr.bf16.mxu1 %v5719_v17  ;;  %v6855_v34 = vsub.s32 1, %v6852_v33  ;;  %v6862_v41 = vsub.s32 0, %v6852_v33  ;;  %v986_v61 = vsub.s32 2, %v6852_v33  ;;  %s6413_s14 = smov 32   ;;  %s7604_s25 = sld [smem:[#allocation42_spill]] }
  0xf8   : > { %s7605_s3 = sld [smem:[#allocation43_spill]]  ;;  %s927_s30 = scalar_lea.vmem [#allocation20], %s6802_s7 }
  0xf9   : > { %s7610_s18 = sld [smem:[#allocation33_spill]]  ;;  %s4693_s4 = scalar_lea.sflag [#allocation4], %s6799_s5 }
  0xfa   : > { %1126 = vmatpush1.bf16.msra.mxu0 %v5704_v9  ;;  %5268 = vmatpush3.bf16.msra.mxu1 %v5719_v17  ;;  %s7611_s20 = sld [smem:[#allocation53_spill]] }
  0xfb   : > { %1127 = vmatprep.subr.bf16.mxu0 %v5705_v10  ;;  %5269 = vmatprep.subr.bf16.mxu1 %v5720_v20  ;;  %v974_v36 = vld [vmem:[%s7603_s22] sm:$0x7]  ;;  %v6896_v10 = vld [vmem:[#allocation8] sm:$0xff]  ;;  %s5102_s22 = sshll.u32 %s6563_s29, 9  ;;  %s6414_s29 = smov [#allocation20]  }
  0xfc   : > { %v983_v38 = vrot.slane %v974_v36, %v6855_v34  ;;  %v979_v47 = vrot.slane %v974_v36, %v6862_v41  ;;  %v987_v62 = vrot.slane %v974_v36, %v986_v61  ;;  %s6303_s21 = sshll.u32 %s6414_s29, 4  ;;  %s6304_s21 = int_to_ptr.vmem [resolvable:$false] %s6303_s21 }
  0xfd   : > { %s6305_s1 = scalar_lea.vmem %s6304_s21, 1024 }
  0xfe   : > { %1128 = vmatpush1.bf16.msra.mxu0 %v5707_v15  ;;  %5270 = vmatpush3.bf16.msra.mxu1 %v5720_v20 }
  0xff   : > { %1129 = vmatprep.subr.bf16.mxu0 %v5708_v16  ;;  %5271 = vmatprep.subr.bf16.mxu1 %v5721_v23  ;;  %p7612_p4 = scmp.ne.s32.totalorder %s7610_s18, 0 }
 0x100   : > { %s7454_s7 = scalar_lea.hbm %s7611_s20, %s5102_s22 }
 0x102   : > { %1130 = vmatpush1.bf16.msra.mxu0 %v5710_v18  ;;  %5272 = vmatpush3.bf16.msra.mxu1 %v5721_v23 }
 0x103   : > { %1131 = vmatprep.subr.bf16.mxu0 %v5711_v19  ;;  %5273 = vmatprep.subr.bf16.mxu1 %v5722_v25 }
 0x106   : > { %1132 = vmatpush1.bf16.msra.mxu0 %v5713_v21  ;;  %5274 = vmatpush3.bf16.msra.mxu1 %v5722_v25 }
 0x107   : > { %1133 = vmatprep.subr.bf16.mxu0 %v5714_v22  ;;  %5275 = vmatprep.subr.bf16.mxu1 %v5723_v26 }
 0x10a   : > { %1134 = vmatpush1.bf16.msra.mxu0 %v5716_v24  ;;  %5276 = vmatpush3.bf16.msra.mxu1 %v5723_v26 }
 0x10b   : > { %5277 = vmatprep.subr.bf16.mxu1 %v5724_v30  ;;  %5313 = vmatprep.subr.bf16.mxu0 %v6409_v31 }
 0x10d   : > { %1152 = vmatmul.mubr.bf16.vlgmr.msra.gmra.mxu0 %v940_v12 }
 0x10e   : > { %1161 = vmatprep.mubr.bf16.mxu0 %v6408_v0  ;;  %5278 = vmatpush3.bf16.msra.mxu1 %v5724_v30 }
 0x10f   : > { %5283 = vmatprep.subr.bf16.mxu1 %v6409_v31 }
 0x111   : > { %5280 = vmatmul.mubr.bf16.vlgmr.msra.gmra.mxu1 %v941_v29 }
 0x112   : > { %5285 = vmatprep.mubr.msk.bf16.mxu1 %vm6410_vm0, %v6409_v31 }
 0x115   : > { %1162 = vmatmul.mubr.bf16.gmra.mxu0 %v941_v29 }
 0x116   : > { %5315 = vmatprep.mubr.msk.bf16.mxu0 %vm6410_vm0, %v6409_v31 }
 0x1cd   : > { %v1153_v35 = vpop.f32.mrf.mxu0 }
 0x1ce   : > { %v1154_v53 = vadd.f32 %v1153_v35, %v979_v47 }
 0x1cf   : > { %v1155_v37 = vpop.f32.mrf.mxu0 }
 0x1d0   : > { %v1156_v42 = vadd.f32 %v1155_v37, %v983_v38 }
 0x1d1   : > { %v1157_v39 = vpop.f32.mrf.mxu0  ;;  %v5281_v63 = vpop.f32.mrf.mxu1 }
 0x1d2   : > { %v1158_v50 = vadd.f32 %v1157_v39, %v979_v47  ;;  %v1215_v1 = vadd.f32 %v5281_v63, %v987_v62 }
 0x1d3   : > { %v1159_v40 = vpop.f32.mrf.mxu0  ;;  %v1206_v2 = vpop.f32.mrf.mxu1 }
 0x1d4   : > { %v1160_v43 = vadd.f32 %v1159_v40, %v983_v38  ;;  %v6870_v55 = vpack.c.bf16 %v1158_v50, %v1154_v53  ;;  %v1207_v4 = vadd.f32 %v1206_v2, %v987_v62 }
 0x1d5   : > { %v1163_v44 = vpop.f32.mrf.mxu0  ;;  %v5282_v3 = vpop.f32.mrf.mxu1 }
 0x1d6   : > { %v6864_v45 = vpack.c.bf16 %v1160_v43, %v1156_v42  ;;  %v1164_v57 = vadd.f32 %v1163_v44, %v979_v47  ;;  %v1218_v5 = vadd.f32 %v5282_v3, %v987_v62 }
 0x1d7   : > { %v1165_v46 = vpop.f32.mrf.mxu0  ;;  %v1209_v6 = vpop.f32.mrf.mxu1 }
 0x1d8   : > { %v1232_v48 = vsel %vm1227_vm1, %v6864_v45, 0  ;;  %v1166_v51 = vadd.f32 %v1165_v46, %v983_v38  ;;  %v6890_v7 = vpack.c.bf16 %v1218_v5, %v1215_v1  ;;  %v1210_v8 = vadd.f32 %v1209_v6, %v987_v62 }
 0x1d9   : > { %v1167_v49 = vpop.f32.mrf.mxu0  ;;  %5284 = vmatpush3.bf16.xpose.msra.mxu1 %v1232_v48 }
 0x1da   : > { %5289 = vmatprep.subr.bf16.mxu1 %v6409_v31  ;;  %v1168_v58 = vadd.f32 %v1167_v49, %v979_v47  ;;  %v6892_v9 = vpack.c.bf16 %v1210_v8, %v1207_v4 }
 0x1db   : > { %v1169_v52 = vpop.f32.mrf.mxu0 }
 0x1dc   : > { %v1170_v54 = vadd.f32 %v1169_v52, %v983_v38  ;;  %v6881_v60 = vpack.c.bf16 %v1168_v58, %v1164_v57 }
 0x1de   : > { %v6872_v56 = vpack.c.bf16 %v1170_v54, %v1166_v51 }
 0x1e0   : > { %5286 = vmatmul.mubr.msk.bf16.vlgmr.msra.gmra.mxu1 %vm1227_vm1, %v6870_v55  ;;  %v1279_v59 = vsel %vm1227_vm1, %v6872_v56, 0 }
 0x1e1   : > { %5290 = vmatpush3.bf16.xpose.msra.mxu1 %v1279_v59  ;;  %5291 = vmatprep.mubr.msk.bf16.mxu1 %vm6410_vm0, %v6409_v31 }
 0x1e2   : > { %5295 = vmatprep.subr.bf16.mxu1 %v6409_v31 }
 0x1e8   : > { %5292 = vmatmul.mubr.msk.bf16.vlgmr.msra.gmra.mxu1 %vm1227_vm1, %v6881_v60 }
 0x1e9   : > { %5297 = vmatprep.mubr.msk.bf16.mxu1 %vm6410_vm0, %v6409_v31  ;;  %5296 = vmatpush3.bf16.msra.mxu1 %v6892_v9 }
 0x1ea   : > { %5301 = vmatprep.subr.bf16.mxu1 %v6409_v31 }
 0x2a0   : > { %v1268_v11 = vpop.f32.mrf.mxu1 }
 0x2a1   : > { %v1269_v12 = vadd.f32 %v1268_v11, %v6896_v10 }
 0x2a2   : > { %v5287_v13 = vpop.f32.mrf.mxu1 }
 0x2a3   : > { %v1323_v15 = vsel %vm1322_vm2, %v1269_v12, -inf }
 0x2a4   : > { %1324 = vmax.xlane.f32.xlu0 %v1323_v15  ;;  %v1271_v16 = vpop.f32.mrf.mxu1 }
 0x2a5   : > { %v1272_v17 = vadd.f32 %v1271_v16, %v6899_v14 }
 0x2a6   : > { %v5288_v18 = vpop.f32.mrf.mxu1 }
 0x2a7   : > { %v1326_v19 = vsel %vm1322_vm2, %v1272_v17, -inf }
 0x2a8   : > { %1327 = vmax.xlane.f32.xlu0 %v1326_v19  ;;  %v1315_v20 = vpop.f32.mrf.mxu1 }
 0x2a9   : > { %v1316_v21 = vadd.f32 %v1315_v20, %v6896_v10 }
 0x2aa   : > { %v5293_v22 = vpop.f32.mrf.mxu1 }
 0x2ab   : > { %v1329_v23 = vsel %vm1322_vm2, %v1316_v21, -inf }
 0x2ac   : > { %1330 = vmax.xlane.f32.xlu1 %v1329_v23  ;;  %v1318_v24 = vpop.f32.mrf.mxu1 }
 0x2ad   : > { %v1319_v25 = vadd.f32 %v1318_v24, %v6899_v14 }
 0x2ae   : > { %v5294_v26 = vpop.f32.mrf.mxu1 }
 0x2af   : > { %v1332_v27 = vsel %vm1322_vm2, %v1319_v25, -inf }
 0x2b0   : > { %1333 = vmax.xlane.f32.xlu1 %v1332_v27 }
 0x32d   : > { %v1325_v28 = vpop.xlane.xlu0 %1324 }
 0x32e   : > { %v1335_v29 = vsub.f32 %v1269_v12, %v1325_v28 }
 0x330   : > { %v1339_v30 = vmul.f32 1.442695, %v1335_v29 }
 0x331   : > { %v1328_v32 = vpop.xlane.xlu0 %1327 }
 0x332   : > { %5853 = vpow2.f32 %v1339_v30  ;;  %v1336_v35 = vsub.f32 %v1272_v17, %v1328_v32 }
 0x334   : > { %v1341_v36 = vmul.f32 1.442695, %v1336_v35 }
 0x335   : > { %v1331_v37 = vpop.xlane.xlu1 %1330 }
 0x336   : > { %5855 = vpow2.f32 %v1341_v36  ;;  %v1337_v38 = vsub.f32 %v1316_v21, %v1331_v37 }
 0x338   : > { %v1343_v39 = vmul.f32 1.442695, %v1337_v38 }
 0x339   : > { %v1334_v48 = vpop.xlane.xlu1 %1333 }
 0x33a   : > { %5857 = vpow2.f32 %v1343_v39  ;;  %v1338_v49 = vsub.f32 %v1319_v25, %v1334_v48 }
 0x33c   : > { %v1345_v50 = vmul.f32 1.442695, %v1338_v49 }
 0x33e   : > { %5859 = vpow2.f32 %v1345_v50 }
 0x33f   : > { %v5854_v40 = vpop.eup %5853 }
 0x340   : > { %v1347_v42 = vsel %vm1322_vm2, %v5854_v40, 0.0 }
 0x341   : > { %1348 = vadd.xlane.f32.xlu0 %v1347_v42 }
 0x343   : > { %v5856_v43 = vpop.eup %5855 }
 0x344   : > { %v1350_v44 = vsel %vm1322_vm2, %v5856_v43, 0.0 }
 0x345   : > { %1351 = vadd.xlane.f32.xlu1 %v1350_v44 }
 0x347   : > { %v5858_v46 = vpop.eup %5857 }
 0x348   : > { %v1353_v47 = vsel %vm1322_vm2, %v5858_v46, 0.0 }
 0x349   : > { %1354 = vadd.xlane.f32.xlu0 %v1353_v47 }
 0x34b   : > { %v5860_v51 = vpop.eup %5859 }
 0x34c   : > { %v1356_v52 = vsel %vm1322_vm2, %v5860_v51, 0.0 }
 0x356   : > { %1516 = vrot.lane.b32.xlu1 %v6872_v56, %s6411_s23 }
 0x35f   : > { %1463 = vrot.lane.b32.xlu0 %v6864_v45, %s6411_s23 }
 0x37a   : > { %1357 = vadd.xlane.f32.xlu1 %v1356_v52 }
 0x38b   : > { %1460 = vrot.lane.b32.xlu1 %v6870_v55, %s6411_s23 }
 0x38f   : > { %1513 = vrot.lane.b32.xlu1 %v6881_v60, %s6411_s23 }
 0x3ca   : > { %v1349_v53 = vpop.xlane.xlu0 %1348 }
 0x3cb   : > { %5861 = vrcp.f32 %v1349_v53 }
 0x3ce   : > { %v1352_v54 = vpop.xlane.xlu1 %1351 }
 0x3cf   : > { %5863 = vrcp.f32 %v1352_v54 }
 0x3d2   : > { %v1517_v57 = vpop.permute.xlu1 %1516  ;;  %v1355_v3 = vpop.xlane.xlu0 %1354 }
 0x3d3   : > { %v1522_v58 = vsel %vm1227_vm1, %v1517_v57, 0  ;;  %5865 = vrcp.f32 %v1355_v3 }
 0x3d4   : > { %5314 = vmatpush3.bf16.xpose.msra.mxu0 %v1522_v58 }
 0x3d5   : > { %5325 = vmatprep.subr.bf16.mxu0 %v6409_v31 }
 0x3d6   : > { %v1464_v15 = vpop.permute.xlu0 %1463 }
 0x3d7   : > { %v1469_v17 = vsel %vm1227_vm1, %v1464_v15, 0 }
 0x3d8   : > { %v5862_v59 = vpop.eup %5861 }
 0x3d9   : > { %v1363_v63 = vmul.f32 %v5862_v59, %v5854_v40 }
 0x3dc   : > { %v5864_v62 = vpop.eup %5863 }
 0x3dd   : > { %v1364_v1 = vmul.f32 %v5864_v62, %v5856_v43 }
 0x3df   : > { %v1367_v2 = vpack.c.bf16 %v1364_v1, %v1363_v63 }
 0x3e0   : > { %v5866_v8 = vpop.eup %5865 }
 0x3e1   : > { %5298 = vmatmul.mubr.msk.bf16.vlgmr.msra.gmra.mxu1 %vm1322_vm2, %v1367_v2  ;;  %v1365_v12 = vmul.f32 %v5866_v8, %v5858_v46 }
 0x3e2   : > { %5302 = vmatpush3.bf16.msra.mxu1 %v6890_v7  ;;  %5303 = vmatprep.mubr.msk.bf16.mxu1 %vm6410_vm0, %v6409_v31 }
 0x3e3   : > { %5307 = vmatprep.subr.bf16.mxu1 %v6409_v31 }
 0x403   : > { %v1358_v4 = vpop.xlane.xlu1 %1357 }
 0x404   : > { %5867 = vrcp.f32 %v1358_v4 }
 0x407   : > { %v1461_v5 = vpop.permute.xlu1 %1460 }
 0x40b   : > { %v1514_v6 = vpop.permute.xlu1 %1513 }
 0x40c   : > { %5316 = vmatmul.mubr.msk.bf16.vlgmr.msra.gmra.mxu0 %vm1227_vm1, %v1514_v6 }
 0x40d   : > { %5327 = vmatprep.mubr.msk.bf16.mxu0 %vm6410_vm0, %v6409_v31 }
 0x411   : > { %v5868_v11 = vpop.eup %5867 }
 0x412   : > { %v1366_v13 = vmul.f32 %v5868_v11, %v5860_v51 }
 0x414   : > { %v1368_v16 = vpack.c.bf16 %v1366_v13, %v1365_v12 }
 0x416   : > { %5304 = vmatmul.mubr.msk.bf16.vlgmr.msra.gmra.mxu1 %vm1322_vm2, %v1368_v16 }
 0x417   : > { %5308 = vmatpush3.bf16.xpose.msra.mxu1 %v1469_v17  ;;  %5309 = vmatprep.mubr.msk.bf16.mxu1 %vm6410_vm0, %v6409_v31 }
 0x418   : > { %5319 = vmatprep.subr.bf16.mxu1 %v6409_v31 }
 0x41e   : > { %5310 = vmatmul.mubr.msk.bf16.vlgmr.msra.gmra.mxu1 %vm1227_vm1, %v1461_v5 }
 0x41f   : > { %5321 = vmatprep.mubr.msk.bf16.mxu1 %vm6410_vm0, %v6409_v31 }
 0x4a1   : > { %v6938_v18 = vpop.f32.mrf.mxu1 }
 0x4a3   : > { %v5299_v19 = vpop.f32.mrf.mxu1 }
 0x4a5   : > { %v6940_v20 = vpop.f32.mrf.mxu1 }
 0x4a6   : > { %v1457_v21 = vpack.c.bf16 %v6940_v20, %v6938_v18 }
 0x4a7   : > { %v5300_v22 = vpop.f32.mrf.mxu1 }
 0x4cc   : > { %v1558_v23 = vpop.f32.mrf.mxu0 }
 0x4cd   : > { %v1559_v38 = vadd.f32 %v1558_v23, %v6896_v10 }
 0x4ce   : > { %v5317_v24 = vpop.f32.mrf.mxu0 }
 0x4cf   : > { %v1571_v46 = vsel %vm1322_vm2, %v1559_v38, -inf }
 0x4d0   : > { %v1561_v25 = vpop.f32.mrf.mxu0 }
 0x4d1   : > { %v1562_v44 = vadd.f32 %v1561_v25, %v6899_v14 }
 0x4d2   : > { %v5318_v26 = vpop.f32.mrf.mxu0 }
 0x4d3   : > { %v1574_v48 = vsel %vm1322_vm2, %v1562_v44, -inf }
 0x4d6   : > { %v6944_v27 = vpop.f32.mrf.mxu1 }
 0x4d8   : > { %v5305_v28 = vpop.f32.mrf.mxu1 }
 0x4da   : > { %v6946_v29 = vpop.f32.mrf.mxu1 }
 0x4db   : > { %v1458_v30 = vpack.c.bf16 %v6946_v29, %v6944_v27 }
 0x4dc   : > { %v5306_v32 = vpop.f32.mrf.mxu1 }
 0x4de   : > { %v1505_v35 = vpop.f32.mrf.mxu1 }
 0x4df   : > { %v1506_v36 = vadd.f32 %v1505_v35, %v6896_v10 }
 0x4e0   : > { %v5311_v37 = vpop.f32.mrf.mxu1 }
 0x4e1   : > { %v1565_v39 = vsel %vm1322_vm2, %v1506_v36, -inf }
 0x4e2   : > { %1566 = vmax.xlane.f32.xlu0 %v1565_v39  ;;  %v1508_v40 = vpop.f32.mrf.mxu1 }
 0x4e3   : > { %v1509_v42 = vadd.f32 %v1508_v40, %v6899_v14 }
 0x4e4   : > { %v5312_v43 = vpop.f32.mrf.mxu1 }
 0x4e5   : > { %v1568_v47 = vsel %vm1322_vm2, %v1509_v42, -inf }
 0x4e6   : > { %1572 = vmax.xlane.f32.xlu0 %v1571_v46  ;;  %1569 = vmax.xlane.f32.xlu1 %v1568_v47 }
 0x4ea   : > { %1575 = vmax.xlane.f32.xlu0 %v1574_v48 }
 0x56b   : > { %v1567_v49 = vpop.xlane.xlu0 %1566 }
 0x56c   : > { %v1577_v50 = vsub.f32 %v1506_v36, %v1567_v49 }
 0x56e   : > { %v1581_v53 = vmul.f32 1.442695, %v1577_v50 }
 0x56f   : > { %v1573_v51 = vpop.xlane.xlu0 %1572  ;;  %v1570_v5 = vpop.xlane.xlu1 %1569 }
 0x570   : > { %v1579_v52 = vsub.f32 %v1559_v38, %v1573_v51  ;;  %v1578_v6 = vsub.f32 %v1509_v42, %v1570_v5 }
 0x572   : > { %v1585_v54 = vmul.f32 1.442695, %v1579_v52  ;;  %v1583_v8 = vmul.f32 1.442695, %v1578_v6 }
 0x573   : > { %v1576_v57 = vpop.xlane.xlu0 %1575 }
 0x574   : > { %5869 = vpow2.f32 %v1585_v54  ;;  %v1580_v58 = vsub.f32 %v1562_v44, %v1576_v57 }
 0x575   : > { %5871 = vpow2.f32 %v1581_v53 }
 0x576   : > { %v1587_v59 = vmul.f32 1.442695, %v1580_v58 }
 0x578   : > { %5873 = vpow2.f32 %v1587_v59 }
 0x579   : > { %5875 = vpow2.f32 %v1583_v8 }
 0x581   : > { %v5870_v62 = vpop.eup %5869 }
 0x582   : > { %v1595_v63 = vsel %vm1322_vm2, %v5870_v62, 0.0  ;;  %v5872_v1 = vpop.eup %5871 }
 0x583   : > { %1596 = vadd.xlane.f32.xlu0 %v1595_v63  ;;  %v1589_v3 = vsel %vm1322_vm2, %v5872_v1, 0.0 }
 0x585   : > { %v5874_v2 = vpop.eup %5873 }
 0x586   : > { %v1598_v4 = vsel %vm1322_vm2, %v5874_v2, 0.0  ;;  %v5876_v11 = vpop.eup %5875 }
 0x587   : > { %1590 = vadd.xlane.f32.xlu0 %v1589_v3  ;;  %1599 = vadd.xlane.f32.xlu1 %v1598_v4  ;;  %v1592_v12 = vsel %vm1322_vm2, %v5876_v11, 0.0 }
 0x598   : > { %1660 = vrot.lane.b32.xlu1 %v6890_v7, %s6411_s23 }
 0x59c   : > { %1711 = vrot.lane.b32.xlu1 %v6864_v45, %s6412_s24 }
 0x59d   : > { %1612 = vrot.lane.b32.xlu0 %v6892_v9, %s6411_s23 }
 0x5a1   : > { %1709 = vrot.lane.b32.xlu0 %v6870_v55, %s6412_s24 }
 0x5c0   : > { %1593 = vadd.xlane.f32.xlu1 %v1592_v12 }
 0x5d1   : > { %1762 = vrot.lane.b32.xlu1 %v6872_v56, %s6412_s24 }
 0x5d5   : > { %1760 = vrot.lane.b32.xlu1 %v6881_v60, %s6412_s24 }
 0x60c   : > { %v1597_v13 = vpop.xlane.xlu0 %1596 }
 0x60d   : > { %5877 = vrcp.f32 %v1597_v13 }
 0x610   : > { %v1591_v15 = vpop.xlane.xlu0 %1590  ;;  %v1600_v16 = vpop.xlane.xlu1 %1599 }
 0x611   : > { %5879 = vrcp.f32 %v1600_v16 }
 0x612   : > { %5881 = vrcp.f32 %v1591_v15 }
 0x614   : > { %v1613_v17 = vpop.permute.xlu0 %1612  ;;  %v1661_v19 = vpop.permute.xlu1 %1660 }
 0x615   : > { %5320 = vmatpush3.bf16.msra.mxu1 %v1613_v17  ;;  %5326 = vmatpush3.bf16.msra.mxu0 %v1661_v19 }
 0x616   : > { %5337 = vmatprep.subr.bf16.mxu0 %v6409_v31  ;;  %5331 = vmatprep.subr.bf16.mxu1 %v6409_v31 }
 0x618   : > { %v1712_v28 = vpop.permute.xlu1 %1711  ;;  %v1710_v46 = vpop.permute.xlu0 %1709 }
 0x619   : > { %v1717_v44 = vsel %vm1227_vm1, %v1712_v28, 0 }
 0x61a   : > { %v5878_v22 = vpop.eup %5877 }
 0x61b   : > { %v1607_v24 = vmul.f32 %v5878_v22, %v5870_v62 }
 0x61e   : > { %v5880_v23 = vpop.eup %5879 }
 0x61f   : > { %v1608_v25 = vmul.f32 %v5880_v23, %v5874_v2  ;;  %v5882_v37 = vpop.eup %5881 }
 0x620   : > { %v1605_v40 = vmul.f32 %v5882_v37, %v5872_v1 }
 0x621   : > { %v1610_v26 = vpack.c.bf16 %v1608_v25, %v1607_v24 }
 0x623   : > { %5328 = vmatmul.mubr.msk.bf16.vlgmr.msra.gmra.mxu0 %vm1322_vm2, %v1610_v26 }
 0x624   : > { %5339 = vmatprep.mubr.msk.bf16.mxu0 %vm6410_vm0, %v6409_v31 }
 0x649   : > { %v1594_v32 = vpop.xlane.xlu1 %1593 }
 0x64a   : > { %5883 = vrcp.f32 %v1594_v32 }
 0x64d   : > { %v1763_v35 = vpop.permute.xlu1 %1762 }
 0x64e   : > { %v1768_v36 = vsel %vm1227_vm1, %v1763_v35, 0 }
 0x64f   : > { %5338 = vmatpush3.bf16.xpose.msra.mxu0 %v1768_v36 }
 0x650   : > { %5349 = vmatprep.subr.bf16.mxu0 %v6409_v31 }
 0x651   : > { %v1761_v38 = vpop.permute.xlu1 %1760 }
 0x656   : > { %5340 = vmatmul.mubr.msk.bf16.vlgmr.msra.gmra.mxu0 %vm1227_vm1, %v1761_v38 }
 0x657   : > { %v5884_v39 = vpop.eup %5883  ;;  %5351 = vmatprep.mubr.msk.bf16.mxu0 %vm6410_vm0, %v6409_v31 }
 0x658   : > { %v1606_v42 = vmul.f32 %v5884_v39, %v5876_v11 }
 0x65a   : > { %v1609_v43 = vpack.c.bf16 %v1606_v42, %v1605_v40 }
 0x65c   : > { %5322 = vmatmul.mubr.msk.bf16.vlgmr.msra.gmra.mxu1 %vm1322_vm2, %v1609_v43 }
 0x65d   : > { %5332 = vmatpush3.bf16.xpose.msra.mxu1 %v1717_v44  ;;  %5333 = vmatprep.mubr.msk.bf16.mxu1 %vm6410_vm0, %v6409_v31 }
 0x65e   : > { %5343 = vmatprep.subr.bf16.mxu1 %v6409_v31 }
 0x664   : > { %5334 = vmatmul.mubr.msk.bf16.vlgmr.msra.gmra.mxu1 %vm1227_vm1, %v1710_v46 }
 0x665   : > { %5345 = vmatprep.mubr.msk.bf16.mxu1 %vm6410_vm0, %v6409_v31 }
 0x6e3   : > { %v6992_v47 = vpop.f32.mrf.mxu0 }
 0x6e5   : > { %v5329_v48 = vpop.f32.mrf.mxu0 }
 0x6e7   : > { %v6994_v49 = vpop.f32.mrf.mxu0 }
 0x6e8   : > { %v1708_v50 = vpack.c.bf16 %v6994_v49, %v6992_v47 }
 0x6e9   : > { %v5330_v51 = vpop.f32.mrf.mxu0 }
 0x716   : > { %v1804_v52 = vpop.f32.mrf.mxu0 }
 0x717   : > { %v1805_v5 = vadd.f32 %v1804_v52, %v6896_v10 }
 0x718   : > { %v5341_v53 = vpop.f32.mrf.mxu0 }
 0x719   : > { %v1817_v15 = vsel %vm1322_vm2, %v1805_v5, -inf }
 0x71a   : > { %v1807_v54 = vpop.f32.mrf.mxu0 }
 0x71b   : > { %v1808_v13 = vadd.f32 %v1807_v54, %v6899_v14 }
 0x71c   : > { %v6998_v57 = vpop.f32.mrf.mxu1  ;;  %v5342_v58 = vpop.f32.mrf.mxu0 }
 0x71d   : > { %v1820_v17 = vsel %vm1322_vm2, %v1808_v13, -inf }
 0x71e   : > { %v5323_v59 = vpop.f32.mrf.mxu1 }
 0x720   : > { %v7000_v62 = vpop.f32.mrf.mxu1 }
 0x721   : > { %v1707_v63 = vpack.c.bf16 %v7000_v62, %v6998_v57 }
 0x722   : > { %v5324_v1 = vpop.f32.mrf.mxu1 }
 0x724   : > { %v1753_v2 = vpop.f32.mrf.mxu1 }
 0x725   : > { %v1754_v3 = vadd.f32 %v1753_v2, %v6896_v10 }
 0x726   : > { %v5335_v4 = vpop.f32.mrf.mxu1 }
 0x727   : > { %v1811_v6 = vsel %vm1322_vm2, %v1754_v3, -inf }
 0x728   : > { %1812 = vmax.xlane.f32.xlu0 %v1811_v6  ;;  %v1756_v8 = vpop.f32.mrf.mxu1 }
 0x729   : > { %v1757_v11 = vadd.f32 %v1756_v8, %v6899_v14 }
 0x72a   : > { %v5336_v12 = vpop.f32.mrf.mxu1 }
 0x72b   : > { %v1814_v16 = vsel %vm1322_vm2, %v1757_v11, -inf }
 0x72c   : > { %1818 = vmax.xlane.f32.xlu0 %v1817_v15  ;;  %1815 = vmax.xlane.f32.xlu1 %v1814_v16 }
 0x730   : > { %1821 = vmax.xlane.f32.xlu0 %v1820_v17 }
 0x7b1   : > { %v1813_v19 = vpop.xlane.xlu0 %1812 }
 0x7b2   : > { %v1823_v22 = vsub.f32 %v1754_v3, %v1813_v19 }
 0x7b4   : > { %v1827_v25 = vmul.f32 1.442695, %v1823_v22 }
 0x7b5   : > { %v1819_v23 = vpop.xlane.xlu0 %1818  ;;  %v1816_v43 = vpop.xlane.xlu1 %1815 }
 0x7b6   : > { %v1825_v24 = vsub.f32 %v1805_v5, %v1819_v23  ;;  %v1824_v44 = vsub.f32 %v1757_v11, %v1816_v43 }
 0x7b8   : > { %v1831_v26 = vmul.f32 1.442695, %v1825_v24  ;;  %v1829_v46 = vmul.f32 1.442695, %v1824_v44 }
 0x7b9   : > { %v1822_v28 = vpop.xlane.xlu0 %1821 }
 0x7ba   : > { %5885 = vpow2.f32 %v1831_v26  ;;  %v1826_v32 = vsub.f32 %v1808_v13, %v1822_v28 }
 0x7bb   : > { %5887 = vpow2.f32 %v1827_v25 }
 0x7bc   : > { %v1833_v35 = vmul.f32 1.442695, %v1826_v32 }
 0x7be   : > { %5889 = vpow2.f32 %v1833_v35 }
 0x7bf   : > { %5891 = vpow2.f32 %v1829_v46 }
 0x7c7   : > { %v5886_v36 = vpop.eup %5885 }
 0x7c8   : > { %v1841_v37 = vsel %vm1322_vm2, %v5886_v36, 0.0  ;;  %v5888_v38 = vpop.eup %5887 }
 0x7c9   : > { %1842 = vadd.xlane.f32.xlu0 %v1841_v37  ;;  %v1835_v40 = vsel %vm1322_vm2, %v5888_v38, 0.0 }
 0x7cb   : > { %v5890_v39 = vpop.eup %5889 }
 0x7cc   : > { %v1844_v42 = vsel %vm1322_vm2, %v5890_v39, 0.0  ;;  %v5892_v48 = vpop.eup %5891 }
 0x7cd   : > { %1836 = vadd.xlane.f32.xlu0 %v1835_v40  ;;  %1845 = vadd.xlane.f32.xlu1 %v1844_v42  ;;  %v1838_v51 = vsel %vm1322_vm2, %v5892_v48, 0.0 }
 0x7de   : > { %1904 = vrot.lane.b32.xlu1 %v6890_v7, %s6412_s24 }
 0x7e2   : > { %1955 = vrot.lane.b32.xlu1 %v6864_v45, %s6413_s14 }
 0x7e3   : > { %1857 = vrot.lane.b32.xlu0 %v6892_v9, %s6412_s24 }
 0x7e7   : > { %1953 = vrot.lane.b32.xlu0 %v6870_v55, %s6413_s14 }
 0x806   : > { %1839 = vadd.xlane.f32.xlu1 %v1838_v51 }
 0x817   : > { %2006 = vrot.lane.b32.xlu1 %v6872_v56, %s6413_s14 }
 0x81b   : > { %2004 = vrot.lane.b32.xlu1 %v6881_v60, %s6413_s14 }
 0x852   : > { %v1843_v45 = vpop.xlane.xlu0 %1842 }
 0x853   : > { %5893 = vrcp.f32 %v1843_v45 }
 0x856   : > { %v1837_v52 = vpop.xlane.xlu0 %1836  ;;  %v1846_v53 = vpop.xlane.xlu1 %1845 }
 0x857   : > { %5895 = vrcp.f32 %v1846_v53 }
 0x858   : > { %5897 = vrcp.f32 %v1837_v52 }
 0x85a   : > { %v1858_v55 = vpop.permute.xlu0 %1857  ;;  %v1905_v54 = vpop.permute.xlu1 %1904 }
 0x85b   : > { %5344 = vmatpush3.bf16.msra.mxu1 %v1858_v55  ;;  %5350 = vmatpush3.bf16.msra.mxu0 %v1905_v54 }
 0x85c   : > { %5361 = vmatprep.subr.bf16.mxu0 %v6409_v31  ;;  %5355 = vmatprep.subr.bf16.mxu1 %v6409_v31 }
 0x85e   : > { %v1956_v60 = vpop.permute.xlu1 %1955  ;;  %v1954_v17 = vpop.permute.xlu0 %1953 }
 0x85f   : > { %v1961_v16 = vsel %vm1227_vm1, %v1956_v60, 0 }
 0x860   : > { %v5894_v58 = vpop.eup %5893 }
 0x861   : > { %v1853_v1 = vmul.f32 %v5894_v58, %v5886_v36 }
 0x864   : > { %v5896_v59 = vpop.eup %5895 }
 0x865   : > { %v1854_v56 = vmul.f32 %v5896_v59, %v5890_v39  ;;  %v5898_v6 = vpop.eup %5897 }
 0x866   : > { %v1851_v12 = vmul.f32 %v5898_v6, %v5888_v38 }
 0x867   : > { %v1856_v2 = vpack.c.bf16 %v1854_v56, %v1853_v1 }
 0x869   : > { %5352 = vmatmul.mubr.msk.bf16.vlgmr.msra.gmra.mxu0 %vm1322_vm2, %v1856_v2 }
 0x86a   : > { %5363 = vmatprep.mubr.msk.bf16.mxu0 %vm6410_vm0, %v6409_v31 }
 0x88f   : > { %v1840_v3 = vpop.xlane.xlu1 %1839 }
 0x890   : > { %5899 = vrcp.f32 %v1840_v3 }
 0x893   : > { %v2007_v4 = vpop.permute.xlu1 %2006 }
 0x894   : > { %v2012_v5 = vsel %vm1227_vm1, %v2007_v4, 0 }
 0x895   : > { %5362 = vmatpush3.bf16.xpose.msra.mxu0 %v2012_v5 }
 0x896   : > { %5373 = vmatprep.subr.bf16.mxu0 %v6409_v31 }
 0x897   : > { %v2005_v8 = vpop.permute.xlu1 %2004 }
 0x89c   : > { %5364 = vmatmul.mubr.msk.bf16.vlgmr.msra.gmra.mxu0 %vm1227_vm1, %v2005_v8 }
 0x89d   : > { %v5900_v11 = vpop.eup %5899  ;;  %5375 = vmatprep.mubr.msk.bf16.mxu0 %vm6410_vm0, %v6409_v31 }
 0x89e   : > { %v1852_v13 = vmul.f32 %v5900_v11, %v5892_v48 }
 0x8a0   : > { %v1855_v15 = vpack.c.bf16 %v1852_v13, %v1851_v12 }
 0x8a2   : > { %5346 = vmatmul.mubr.msk.bf16.vlgmr.msra.gmra.mxu1 %vm1322_vm2, %v1855_v15 }
 0x8a3   : > { %5356 = vmatpush3.bf16.xpose.msra.mxu1 %v1961_v16  ;;  %5357 = vmatprep.mubr.msk.bf16.mxu1 %vm6410_vm0, %v6409_v31 }
 0x8a4   : > { %5367 = vmatprep.subr.bf16.mxu1 %v6409_v31 }
 0x8aa   : > { %5358 = vmatmul.mubr.msk.bf16.vlgmr.msra.gmra.mxu1 %vm1227_vm1, %v1954_v17 }
 0x8ab   : > { %5369 = vmatprep.mubr.msk.bf16.mxu1 %vm6410_vm0, %v6409_v31 }
 0x929   : > { %v7046_v19 = vpop.f32.mrf.mxu0 }
 0x92b   : > { %v5353_v22 = vpop.f32.mrf.mxu0 }
 0x92d   : > { %v1947_v23 = vpop.f32.mrf.mxu0 }
 0x92e   : > { %v1952_v24 = vpack.c.bf16 %v1947_v23, %v7046_v19 }
 0x92f   : > { %v5354_v25 = vpop.f32.mrf.mxu0 }
 0x95c   : > { %v2048_v26 = vpop.f32.mrf.mxu0 }
 0x95d   : > { %v2049_v46 = vadd.f32 %v2048_v26, %v6896_v10 }
 0x95e   : > { %v5365_v28 = vpop.f32.mrf.mxu0 }
 0x95f   : > { %v2061_v55 = vsel %vm1322_vm2, %v2049_v46, -inf }
 0x960   : > { %v2051_v32 = vpop.f32.mrf.mxu0 }
 0x961   : > { %v2052_v53 = vadd.f32 %v2051_v32, %v6899_v14 }
 0x962   : > { %v1897_v35 = vpop.f32.mrf.mxu1  ;;  %v5366_v36 = vpop.f32.mrf.mxu0 }
 0x963   : > { %v2064_v58 = vsel %vm1322_vm2, %v2052_v53, -inf }
 0x964   : > { %v5347_v37 = vpop.f32.mrf.mxu1 }
 0x965   : > { %v5725_v37 = vld [vmem:[#allocation11 + $0x38] sm:$0xff]  }
 0x966   : > { %v1900_v38 = vpop.f32.mrf.mxu1 }
 0x967   : > { %v1951_v39 = vpack.c.bf16 %v1900_v38, %v1897_v35  ;;  %v5726_v38 = vld [vmem:[#allocation11 + $0x30] sm:$0xff]  }
 0x968   : > { %v5348_v40 = vpop.f32.mrf.mxu1 }
 0x969   : > { %v5728_v40 = vld [vmem:[#allocation11 + $0x20] sm:$0xff]  }
 0x96a   : > { %v1997_v42 = vpop.f32.mrf.mxu1 }
 0x96b   : > { %v1998_v43 = vadd.f32 %v1997_v42, %v6896_v10  ;;  %v5729_v42 = vld [vmem:[#allocation11 + $0x18] sm:$0xff]  }
 0x96c   : > { %v5359_v44 = vpop.f32.mrf.mxu1 }
 0x96d   : > { %v2055_v48 = vsel %vm1322_vm2, %v1998_v43, -inf  ;;  %v5731_v44 = vld [vmem:[#allocation11 + $0x8] sm:$0xff]  }
 0x96e   : > { %2056 = vmax.xlane.f32.xlu0 %v2055_v48  ;;  %v2000_v51 = vpop.f32.mrf.mxu1 }
 0x96f   : > { %v2001_v45 = vadd.f32 %v2000_v51, %v6899_v14 }
 0x970   : > { %v5360_v52 = vpop.f32.mrf.mxu1 }
 0x971   : > { %v2058_v54 = vsel %vm1322_vm2, %v2001_v45, -inf }
 0x972   : > { %2062 = vmax.xlane.f32.xlu0 %v2061_v55  ;;  %2059 = vmax.xlane.f32.xlu1 %v2058_v54 }
 0x976   : > { %2065 = vmax.xlane.f32.xlu0 %v2064_v58 }
 0x9f7   : > { %v2057_v59 = vpop.xlane.xlu0 %2056 }
 0x9f8   : > { %v2067_v10 = vsub.f32 %v1998_v43, %v2057_v59  ;;  %v5730_v43 = vld [vmem:[#allocation11 + $0x10] sm:$0xff]  }
 0x9fa   : > { %v2071_v60 = vmul.f32 1.442695, %v2067_v10 }
 0x9fb   : > { %v2063_v1 = vpop.xlane.xlu0 %2062  ;;  %v2060_v56 = vpop.xlane.xlu1 %2059 }
 0x9fc   : > { %v2069_v2 = vsub.f32 %v2049_v46, %v2063_v1  ;;  %v2068_v4 = vsub.f32 %v2001_v45, %v2060_v56  ;;  %v5732_v46 = vld [vmem:[#allocation11] sm:$0xff]  }
 0x9fe   : > { %v2075_v3 = vmul.f32 1.442695, %v2069_v2  ;;  %v2073_v6 = vmul.f32 1.442695, %v2068_v4 }
 0x9ff   : > { %v2066_v5 = vpop.xlane.xlu0 %2065 }
 0xa00   : > { %5901 = vpow2.f32 %v2075_v3  ;;  %v2070_v14 = vsub.f32 %v2052_v53, %v2066_v5 }
 0xa01   : > { %5903 = vpow2.f32 %v2071_v60 }
 0xa02   : > { %v2077_v8 = vmul.f32 1.442695, %v2070_v14 }
 0xa04   : > { %5905 = vpow2.f32 %v2077_v8 }
 0xa05   : > { %5907 = vpow2.f32 %v2073_v6 }
 0xa0d   : > { %v5902_v11 = vpop.eup %5901 }
 0xa0e   : > { %v2085_v12 = vsel %vm1322_vm2, %v5902_v11, 0.0  ;;  %v5904_v13 = vpop.eup %5903 }
 0xa0f   : > { %2086 = vadd.xlane.f32.xlu0 %v2085_v12  ;;  %v2079_v16 = vsel %vm1322_vm2, %v5904_v13, 0.0 }
 0xa11   : > { %v5906_v15 = vpop.eup %5905 }
 0xa12   : > { %v2088_v17 = vsel %vm1322_vm2, %v5906_v15, 0.0  ;;  %v5908_v19 = vpop.eup %5907 }
 0xa13   : > { %2080 = vadd.xlane.f32.xlu0 %v2079_v16  ;;  %2089 = vadd.xlane.f32.xlu1 %v2088_v17  ;;  %v2082_v22 = vsel %vm1322_vm2, %v5908_v19, 0.0 }
 0xa17   : > { %2083 = vadd.xlane.f32.xlu1 %v2082_v22  ;;  %v6006_v22 = vld [vmem:[%s6806_s10 + $0x8] sm:$0xff] }
 0xa28   : > { %2148 = vrot.lane.b32.xlu1 %v6890_v7, %s6413_s14 }
 0xa29   : > { %2101 = vrot.lane.b32.xlu0 %v6892_v9, %s6413_s14 }
 0xa2c   : > { %2199 = vrot.lane.b32.xlu1 %v1707_v63, %s6413_s14 }
 0xa2d   : > { %2205 = vrot.lane.b32.xlu0 %v1951_v39, %s6412_s24  ;;  %v5727_v39 = vld [vmem:[#allocation11 + $0x28] sm:$0xff]  }
 0xa30   : > { %2201 = vrot.lane.b32.xlu1 %v1708_v50, %s6413_s14 }
 0xa34   : > { %2207 = vrot.lane.b32.xlu1 %v1952_v24, %s6412_s24 }
 0xa98   : > { %v2087_v23 = vpop.xlane.xlu0 %2086 }
 0xa99   : > { %5909 = vrcp.f32 %v2087_v23 }
 0xa9c   : > { %v2081_v7 = vpop.xlane.xlu0 %2080  ;;  %v2090_v25 = vpop.xlane.xlu1 %2089 }
 0xa9d   : > { %5911 = vrcp.f32 %v2090_v25 }
 0xa9e   : > { %5913 = vrcp.f32 %v2081_v7  ;;  %v6007_v7 = vld [vmem:[%s6806_s10 + $0x10] sm:$0xff] }
 0xaa0   : > { %v2102_v9 = vpop.permute.xlu0 %2101  ;;  %v2084_v26 = vpop.xlane.xlu1 %2083 }
 0xaa1   : > { %5915 = vrcp.f32 %v2084_v26  ;;  %5368 = vmatpush3.bf16.msra.mxu1 %v2102_v9  ;;  %v6008_v9 = vld [vmem:[%s6806_s10 + $0x18] sm:$0xff] }
 0xaa2   : > { %5379 = vmatprep.subr.bf16.mxu1 %v5725_v37 }
 0xaa4   : > { %v2149_v57 = vpop.permute.xlu1 %2148  ;;  %v2206_v60 = vpop.permute.xlu0 %2205 }
 0xaa5   : > { %5374 = vmatpush3.bf16.msra.mxu0 %v2149_v57  ;;  %v5733_v57 = vld [vmem:[#allocation14 + $0x70] ss:$8 sps:$4 sm:$0xff]  }
 0xaa6   : > { %v5910_v62 = vpop.eup %5909 }
 0xaa7   : > { %v2097_v32 = vmul.f32 %v5910_v62, %v5902_v11  ;;  %v5735_v62 = vld [vmem:[#allocation14 + $0x74] ss:$8 sps:$4 sm:$0xff]  }
 0xaa8   : > { %v2200_v1 = vpop.permute.xlu1 %2199 }
 0xaa9   : > { %v2217_v3 = vsel %vm1227_vm1, %v1457_v21, %v2200_v1  ;;  %v4961_v21 = vld [vmem:[%s7604_s25] ss:$0 sm:$0xff]  ;;  %v5753_v1 = vld [vmem:[#allocation14 + $0x24] ss:$8 sps:$4 sm:$0xff]   ;;  %s7606_s25 = sld [smem:[#allocation48_spill]] }
 0xaaa   : > { %v5912_v63 = vpop.eup %5911  ;;  %v2223_v6 = vsel %vm2221_vm3, %v2217_v3, %v2206_v60  ;;  %v5755_v60 = vld [vmem:[#allocation14 + $0x10] ss:$8 sps:$4 sm:$0xff]   ;;  %v5757_v3 = vld [vmem:[#allocation14 + $0x14] ss:$8 sps:$4 sm:$0xff]  }
 0xaab   : > { %v5914_v28 = vpop.eup %5913  ;;  %v2098_v47 = vmul.f32 %v5912_v63, %v5906_v15  ;;  %v5738_v63 = vld [vmem:[#allocation14 + $0x64] ss:$8 sps:$4 sm:$0xff]  }
 0xaac   : > { %v2095_v24 = vmul.f32 %v5914_v28, %v5904_v13  ;;  %v2202_v56 = vpop.permute.xlu1 %2201  ;;  %v6005_v13 = vld [vmem:[%s6806_s10] sm:$0xff]  ;;  %s7608_s10 = sld [smem:[#allocation51_spill]] }
 0xaad   : > { %v2100_v50 = vpack.c.bf16 %v2098_v47, %v2097_v32  ;;  %v2220_v5 = vsel %vm1227_vm1, %v1458_v30, %v2202_v56  ;;  %v5736_v28 = vld [vmem:[#allocation14 + $0x60] ss:$8 sps:$4 sm:$0xff]   ;;  %v5741_v32 = vld [vmem:[#allocation14 + $0x54] ss:$8 sps:$4 sm:$0xff]   ;;  %v5739_v47 = vld [vmem:[#allocation14 + $0x50] ss:$8 sps:$4 sm:$0xff]  }
 0xaae   : > { %v5916_v49 = vpop.eup %5915  ;;  %v5751_v56 = vld [vmem:[#allocation14 + $0x20] ss:$8 sps:$4 sm:$0xff]  }
 0xaaf   : > { %v2096_v35 = vmul.f32 %v5916_v49, %v5908_v19  ;;  %5376 = vmatmul.mubr.msk.bf16.vlgmr.msra.gmra.mxu0 %vm1322_vm2, %v2100_v50 }
 0xab0   : > { %v2208_v2 = vpop.permute.xlu1 %2207 }
 0xab1   : > { %v2099_v36 = vpack.c.bf16 %v2096_v35, %v2095_v24  ;;  %v2225_v8 = vsel %vm2221_vm3, %v2220_v5, %v2208_v2  ;;  %v5754_v2 = vld [vmem:[#allocation13 + $0x20] sm:$0xff]  }
 0xab2   : > { %v5761_v5 = vld [vmem:[#allocation14 + $0x4] ss:$8 sps:$4 sm:$0xff]  }
 0xab3   : > { %5370 = vmatmul.mubr.msk.bf16.vlgmr.msra.gmra.mxu1 %vm1322_vm2, %v2099_v36 }
 0xab4   : > { %5380 = vmatpush3.bf16.msra.mxu1 %v5725_v37 }
 0xab5   : > { %5381 = vmatprep.subr.bf16.mxu1 %v5726_v38 }
 0xab8   : > { %5382 = vmatpush3.bf16.msra.mxu1 %v5726_v38 }
 0xab9   : > { %5383 = vmatprep.subr.bf16.mxu1 %v5727_v39 }
 0xabc   : > { %5384 = vmatpush3.bf16.msra.mxu1 %v5727_v39 }
 0xabd   : > { %5385 = vmatprep.subr.bf16.mxu1 %v5728_v40 }
 0xac0   : > { %5386 = vmatpush3.bf16.msra.mxu1 %v5728_v40 }
 0xac1   : > { %5387 = vmatprep.subr.bf16.mxu1 %v5729_v42 }
 0xac4   : > { %5388 = vmatpush3.bf16.msra.mxu1 %v5729_v42 }
 0xac5   : > { %5389 = vmatprep.subr.bf16.mxu1 %v5730_v43 }
 0xac8   : > { %5390 = vmatpush3.bf16.msra.mxu1 %v5730_v43 }
 0xac9   : > { %5391 = vmatprep.subr.bf16.mxu1 %v5731_v44 }
 0xacc   : > { %5392 = vmatpush3.bf16.msra.mxu1 %v5731_v44 }
 0xacd   : > { %5393 = vmatprep.subr.bf16.mxu1 %v5732_v46 }
 0xad0   : > { %5394 = vmatpush3.bf16.msra.mxu1 %v5732_v46 }
 0xad1   : > { %2660 = vmatprep.subr.bf16.mxu1 %v5735_v62 }
 0xb6f   : > { %v2188_v48 = vpop.f32.mrf.mxu0 }
 0xb71   : > { %v5377_v51 = vpop.f32.mrf.mxu0 }
 0xb73   : > { %v2141_v45 = vpop.f32.mrf.mxu1  ;;  %v2191_v52 = vpop.f32.mrf.mxu0 }
 0xb74   : > { %v2196_v53 = vpack.c.bf16 %v2191_v52, %v2188_v48  ;;  %v5742_v52 = vld [vmem:[#allocation13 + $0x38] sm:$0xff]  }
 0xb75   : > { %v5371_v55 = vpop.f32.mrf.mxu1  ;;  %v5378_v54 = vpop.f32.mrf.mxu0  ;;  %5399 = vmatprep.subr.bf16.mxu0 %v5742_v52 }
 0xb76   : > { %2213 = vrot.lane.b32.xlu1 %v2196_v53, %s6411_s23  ;;  %v5745_v53 = vld [vmem:[#allocation14 + $0x44] ss:$8 sps:$4 sm:$0xff]   ;;  %v5743_v55 = vld [vmem:[#allocation14 + $0x40] ss:$8 sps:$4 sm:$0xff]   ;;  %5400 = vmatpush3.bf16.msra.mxu0 %v5742_v52  ;;  %v5746_v54 = vld [vmem:[#allocation13 + $0x30] sm:$0xff]  }
 0xb77   : > { %v2144_v58 = vpop.f32.mrf.mxu1  ;;  %5401 = vmatprep.subr.bf16.mxu0 %v5746_v54 }
 0xb78   : > { %v2195_v59 = vpack.c.bf16 %v2144_v58, %v2141_v45  ;;  %v5749_v58 = vld [vmem:[#allocation14 + $0x34] ss:$8 sps:$4 sm:$0xff]  }
 0xb79   : > { %v5372_v10 = vpop.f32.mrf.mxu1 }
 0xb7a   : > { %2211 = vrot.lane.b32.xlu0 %v2195_v59, %s6411_s23  ;;  %v5747_v59 = vld [vmem:[#allocation14 + $0x30] ss:$8 sps:$4 sm:$0xff]   ;;  %5402 = vmatpush3.bf16.msra.mxu0 %v5746_v54  ;;  %v5750_v10 = vld [vmem:[#allocation13 + $0x28] sm:$0xff]  }
 0xb7b   : > { %5403 = vmatprep.subr.bf16.mxu0 %v5750_v10 }
 0xb7e   : > { %5404 = vmatpush3.bf16.msra.mxu0 %v5750_v10 }
 0xb7f   : > { %5405 = vmatprep.subr.bf16.mxu0 %v5754_v2 }
 0xb82   : > { %5406 = vmatpush3.bf16.msra.mxu0 %v5754_v2 }
 0xbe8   : > { %v2214_v4 = vpop.permute.xlu1 %2213 }
 0xbe9   : > { %v2231_v18 = vsel %vm2226_vm4, %v2225_v8, %v2214_v4  ;;  %v5758_v4 = vld [vmem:[#allocation13 + $0x18] sm:$0xff]   ;;  %v2427_v8 = vld [vmem:[%s6814_s0 + $0x8] sm:$0xff] }
 0xbea   : > { %5407 = vmatprep.subr.bf16.mxu0 %v5758_v4 }
 0xbeb   : > { %5408 = vmatpush3.bf16.msra.mxu0 %v5758_v4 }
 0xbec   : > { %v2212_v14 = vpop.permute.xlu0 %2211 }
 0xbed   : > { %v2228_v11 = vsel %vm2226_vm4, %v2223_v6, %v2212_v14  ;;  %v5759_v14 = vld [vmem:[#allocation14] ss:$8 sps:$4 sm:$0xff]  }
 0xbee   : > { %5395 = vmatprep.mubr.bf16.mxu1 %v2228_v11  ;;  %v2426_v6 = vld [vmem:[%s6814_s0] sm:$0xff]  ;;  %v5762_v11 = vld [vmem:[#allocation13 + $0x10] sm:$0xff]  }
 0xbef   : > { %5396 = vmatmul.mubr.bf16.vlgmr.msra.gmra.mxu1 %v2231_v18  ;;  %v2430_v18 = vpack.c.bf16 %v2427_v8, %v2426_v6  ;;  %5409 = vmatprep.subr.bf16.mxu0 %v5762_v11 }
 0xbf0   : > { %2692 = vmatprep.mubr.bf16.mxu1 %v6408_v0  ;;  %2661 = vmatpush1.bf16.msra.mxu1 %v5733_v57 }
 0xbf1   : > { %2662 = vmatprep.subr.bf16.mxu1 %v5738_v63  ;;  %5410 = vmatpush3.bf16.msra.mxu0 %v5762_v11  ;;  %v4970_v63 = vld [vmem:[%s7605_s3] ss:$0 sm:$0xff]  ;;  %s7607_s3 = sld [smem:[#allocation50_spill]] }
 0xbf4   : > { %2663 = vmatpush1.bf16.msra.mxu1 %v5736_v28 }
 0xbf5   : > { %2664 = vmatprep.subr.bf16.mxu1 %v5741_v32 }
 0xbf8   : > { %2665 = vmatpush1.bf16.msra.mxu1 %v5739_v47 }
 0xbf9   : > { %2666 = vmatprep.subr.bf16.mxu1 %v5745_v53 }
 0xbfc   : > { %2667 = vmatpush1.bf16.msra.mxu1 %v5743_v55 }
 0xbfd   : > { %2668 = vmatprep.subr.bf16.mxu1 %v5749_v58 }
 0xc00   : > { %2669 = vmatpush1.bf16.msra.mxu1 %v5747_v59 }
 0xc01   : > { %2670 = vmatprep.subr.bf16.mxu1 %v5753_v1 }
 0xc04   : > { %2671 = vmatpush1.bf16.msra.mxu1 %v5751_v56 }
 0xc05   : > { %2672 = vmatprep.subr.bf16.mxu1 %v5757_v3 }
 0xc08   : > { %2673 = vmatpush1.bf16.msra.mxu1 %v5755_v60 }
 0xc09   : > { %2674 = vmatprep.subr.bf16.mxu1 %v5761_v5 }
 0xc0c   : > { %2675 = vmatpush1.bf16.msra.mxu1 %v5759_v14 }
 0xc0d   : > { %5449 = vmatprep.subr.bf16.mxu1 %v6409_v31 }
 0xc0f   : > { %2693 = vmatmul.mubr.bf16.vlgmr.msra.gmra.mxu1 %v2430_v18 }
 0xc10   : > { %2702 = vmatprep.mubr.bf16.mxu1 %v6408_v0 }
 0xcaf   : > { %v5397_v20 = vpop.f32.mrf.mxu1 }
 0xcb0   : > { %v2347_v12 = vadd.f32 %v5397_v20, %v4961_v21  ;;  %v5763_v20 = vld [vmem:[#allocation13 + $0x8] sm:$0xff]  }
 0xcb1   : > { %v2338_v27 = vpop.f32.mrf.mxu1  ;;  %5411 = vmatprep.subr.bf16.mxu0 %v5763_v20 }
 0xcb2   : > { %v2339_v29 = vadd.f32 %v4961_v21, %v2338_v27  ;;  %v2355_v25 = vadd.f32 %v6007_v7, %v2347_v12  ;;  %5412 = vmatpush3.bf16.msra.mxu0 %v5763_v20  ;;  %v2428_v27 = vld [vmem:[%s6814_s0 + $0x10] sm:$0xff] }
 0xcb3   : > { %v5398_v30 = vpop.f32.mrf.mxu1 }
 0xcb4   : > { %v2353_v15 = vadd.f32 %v6005_v13, %v2339_v29  ;;  %v2350_v19 = vadd.f32 %v5398_v30, %v4961_v21  ;;  %v2429_v29 = vld [vmem:[%s6814_s0 + $0x18] sm:$0xff]  ;;  %s7609_s0 = sld [smem:[#allocation52_spill]] }
 0xcb5   : > { %v2341_v16 = vpop.f32.mrf.mxu1  ;;  %v2431_v30 = vpack.c.bf16 %v2429_v29, %v2428_v27 }
 0xcb6   : > { %v2342_v17 = vadd.f32 %v4961_v21, %v2341_v16  ;;  %2359 = vadd.xlane.f32.xlu0 %v2353_v15  ;;  %v2356_v26 = vadd.f32 %v6008_v9, %v2350_v19  ;;  %v5764_v21 = vld [vmem:[#allocation13] sm:$0xff]  }
 0xcb7   : > { %5413 = vmatprep.subr.bf16.mxu0 %v5764_v21  ;;  %2703 = vmatmul.mubr.bf16.gmra.mxu1 %v2431_v30 }
 0xcb8   : > { %v2354_v23 = vadd.f32 %v6006_v22, %v2342_v17  ;;  %5414 = vmatpush3.bf16.msra.mxu0 %v5764_v21  ;;  %5451 = vmatprep.mubr.msk.bf16.mxu1 %vm6410_vm0, %v6409_v31 }
 0xcb9   : > { %5419 = vmatprep.subr.bf16.mxu0 %v6409_v31 }
 0xcba   : > { %2361 = vadd.xlane.f32.xlu1 %v2354_v23  ;;  %2363 = vadd.xlane.f32.xlu0 %v2355_v25 }
 0xcbe   : > { %2365 = vadd.xlane.f32.xlu0 %v2356_v26 }
 0xccf   : > { %v2694_v53 = vpop.f32.mrf.mxu1 }
 0xcd1   : > { %v2696_v55 = vpop.f32.mrf.mxu1 }
 0xcd3   : > { %v2698_v59 = vpop.f32.mrf.mxu1 }
 0xcd5   : > { %v2700_v1 = vpop.f32.mrf.mxu1 }
 0xd3f   : > { %v2360_v49 = vpop.xlane.xlu0 %2359 }
 0xd40   : > { %v2368_v50 = vmul.f32 0.0078125, %v2360_v49 }
 0xd42   : > { %v7099_v24 = vsub.f32 %v2353_v15, %v2368_v50  ;;  %v4971_v50 = vld [vmem:[%s7508_s9] ss:$0 sm:$0xff] }
 0xd43   : > { %v2362_v35 = vpop.xlane.xlu1 %2361  ;;  %v2364_v36 = vpop.xlane.xlu0 %2363 }
 0xd44   : > { %v2369_v37 = vmul.f32 0.0078125, %v2362_v35  ;;  %v2370_v38 = vmul.f32 0.0078125, %v2364_v36  ;;  %v2376_v39 = vmul.f32 %v7099_v24, %v7099_v24 }
 0xd46   : > { %v7103_v40 = vsub.f32 %v2354_v23, %v2369_v37  ;;  %v7105_v42 = vsub.f32 %v2355_v25, %v2370_v38  ;;  %2380 = vadd.xlane.f32.xlu0 %v2376_v39 }
 0xd47   : > { %v2366_v43 = vpop.xlane.xlu0 %2365 }
 0xd48   : > { %v2371_v44 = vmul.f32 0.0078125, %v2366_v43  ;;  %v2377_v46 = vmul.f32 %v7103_v40, %v7103_v40  ;;  %v2378_v48 = vmul.f32 %v7105_v42, %v7105_v42 }
 0xd4a   : > { %v7111_v51 = vsub.f32 %v2356_v26, %v2371_v44  ;;  %2382 = vadd.xlane.f32.xlu1 %v2377_v46  ;;  %2384 = vadd.xlane.f32.xlu0 %v2378_v48 }
 0xd4c   : > { %v2379_v45 = vmul.f32 %v7111_v51, %v7111_v51 }
 0xd4e   : > { %2386 = vadd.xlane.f32.xlu1 %v2379_v45 }
 0xd77   : > { %v2704_v4 = vpop.f32.mrf.mxu1 }
 0xd79   : > { %v2706_v5 = vpop.f32.mrf.mxu1 }
 0xd7b   : > { %v2708_v6 = vpop.f32.mrf.mxu1 }
 0xd7d   : > { %v2710_v8 = vpop.f32.mrf.mxu1 }
 0xdcf   : > { %v2381_v12 = vpop.xlane.xlu0 %2380 }
 0xdd0   : > { %v2388_v13 = vmul.f32 0.0078125, %v2381_v12 }
 0xdd2   : > { %v2392_v15 = vadd.f32 1e-05, %v2388_v13  ;;  %v4972_v13 = vld [vmem:[%s7510_s11] ss:$0 sm:$0xff] }
 0xdd3   : > { %v2383_v16 = vpop.xlane.xlu1 %2382  ;;  %v2385_v17 = vpop.xlane.xlu0 %2384 }
 0xdd4   : > { %5917 = vrsqrt.f32 %v2392_v15  ;;  %v2389_v19 = vmul.f32 0.0078125, %v2383_v16  ;;  %v2390_v22 = vmul.f32 0.0078125, %v2385_v17 }
 0xdd6   : > { %v2393_v23 = vadd.f32 1e-05, %v2389_v19  ;;  %v2394_v7 = vadd.f32 1e-05, %v2390_v22 }
 0xdd7   : > { %v2387_v25 = vpop.xlane.xlu1 %2386 }
 0xdd8   : > { %5919 = vrsqrt.f32 %v2393_v23  ;;  %v2391_v9 = vmul.f32 0.0078125, %v2387_v25 }
 0xdd9   : > { %5921 = vrsqrt.f32 %v2394_v7 }
 0xdda   : > { %v2395_v26 = vadd.f32 1e-05, %v2391_v9  ;;  %v7184_v9 = vld [vmem:[#allocation7] sm:$0xff] }
 0xddc   : > { %5923 = vrsqrt.f32 %v2395_v26 }
 0xde1   : > { %v5918_v57 = vpop.eup %5917 }
 0xde2   : > { %v2400_v62 = vmul.f32 %v5918_v57, %v7099_v24 }
 0xde4   : > { %v2410_v49 = vmul.f32 %v4970_v63, %v2400_v62 }
 0xde5   : > { %v5920_v28 = vpop.eup %5919 }
 0xde6   : > { %v5922_v32 = vpop.eup %5921  ;;  %v2401_v47 = vmul.f32 %v5920_v28, %v7103_v40  ;;  %v7133_v38 = vadd.f32 %v4971_v50, %v2410_v49 }
 0xde7   : > { %v2402_v35 = vmul.f32 %v5922_v32, %v7105_v42 }
 0xde8   : > { %v2411_v36 = vmul.f32 %v4970_v63, %v2401_v47 }
 0xde9   : > { %v5924_v37 = vpop.eup %5923  ;;  %v2412_v43 = vmul.f32 %v4970_v63, %v2402_v35 }
 0xdea   : > { %v7135_v24 = vadd.f32 %v4971_v50, %v2411_v36  ;;  %v2403_v39 = vmul.f32 %v5924_v37, %v7111_v51  ;;  %v2568_v51 = vld [vmem:[%s7512_s13] sm:$0x3] }
 0xdeb   : > { %v7140_v46 = vadd.f32 %v4971_v50, %v2412_v43  ;;  %v2573_v45 = vrot.slane %v2568_v51, %v6862_v41  ;;  %v2577_v52 = vrot.slane %v2568_v51, %v6855_v34 }
 0xdec   : > { %v2424_v44 = vpack.c.bf16 %v7135_v24, %v7133_v38  ;;  %v2413_v40 = vmul.f32 %v4970_v63, %v2403_v39  ;;  %v7187_v63 = vld [vmem:[#allocation7 + $0x8] sm:$0xff] }
 0xded   : > { %v2695_v54 = vadd.f32 %v2694_v53, %v2573_v45  ;;  %v2697_v58 = vadd.f32 %v2696_v55, %v2577_v52  ;;  %v2699_v10 = vadd.f32 %v2698_v59, %v2573_v45  ;;  %v2701_v2 = vadd.f32 %v2700_v1, %v2577_v52 }
 0xdee   : > { %5415 = vmatprep.mubr.bf16.mxu0 %v2424_v44  ;;  %v7142_v48 = vadd.f32 %v4971_v50, %v2413_v40  ;;  %v2707_v14 = vadd.f32 %v2706_v5, %v2577_v52  ;;  %v2711_v11 = vadd.f32 %v2710_v8, %v2577_v52  ;;  %v2705_v21 = vadd.f32 %v2704_v4, %v2573_v45 }
 0xdef   : > { %v7153_v56 = vpack.c.bf16 %v2699_v10, %v2695_v54  ;;  %v7155_v60 = vpack.c.bf16 %v2701_v2, %v2697_v58  ;;  %v2709_v27 = vadd.f32 %v2708_v6, %v2573_v45 }
 0xdf0   : > { %v2425_v42 = vpack.c.bf16 %v7142_v48, %v7140_v46  ;;  %v7160_v18 = vpack.c.bf16 %v2711_v11, %v2707_v14 }
 0xdf1   : > { %v2723_v3 = vsel %vm1227_vm1, %v7153_v56, 0  ;;  %v7162_v12 = vpack.c.bf16 %v2709_v27, %v2705_v21 }
 0xdf2   : > { %5416 = vmatmul.mubr.bf16.vlgmr.msra.gmra.mxu0 %v2425_v42 }
 0xdf3   : > { %5421 = vmatprep.mubr.msk.bf16.mxu0 %vm6410_vm0, %v6409_v31  ;;  %5420 = vmatpush3.bf16.xpose.msra.mxu0 %v2723_v3  ;;  %v2770_v22 = vsel %vm1227_vm1, %v7162_v12, 0 }
 0xdf4   : > { %5425 = vmatprep.subr.bf16.mxu0 %v6409_v31 }
 0xeb2   : > { %v5417_v20 = vpop.f32.mrf.mxu0 }
 0xeb3   : > { %v2546_v7 = vadd.f32 %v5417_v20, %v4972_v13 }
 0xeb4   : > { %v2537_v29 = vpop.f32.mrf.mxu0 }
 0xeb5   : > { %v2538_v16 = vadd.f32 %v4972_v13, %v2537_v29 }
 0xeb6   : > { %v5418_v30 = vpop.f32.mrf.mxu0 }
 0xeb7   : > { %v2549_v23 = vadd.f32 %v5418_v30, %v4972_v13 }
 0xeb8   : > { %v2540_v15 = vpop.f32.mrf.mxu0 }
 0xeb9   : > { %v2541_v17 = vadd.f32 %v4972_v13, %v2540_v15  ;;  %v7176_v25 = vpack.c.bf16 %v2549_v23, %v2546_v7 }
 0xebb   : > { %v7167_v19 = vpack.c.bf16 %v2541_v17, %v2538_v16 }
 0xebd   : > { %5422 = vmatmul.mubr.msk.bf16.vlgmr.msra.gmra.mxu0 %vm1227_vm1, %v7167_v19 }
 0xebe   : > { %5426 = vmatpush3.bf16.xpose.msra.mxu0 %v2770_v22  ;;  %5427 = vmatprep.mubr.msk.bf16.mxu0 %vm6410_vm0, %v6409_v31 }
 0xebf   : > { %5431 = vmatprep.subr.bf16.mxu0 %v6409_v31 }
 0xec5   : > { %5428 = vmatmul.mubr.msk.bf16.vlgmr.msra.gmra.mxu0 %vm1227_vm1, %v7176_v25 }
 0xec6   : > { %5432 = vmatpush3.bf16.msra.mxu0 %v7155_v60  ;;  %5433 = vmatprep.mubr.msk.bf16.mxu0 %vm6410_vm0, %v6409_v31 }
 0xec7   : > { %5437 = vmatprep.subr.bf16.mxu0 %v6409_v31 }
 0xf7d   : > { %v2759_v26 = vpop.f32.mrf.mxu0 }
 0xf7e   : > { %v2760_v57 = vadd.f32 %v2759_v26, %v7184_v9 }
 0xf7f   : > { %v5423_v62 = vpop.f32.mrf.mxu0 }
 0xf80   : > { %v2813_v28 = vsel %vm1322_vm2, %v2760_v57, -inf }
 0xf81   : > { %2814 = vmax.xlane.f32.xlu0 %v2813_v28  ;;  %v2762_v32 = vpop.f32.mrf.mxu0 }
 0xf82   : > { %v2763_v47 = vadd.f32 %v2762_v32, %v7187_v63 }
 0xf83   : > { %v5424_v49 = vpop.f32.mrf.mxu0 }
 0xf84   : > { %v2816_v50 = vsel %vm1322_vm2, %v2763_v47, -inf }
 0xf85   : > { %2817 = vmax.xlane.f32.xlu1 %v2816_v50  ;;  %v2806_v35 = vpop.f32.mrf.mxu0 }
 0xf86   : > { %v2807_v36 = vadd.f32 %v2806_v35, %v7184_v9 }
 0xf87   : > { %v5429_v37 = vpop.f32.mrf.mxu0 }
 0xf88   : > { %v2819_v39 = vsel %vm1322_vm2, %v2807_v36, -inf }
 0xf89   : > { %2820 = vmax.xlane.f32.xlu0 %v2819_v39  ;;  %v2809_v43 = vpop.f32.mrf.mxu0 }
 0xf8a   : > { %v2810_v44 = vadd.f32 %v2809_v43, %v7187_v63 }
 0xf8b   : > { %v5430_v40 = vpop.f32.mrf.mxu0 }
 0xf8c   : > { %v2822_v42 = vsel %vm1322_vm2, %v2810_v44, -inf }
 0xf8d   : > { %2823 = vmax.xlane.f32.xlu1 %v2822_v42 }
0x100a   : > { %v2815_v51 = vpop.xlane.xlu0 %2814 }
0x100b   : > { %v2825_v45 = vsub.f32 %v2760_v57, %v2815_v51 }
0x100d   : > { %v2829_v52 = vmul.f32 1.442695, %v2825_v45 }
0x100e   : > { %v2818_v53 = vpop.xlane.xlu1 %2817 }
0x100f   : > { %5925 = vpow2.f32 %v2829_v52  ;;  %v2826_v55 = vsub.f32 %v2763_v47, %v2818_v53 }
0x1011   : > { %v2831_v54 = vmul.f32 1.442695, %v2826_v55 }
0x1012   : > { %v2821_v58 = vpop.xlane.xlu0 %2820 }
0x1013   : > { %5927 = vpow2.f32 %v2831_v54  ;;  %v2827_v59 = vsub.f32 %v2807_v36, %v2821_v58 }
0x1015   : > { %v2833_v10 = vmul.f32 1.442695, %v2827_v59 }
0x1016   : > { %v2824_v6 = vpop.xlane.xlu1 %2823 }
0x1017   : > { %5929 = vpow2.f32 %v2833_v10  ;;  %v2828_v8 = vsub.f32 %v2810_v44, %v2824_v6 }
0x1019   : > { %v2835_v11 = vmul.f32 1.442695, %v2828_v8 }
0x101b   : > { %5931 = vpow2.f32 %v2835_v11 }
0x101c   : > { %v5926_v1 = vpop.eup %5925 }
0x101d   : > { %v2837_v2 = vsel %vm1322_vm2, %v5926_v1, 0.0 }
0x101e   : > { %2838 = vadd.xlane.f32.xlu0 %v2837_v2 }
0x1020   : > { %v5928_v3 = vpop.eup %5927 }
0x1021   : > { %v2840_v4 = vsel %vm1322_vm2, %v5928_v3, 0.0 }
0x1022   : > { %2841 = vadd.xlane.f32.xlu1 %v2840_v4 }
0x1024   : > { %v5930_v5 = vpop.eup %5929 }
0x1025   : > { %v2843_v14 = vsel %vm1322_vm2, %v5930_v5, 0.0 }
0x1026   : > { %2844 = vadd.xlane.f32.xlu0 %v2843_v14 }
0x1028   : > { %v5932_v20 = vpop.eup %5931 }
0x1029   : > { %v2846_v21 = vsel %vm1322_vm2, %v5932_v20, 0.0 }
0x1033   : > { %3006 = vrot.lane.b32.xlu1 %v7162_v12, %s6411_s23 }
0x103c   : > { %2953 = vrot.lane.b32.xlu0 %v7153_v56, %s6411_s23 }
0x1057   : > { %2847 = vadd.xlane.f32.xlu1 %v2846_v21 }
0x1068   : > { %2950 = vrot.lane.b32.xlu1 %v7167_v19, %s6411_s23 }
0x106c   : > { %3003 = vrot.lane.b32.xlu1 %v7176_v25, %s6411_s23 }
0x10a7   : > { %v2839_v27 = vpop.xlane.xlu0 %2838 }
0x10a8   : > { %5933 = vrcp.f32 %v2839_v27 }
0x10ab   : > { %v2842_v29 = vpop.xlane.xlu1 %2841 }
0x10ac   : > { %5935 = vrcp.f32 %v2842_v29 }
0x10af   : > { %v3007_v30 = vpop.permute.xlu1 %3006  ;;  %v2845_v7 = vpop.xlane.xlu0 %2844 }
0x10b0   : > { %v3012_v13 = vsel %vm1227_vm1, %v3007_v30, 0  ;;  %5937 = vrcp.f32 %v2845_v7 }
0x10b1   : > { %5450 = vmatpush3.bf16.xpose.msra.mxu1 %v3012_v13 }
0x10b2   : > { %5461 = vmatprep.subr.bf16.mxu1 %v6409_v31 }
0x10b3   : > { %v2954_v50 = vpop.permute.xlu0 %2953 }
0x10b4   : > { %v2959_v36 = vsel %vm1227_vm1, %v2954_v50, 0 }
0x10b5   : > { %v5934_v15 = vpop.eup %5933 }
0x10b6   : > { %v2853_v17 = vmul.f32 %v5934_v15, %v5926_v1 }
0x10b9   : > { %v5936_v16 = vpop.eup %5935 }
0x10ba   : > { %v2854_v22 = vmul.f32 %v5936_v16, %v5928_v3 }
0x10bc   : > { %v2857_v23 = vpack.c.bf16 %v2854_v22, %v2853_v17 }
0x10bd   : > { %v5938_v28 = vpop.eup %5937 }
0x10be   : > { %5434 = vmatmul.mubr.msk.bf16.vlgmr.msra.gmra.mxu0 %vm1322_vm2, %v2857_v23  ;;  %v2855_v47 = vmul.f32 %v5938_v28, %v5930_v5 }
0x10bf   : > { %5438 = vmatpush3.bf16.msra.mxu0 %v7160_v18  ;;  %5439 = vmatprep.mubr.msk.bf16.mxu0 %vm6410_vm0, %v6409_v31 }
0x10c0   : > { %5443 = vmatprep.subr.bf16.mxu0 %v6409_v31 }
0x10e0   : > { %v2848_v26 = vpop.xlane.xlu1 %2847 }
0x10e1   : > { %5939 = vrcp.f32 %v2848_v26 }
0x10e4   : > { %v2951_v57 = vpop.permute.xlu1 %2950 }
0x10e8   : > { %v3004_v62 = vpop.permute.xlu1 %3003 }
0x10e9   : > { %5452 = vmatmul.mubr.msk.bf16.vlgmr.msra.gmra.mxu1 %vm1227_vm1, %v3004_v62 }
0x10ea   : > { %5463 = vmatprep.mubr.msk.bf16.mxu1 %vm6410_vm0, %v6409_v31 }
0x10ee   : > { %v5940_v32 = vpop.eup %5939 }
0x10ef   : > { %v2856_v49 = vmul.f32 %v5940_v32, %v5932_v20 }
0x10f1   : > { %v2858_v35 = vpack.c.bf16 %v2856_v49, %v2855_v47 }
0x10f3   : > { %5440 = vmatmul.mubr.msk.bf16.vlgmr.msra.gmra.mxu0 %vm1322_vm2, %v2858_v35 }
0x10f4   : > { %5444 = vmatpush3.bf16.xpose.msra.mxu0 %v2959_v36  ;;  %5445 = vmatprep.mubr.msk.bf16.mxu0 %vm6410_vm0, %v6409_v31 }
0x10f5   : > { %5455 = vmatprep.subr.bf16.mxu0 %v6409_v31 }
0x10fb   : > { %5446 = vmatmul.mubr.msk.bf16.vlgmr.msra.gmra.mxu0 %vm1227_vm1, %v2951_v57 }
0x10fc   : > { %5457 = vmatprep.mubr.msk.bf16.mxu0 %vm6410_vm0, %v6409_v31 }
0x117e   : > { %v7226_v37 = vpop.f32.mrf.mxu0 }
0x1180   : > { %v5435_v39 = vpop.f32.mrf.mxu0 }
0x1182   : > { %v7228_v43 = vpop.f32.mrf.mxu0 }
0x1183   : > { %v2947_v44 = vpack.c.bf16 %v7228_v43, %v7226_v37  ;;  %v5013_v43 = vld [vmem:[%s7514_s15] ss:$0 sm:$0xff] }
0x1184   : > { %v5436_v40 = vpop.f32.mrf.mxu0 }
0x11a9   : > { %v3048_v42 = vpop.f32.mrf.mxu1 }
0x11aa   : > { %v3049_v3 = vadd.f32 %v3048_v42, %v7184_v9 }
0x11ab   : > { %v5453_v51 = vpop.f32.mrf.mxu1 }
0x11ac   : > { %v3061_v11 = vsel %vm1322_vm2, %v3049_v3, -inf }
0x11ad   : > { %v3051_v45 = vpop.f32.mrf.mxu1 }
0x11ae   : > { %v3052_v8 = vadd.f32 %v3051_v45, %v7187_v63 }
0x11af   : > { %v5454_v52 = vpop.f32.mrf.mxu1 }
0x11b0   : > { %v3064_v21 = vsel %vm1322_vm2, %v3052_v8, -inf }
0x11b3   : > { %v7232_v53 = vpop.f32.mrf.mxu0 }
0x11b5   : > { %v5441_v55 = vpop.f32.mrf.mxu0 }
0x11b7   : > { %v7234_v54 = vpop.f32.mrf.mxu0 }
0x11b8   : > { %v2948_v58 = vpack.c.bf16 %v7234_v54, %v7232_v53 }
0x11b9   : > { %v5442_v59 = vpop.f32.mrf.mxu0 }
0x11bb   : > { %v2995_v10 = vpop.f32.mrf.mxu0 }
0x11bc   : > { %v2996_v1 = vadd.f32 %v2995_v10, %v7184_v9 }
0x11bd   : > { %v5447_v2 = vpop.f32.mrf.mxu0 }
0x11be   : > { %v3055_v4 = vsel %vm1322_vm2, %v2996_v1, -inf }
0x11bf   : > { %3056 = vmax.xlane.f32.xlu0 %v3055_v4  ;;  %v2998_v5 = vpop.f32.mrf.mxu0 }
0x11c0   : > { %v2999_v14 = vadd.f32 %v2998_v5, %v7187_v63 }
0x11c1   : > { %v5448_v6 = vpop.f32.mrf.mxu0 }
0x11c2   : > { %v3058_v20 = vsel %vm1322_vm2, %v2999_v14, -inf }
0x11c3   : > { %3062 = vmax.xlane.f32.xlu0 %v3061_v11  ;;  %3059 = vmax.xlane.f32.xlu1 %v3058_v20 }
0x11c7   : > { %3065 = vmax.xlane.f32.xlu0 %v3064_v21 }
0x1248   : > { %v3057_v27 = vpop.xlane.xlu0 %3056 }
0x1249   : > { %v3067_v29 = vsub.f32 %v2996_v1, %v3057_v27 }
0x124b   : > { %v3071_v15 = vmul.f32 1.442695, %v3067_v29 }
0x124c   : > { %v3063_v30 = vpop.xlane.xlu0 %3062  ;;  %v3060_v47 = vpop.xlane.xlu1 %3059 }
0x124d   : > { %v3069_v13 = vsub.f32 %v3049_v3, %v3063_v30  ;;  %v3068_v49 = vsub.f32 %v2999_v14, %v3060_v47 }
0x124f   : > { %v3075_v16 = vmul.f32 1.442695, %v3069_v13  ;;  %v3073_v50 = vmul.f32 1.442695, %v3068_v49 }
0x1250   : > { %v3066_v17 = vpop.xlane.xlu0 %3065 }
0x1251   : > { %5941 = vpow2.f32 %v3075_v16  ;;  %v3070_v22 = vsub.f32 %v3052_v8, %v3066_v17 }
0x1252   : > { %5943 = vpow2.f32 %v3071_v15 }
0x1253   : > { %v3077_v23 = vmul.f32 1.442695, %v3070_v22 }
0x1255   : > { %5945 = vpow2.f32 %v3077_v23 }
0x1256   : > { %5947 = vpow2.f32 %v3073_v50 }
0x125e   : > { %v5942_v7 = vpop.eup %5941 }
0x125f   : > { %v3085_v26 = vsel %vm1322_vm2, %v5942_v7, 0.0  ;;  %v5944_v57 = vpop.eup %5943 }
0x1260   : > { %3086 = vadd.xlane.f32.xlu0 %v3085_v26  ;;  %v3079_v28 = vsel %vm1322_vm2, %v5944_v57, 0.0 }
0x1262   : > { %v5946_v62 = vpop.eup %5945 }
0x1263   : > { %v3088_v32 = vsel %vm1322_vm2, %v5946_v62, 0.0  ;;  %v5948_v35 = vpop.eup %5947 }
0x1264   : > { %3080 = vadd.xlane.f32.xlu0 %v3079_v28  ;;  %3089 = vadd.xlane.f32.xlu1 %v3088_v32  ;;  %v3082_v36 = vsel %vm1322_vm2, %v5948_v35, 0.0 }
0x1275   : > { %3150 = vrot.lane.b32.xlu1 %v7160_v18, %s6411_s23 }
0x1279   : > { %3201 = vrot.lane.b32.xlu1 %v7153_v56, %s6412_s24 }
0x127a   : > { %3102 = vrot.lane.b32.xlu0 %v7155_v60, %s6411_s23 }
0x127e   : > { %3199 = vrot.lane.b32.xlu0 %v7167_v19, %s6412_s24 }
0x129d   : > { %3083 = vadd.xlane.f32.xlu1 %v3082_v36 }
0x12ae   : > { %3252 = vrot.lane.b32.xlu1 %v7162_v12, %s6412_s24 }
0x12b2   : > { %3250 = vrot.lane.b32.xlu1 %v7176_v25, %s6412_s24 }
0x12e9   : > { %v3087_v39 = vpop.xlane.xlu0 %3086 }
0x12ea   : > { %5949 = vrcp.f32 %v3087_v39 }
0x12ed   : > { %v3081_v40 = vpop.xlane.xlu0 %3080  ;;  %v3090_v42 = vpop.xlane.xlu1 %3089 }
0x12ee   : > { %5951 = vrcp.f32 %v3090_v42 }
0x12ef   : > { %5953 = vrcp.f32 %v3081_v40 }
0x12f1   : > { %v3103_v51 = vpop.permute.xlu0 %3102  ;;  %v3151_v45 = vpop.permute.xlu1 %3150 }
0x12f2   : > { %5456 = vmatpush3.bf16.msra.mxu0 %v3103_v51  ;;  %5462 = vmatpush3.bf16.msra.mxu1 %v3151_v45 }
0x12f3   : > { %5473 = vmatprep.subr.bf16.mxu1 %v6409_v31  ;;  %5467 = vmatprep.subr.bf16.mxu0 %v6409_v31 }
0x12f5   : > { %v3202_v2 = vpop.permute.xlu1 %3201  ;;  %v3200_v29 = vpop.permute.xlu0 %3199 }
0x12f6   : > { %v3207_v27 = vsel %vm1227_vm1, %v3202_v2, 0 }
0x12f7   : > { %v5950_v52 = vpop.eup %5949 }
0x12f8   : > { %v3097_v59 = vmul.f32 %v5950_v52, %v5942_v7 }
0x12fb   : > { %v5952_v55 = vpop.eup %5951 }
0x12fc   : > { %v3098_v10 = vmul.f32 %v5952_v55, %v5946_v62  ;;  %v5954_v14 = vpop.eup %5953 }
0x12fd   : > { %v3095_v11 = vmul.f32 %v5954_v14, %v5944_v57 }
0x12fe   : > { %v3100_v1 = vpack.c.bf16 %v3098_v10, %v3097_v59 }
0x1300   : > { %5464 = vmatmul.mubr.msk.bf16.vlgmr.msra.gmra.mxu1 %vm1322_vm2, %v3100_v1 }
0x1301   : > { %5475 = vmatprep.mubr.msk.bf16.mxu1 %vm6410_vm0, %v6409_v31 }
0x1326   : > { %v3084_v3 = vpop.xlane.xlu1 %3083 }
0x1327   : > { %5955 = vrcp.f32 %v3084_v3 }
0x132a   : > { %v3253_v4 = vpop.permute.xlu1 %3252 }
0x132b   : > { %v3258_v5 = vsel %vm1227_vm1, %v3253_v4, 0 }
0x132c   : > { %5474 = vmatpush3.bf16.xpose.msra.mxu1 %v3258_v5 }
0x132d   : > { %5485 = vmatprep.subr.bf16.mxu1 %v6409_v31 }
0x132e   : > { %v3251_v6 = vpop.permute.xlu1 %3250 }
0x1333   : > { %5476 = vmatmul.mubr.msk.bf16.vlgmr.msra.gmra.mxu1 %vm1227_vm1, %v3251_v6 }
0x1334   : > { %v5956_v8 = vpop.eup %5955  ;;  %5487 = vmatprep.mubr.msk.bf16.mxu1 %vm6410_vm0, %v6409_v31 }
0x1335   : > { %v3096_v20 = vmul.f32 %v5956_v8, %v5948_v35 }
0x1337   : > { %v3099_v21 = vpack.c.bf16 %v3096_v20, %v3095_v11 }
0x1339   : > { %5458 = vmatmul.mubr.msk.bf16.vlgmr.msra.gmra.mxu0 %vm1322_vm2, %v3099_v21 }
0x133a   : > { %5468 = vmatpush3.bf16.xpose.msra.mxu0 %v3207_v27  ;;  %5469 = vmatprep.mubr.msk.bf16.mxu0 %vm6410_vm0, %v6409_v31 }
0x133b   : > { %5479 = vmatprep.subr.bf16.mxu0 %v6409_v31 }
0x1341   : > { %5470 = vmatmul.mubr.msk.bf16.vlgmr.msra.gmra.mxu0 %vm1227_vm1, %v3200_v29 }
0x1342   : > { %5481 = vmatprep.mubr.msk.bf16.mxu0 %vm6410_vm0, %v6409_v31 }
0x13c0   : > { %v7280_v30 = vpop.f32.mrf.mxu1 }
0x13c2   : > { %v5465_v13 = vpop.f32.mrf.mxu1 }
0x13c4   : > { %v7282_v15 = vpop.f32.mrf.mxu1 }
0x13c5   : > { %v3198_v16 = vpack.c.bf16 %v7282_v15, %v7280_v30 }
0x13c6   : > { %v5466_v17 = vpop.f32.mrf.mxu1 }
0x13f3   : > { %v3294_v22 = vpop.f32.mrf.mxu1 }
0x13f4   : > { %v3295_v36 = vadd.f32 %v3294_v22, %v7184_v9 }
0x13f5   : > { %v5477_v23 = vpop.f32.mrf.mxu1 }
0x13f6   : > { %v3307_v52 = vsel %vm1322_vm2, %v3295_v36, -inf }
0x13f7   : > { %v3297_v7 = vpop.f32.mrf.mxu1 }
0x13f8   : > { %v3298_v45 = vadd.f32 %v3297_v7, %v7187_v63 }
0x13f9   : > { %v7286_v26 = vpop.f32.mrf.mxu0  ;;  %v5478_v57 = vpop.f32.mrf.mxu1 }
0x13fa   : > { %v3310_v59 = vsel %vm1322_vm2, %v3298_v45, -inf }
0x13fb   : > { %v5459_v62 = vpop.f32.mrf.mxu0 }
0x13fd   : > { %v7288_v28 = vpop.f32.mrf.mxu0 }
0x13fe   : > { %v3197_v32 = vpack.c.bf16 %v7288_v28, %v7286_v26 }
0x13ff   : > { %v5460_v47 = vpop.f32.mrf.mxu0 }
0x1401   : > { %v3243_v49 = vpop.f32.mrf.mxu0 }
0x1402   : > { %v3244_v50 = vadd.f32 %v3243_v49, %v7184_v9 }
0x1403   : > { %v5471_v35 = vpop.f32.mrf.mxu0 }
0x1404   : > { %v3301_v39 = vsel %vm1322_vm2, %v3244_v50, -inf }
0x1405   : > { %3302 = vmax.xlane.f32.xlu0 %v3301_v39  ;;  %v3246_v40 = vpop.f32.mrf.mxu0 }
0x1406   : > { %v3247_v42 = vadd.f32 %v3246_v40, %v7187_v63 }
0x1407   : > { %v5472_v51 = vpop.f32.mrf.mxu0 }
0x1408   : > { %v3304_v55 = vsel %vm1322_vm2, %v3247_v42, -inf }
0x1409   : > { %3308 = vmax.xlane.f32.xlu0 %v3307_v52  ;;  %3305 = vmax.xlane.f32.xlu1 %v3304_v55 }
0x140d   : > { %3311 = vmax.xlane.f32.xlu0 %v3310_v59 }
0x148e   : > { %v3303_v10 = vpop.xlane.xlu0 %3302 }
0x148f   : > { %v3313_v1 = vsub.f32 %v3244_v50, %v3303_v10 }
0x1491   : > { %v3317_v4 = vmul.f32 1.442695, %v3313_v1 }
0x1492   : > { %v3309_v2 = vpop.xlane.xlu0 %3308  ;;  %v3306_v17 = vpop.xlane.xlu1 %3305 }
0x1493   : > { %v3315_v3 = vsub.f32 %v3295_v36, %v3309_v2  ;;  %v3314_v22 = vsub.f32 %v3247_v42, %v3306_v17 }
0x1495   : > { %v3321_v5 = vmul.f32 1.442695, %v3315_v3  ;;  %v3319_v23 = vmul.f32 1.442695, %v3314_v22 }
0x1496   : > { %v3312_v14 = vpop.xlane.xlu0 %3311 }
0x1497   : > { %5957 = vpow2.f32 %v3321_v5  ;;  %v3316_v6 = vsub.f32 %v3298_v45, %v3312_v14 }
0x1498   : > { %5959 = vpow2.f32 %v3317_v4 }
0x1499   : > { %v3323_v8 = vmul.f32 1.442695, %v3316_v6 }
0x149b   : > { %5961 = vpow2.f32 %v3323_v8 }
0x149c   : > { %5963 = vpow2.f32 %v3319_v23 }
0x14a4   : > { %v5958_v11 = vpop.eup %5957 }
0x14a5   : > { %v3331_v20 = vsel %vm1322_vm2, %v5958_v11, 0.0  ;;  %v5960_v21 = vpop.eup %5959 }
0x14a6   : > { %3332 = vadd.xlane.f32.xlu0 %v3331_v20  ;;  %v3325_v29 = vsel %vm1322_vm2, %v5960_v21, 0.0 }
0x14a8   : > { %v5962_v27 = vpop.eup %5961 }
0x14a9   : > { %v3334_v13 = vsel %vm1322_vm2, %v5962_v27, 0.0  ;;  %v5964_v7 = vpop.eup %5963 }
0x14aa   : > { %3326 = vadd.xlane.f32.xlu0 %v3325_v29  ;;  %3335 = vadd.xlane.f32.xlu1 %v3334_v13  ;;  %v3328_v57 = vsel %vm1322_vm2, %v5964_v7, 0.0 }
0x14bb   : > { %3394 = vrot.lane.b32.xlu1 %v7160_v18, %s6412_s24 }
0x14bf   : > { %3445 = vrot.lane.b32.xlu1 %v7153_v56, %s6413_s14 }
0x14c0   : > { %3347 = vrot.lane.b32.xlu0 %v7155_v60, %s6412_s24 }
0x14c4   : > { %3443 = vrot.lane.b32.xlu0 %v7167_v19, %s6413_s14 }
0x14e3   : > { %3329 = vadd.xlane.f32.xlu1 %v3328_v57 }
0x14f4   : > { %3496 = vrot.lane.b32.xlu1 %v7162_v12, %s6413_s14 }
0x14f8   : > { %3494 = vrot.lane.b32.xlu1 %v7176_v25, %s6413_s14 }
0x152f   : > { %v3333_v56 = vpop.xlane.xlu0 %3332 }
0x1530   : > { %5965 = vrcp.f32 %v3333_v56 }
0x1533   : > { %v3327_v62 = vpop.xlane.xlu0 %3326  ;;  %v3336_v47 = vpop.xlane.xlu1 %3335 }
0x1534   : > { %5967 = vrcp.f32 %v3336_v47 }
0x1535   : > { %5969 = vrcp.f32 %v3327_v62 }
0x1537   : > { %v3348_v19 = vpop.permute.xlu0 %3347  ;;  %v3395_v49 = vpop.permute.xlu1 %3394 }
0x1538   : > { %5480 = vmatpush3.bf16.msra.mxu0 %v3348_v19  ;;  %5486 = vmatpush3.bf16.msra.mxu1 %v3395_v49 }
0x1539   : > { %5497 = vmatprep.subr.bf16.mxu1 %v6409_v31  ;;  %5491 = vmatprep.subr.bf16.mxu0 %v6409_v31 }
0x153b   : > { %v3446_v25 = vpop.permute.xlu1 %3445  ;;  %v3444_v3 = vpop.permute.xlu0 %3443 }
0x153c   : > { %v3451_v2 = vsel %vm1227_vm1, %v3446_v25, 0 }
0x153d   : > { %v5966_v50 = vpop.eup %5965 }
0x153e   : > { %v3343_v36 = vmul.f32 %v5966_v50, %v5958_v11 }
0x1541   : > { %v5968_v35 = vpop.eup %5967 }
0x1542   : > { %v3344_v12 = vmul.f32 %v5968_v35, %v5962_v27  ;;  %v5970_v45 = vpop.eup %5969 }
0x1543   : > { %v3341_v59 = vmul.f32 %v5970_v45, %v5960_v21 }
0x1544   : > { %v3346_v39 = vpack.c.bf16 %v3344_v12, %v3343_v36 }
0x1546   : > { %5488 = vmatmul.mubr.msk.bf16.vlgmr.msra.gmra.mxu1 %vm1322_vm2, %v3346_v39 }
0x1547   : > { %5499 = vmatprep.mubr.msk.bf16.mxu1 %vm6410_vm0, %v6409_v31 }
0x156c   : > { %v3330_v40 = vpop.xlane.xlu1 %3329 }
0x156d   : > { %5971 = vrcp.f32 %v3330_v40 }
0x1570   : > { %v3497_v42 = vpop.permute.xlu1 %3496 }
0x1571   : > { %v3502_v51 = vsel %vm1227_vm1, %v3497_v42, 0 }
0x1572   : > { %5498 = vmatpush3.bf16.xpose.msra.mxu1 %v3502_v51 }
0x1573   : > { %5509 = vmatprep.subr.bf16.mxu1 %v6409_v31 }
0x1574   : > { %v3495_v52 = vpop.permute.xlu1 %3494 }
0x1579   : > { %5500 = vmatmul.mubr.msk.bf16.vlgmr.msra.gmra.mxu1 %vm1227_vm1, %v3495_v52 }
0x157a   : > { %v5972_v55 = vpop.eup %5971  ;;  %5511 = vmatprep.mubr.msk.bf16.mxu1 %vm6410_vm0, %v6409_v31 }
0x157b   : > { %v3342_v10 = vmul.f32 %v5972_v55, %v5964_v7 }
0x157d   : > { %v3345_v1 = vpack.c.bf16 %v3342_v10, %v3341_v59 }
0x157f   : > { %5482 = vmatmul.mubr.msk.bf16.vlgmr.msra.gmra.mxu0 %vm1322_vm2, %v3345_v1 }
0x1580   : > { %5492 = vmatpush3.bf16.xpose.msra.mxu0 %v3451_v2  ;;  %5493 = vmatprep.mubr.msk.bf16.mxu0 %vm6410_vm0, %v6409_v31 }
0x1581   : > { %5503 = vmatprep.subr.bf16.mxu0 %v6409_v31 }
0x1587   : > { %5494 = vmatmul.mubr.msk.bf16.vlgmr.msra.gmra.mxu0 %vm1227_vm1, %v3444_v3 }
0x1588   : > { %5505 = vmatprep.mubr.msk.bf16.mxu0 %vm6410_vm0, %v6409_v31 }
0x1606   : > { %v7334_v4 = vpop.f32.mrf.mxu1 }
0x1608   : > { %v5489_v5 = vpop.f32.mrf.mxu1 }
0x160a   : > { %v3437_v14 = vpop.f32.mrf.mxu1 }
0x160b   : > { %v3442_v6 = vpack.c.bf16 %v3437_v14, %v7334_v4 }
0x160c   : > { %v5490_v8 = vpop.f32.mrf.mxu1 }
0x1639   : > { %v3538_v11 = vpop.f32.mrf.mxu1 }
0x163a   : > { %v3539_v56 = vadd.f32 %v3538_v11, %v7184_v9 }
0x163b   : > { %v5501_v20 = vpop.f32.mrf.mxu1 }
0x163c   : > { %v3551_v35 = vsel %vm1322_vm2, %v3539_v56, -inf }
0x163d   : > { %v3541_v21 = vpop.f32.mrf.mxu1 }
0x163e   : > { %v3542_v50 = vadd.f32 %v3541_v21, %v7187_v63 }
0x163f   : > { %v3387_v27 = vpop.f32.mrf.mxu0  ;;  %v5502_v29 = vpop.f32.mrf.mxu1 }
0x1640   : > { %v3554_v12 = vsel %vm1322_vm2, %v3542_v50, -inf }
0x1641   : > { %v5483_v13 = vpop.f32.mrf.mxu0 }
0x1643   : > { %v3390_v17 = vpop.f32.mrf.mxu0 }
0x1644   : > { %v3441_v22 = vpack.c.bf16 %v3390_v17, %v3387_v27 }
0x1645   : > { %v5484_v23 = vpop.f32.mrf.mxu0 }
0x1646   : > { %v5765_v23 = vld [vmem:[#allocation16 + $0x38] sm:$0xff]  }
0x1647   : > { %v3487_v7 = vpop.f32.mrf.mxu0 }
0x1648   : > { %v3488_v57 = vadd.f32 %v3487_v7, %v7184_v9  ;;  %v5766_v7 = vld [vmem:[#allocation16 + $0x30] sm:$0xff]  }
0x1649   : > { %v5495_v31 = vpop.f32.mrf.mxu0 }
0x164a   : > { %v3545_v62 = vsel %vm1322_vm2, %v3488_v57, -inf  ;;  %v5768_v31 = vld [vmem:[#allocation16 + $0x20] sm:$0xff]  }
0x164b   : > { %3546 = vmax.xlane.f32.xlu0 %v3545_v62  ;;  %v3490_v47 = vpop.f32.mrf.mxu0  ;;  %v5770_v62 = vld [vmem:[#allocation16 + $0x10] sm:$0xff]  }
0x164c   : > { %v3491_v19 = vadd.f32 %v3490_v47, %v7187_v63  ;;  %v5771_v47 = vld [vmem:[#allocation16 + $0x8] sm:$0xff]  }
0x164d   : > { %v5496_v49 = vpop.f32.mrf.mxu0 }
0x164e   : > { %v3548_v36 = vsel %vm1322_vm2, %v3491_v19, -inf }
0x164f   : > { %3552 = vmax.xlane.f32.xlu0 %v3551_v35  ;;  %3549 = vmax.xlane.f32.xlu1 %v3548_v36 }
0x1653   : > { %3555 = vmax.xlane.f32.xlu0 %v3554_v12 }
0x16d4   : > { %v3547_v39 = vpop.xlane.xlu0 %3546 }
0x16d5   : > { %v3557_v9 = vsub.f32 %v3488_v57, %v3547_v39  ;;  %v5767_v57 = vld [vmem:[#allocation16 + $0x28] sm:$0xff]  }
0x16d7   : > { %v3561_v51 = vmul.f32 1.442695, %v3557_v9 }
0x16d8   : > { %v3553_v25 = vpop.xlane.xlu0 %3552  ;;  %v3550_v40 = vpop.xlane.xlu1 %3549 }
0x16d9   : > { %v3559_v42 = vsub.f32 %v3539_v56, %v3553_v25  ;;  %v3558_v52 = vsub.f32 %v3491_v19, %v3550_v40  ;;  %v5769_v56 = vld [vmem:[#allocation16 + $0x18] sm:$0xff]   ;;  %v5772_v19 = vld [vmem:[#allocation16] sm:$0xff]  }
0x16db   : > { %v3565_v45 = vmul.f32 1.442695, %v3559_v42  ;;  %v3563_v59 = vmul.f32 1.442695, %v3558_v52 }
0x16dc   : > { %v3556_v55 = vpop.xlane.xlu0 %3555 }
0x16dd   : > { %5973 = vpow2.f32 %v3565_v45  ;;  %v3560_v63 = vsub.f32 %v3542_v50, %v3556_v55 }
0x16de   : > { %5975 = vpow2.f32 %v3561_v51 }
0x16df   : > { %v3567_v10 = vmul.f32 1.442695, %v3560_v63 }
0x16e1   : > { %5977 = vpow2.f32 %v3567_v10 }
0x16e2   : > { %5979 = vpow2.f32 %v3563_v59 }
0x16ea   : > { %v5974_v1 = vpop.eup %5973 }
0x16eb   : > { %v3575_v2 = vsel %vm1322_vm2, %v5974_v1, 0.0  ;;  %v5976_v3 = vpop.eup %5975 }
0x16ec   : > { %3576 = vadd.xlane.f32.xlu0 %v3575_v2  ;;  %v3569_v5 = vsel %vm1322_vm2, %v5976_v3, 0.0 }
0x16ee   : > { %v5978_v4 = vpop.eup %5977 }
0x16ef   : > { %v3578_v14 = vsel %vm1322_vm2, %v5978_v4, 0.0  ;;  %v5980_v8 = vpop.eup %5979 }
0x16f0   : > { %3570 = vadd.xlane.f32.xlu0 %v3569_v5  ;;  %3579 = vadd.xlane.f32.xlu1 %v3578_v14  ;;  %v3572_v11 = vsel %vm1322_vm2, %v5980_v8, 0.0 }
0x16f4   : > { %3573 = vadd.xlane.f32.xlu1 %v3572_v11 }
0x1705   : > { %3638 = vrot.lane.b32.xlu1 %v7160_v18, %s6413_s14 }
0x1706   : > { %3591 = vrot.lane.b32.xlu0 %v7155_v60, %s6413_s14 }
0x1709   : > { %3689 = vrot.lane.b32.xlu1 %v3197_v32, %s6413_s14 }
0x170a   : > { %3695 = vrot.lane.b32.xlu0 %v3441_v22, %s6412_s24 }
0x170d   : > { %3691 = vrot.lane.b32.xlu1 %v3198_v16, %s6413_s14 }
0x1711   : > { %3697 = vrot.lane.b32.xlu1 %v3442_v6, %s6412_s24 }
0x1775   : > { %v3577_v20 = vpop.xlane.xlu0 %3576 }
0x1776   : > { %5981 = vrcp.f32 %v3577_v20 }
0x1779   : > { %v3571_v18 = vpop.xlane.xlu0 %3570  ;;  %v3580_v21 = vpop.xlane.xlu1 %3579 }
0x177a   : > { %5983 = vrcp.f32 %v3580_v21 }
0x177b   : > { %5985 = vrcp.f32 %v3571_v18 }
0x177d   : > { %v3592_v60 = vpop.permute.xlu0 %3591  ;;  %v3574_v27 = vpop.xlane.xlu1 %3573 }
0x177e   : > { %5987 = vrcp.f32 %v3574_v27  ;;  %5504 = vmatpush3.bf16.msra.mxu0 %v3592_v60  ;;  %v5773_v27 = vld [vmem:[#allocation17 + $0xe0] ss:$16 sps:$4 sm:$0xff]  }
0x177f   : > { %5515 = vmatprep.subr.bf16.mxu0 %v5765_v23 }
0x1781   : > { %v3639_v26 = vpop.permute.xlu1 %3638  ;;  %v3696_v55 = vpop.permute.xlu0 %3695 }
0x1782   : > { %5510 = vmatpush3.bf16.msra.mxu1 %v3639_v26  ;;  %v5775_v26 = vld [vmem:[#allocation17 + $0xe4] ss:$16 sps:$4 sm:$0xff]  }
0x1783   : > { %v5982_v28 = vpop.eup %5981  ;;  %4127 = vmatprep.subr.bf16.mxu1 %v5775_v26 }
0x1784   : > { %v3587_v13 = vmul.f32 %v5982_v28, %v5974_v1  ;;  %v5776_v28 = vld [vmem:[#allocation17 + $0xe8] ss:$16 sps:$4 sm:$0xff]  }
0x1785   : > { %v3690_v51 = vpop.permute.xlu1 %3689 }
0x1786   : > { %v3707_v63 = vsel %vm1227_vm1, %v2947_v44, %v3690_v51  ;;  %v5800_v51 = vld [vmem:[#allocation17 + $0x68] ss:$16 sps:$4 sm:$0xff]  }
0x1787   : > { %v5984_v32 = vpop.eup %5983  ;;  %v3712_v2 = vsel %vm2221_vm3, %v3707_v63, %v3696_v55  ;;  %v5808_v55 = vld [vmem:[#allocation17 + $0x4c] ss:$16 sps:$4 sm:$0xff]   ;;  %v5803_v63 = vld [vmem:[#allocation17 + $0x40] ss:$16 sps:$4 sm:$0xff]  }
0x1788   : > { %v5986_v29 = vpop.eup %5985  ;;  %v3588_v30 = vmul.f32 %v5984_v32, %v5978_v4  ;;  %v5778_v32 = vld [vmem:[#allocation17 + $0xec] ss:$16 sps:$4 sm:$0xff]  }
0x1789   : > { %v3585_v6 = vmul.f32 %v5986_v29, %v5976_v3  ;;  %v3692_v45 = vpop.permute.xlu1 %3691 }
0x178a   : > { %v3590_v16 = vpack.c.bf16 %v3588_v30, %v3587_v13  ;;  %v3710_v10 = vsel %vm1227_vm1, %v2948_v58, %v3692_v45  ;;  %v5802_v45 = vld [vmem:[#allocation17 + $0x6c] ss:$16 sps:$4 sm:$0xff]  }
0x178b   : > { %v5988_v15 = vpop.eup %5987 }
0x178c   : > { %v3586_v17 = vmul.f32 %v5988_v15, %v5980_v8  ;;  %5512 = vmatmul.mubr.msk.bf16.vlgmr.msra.gmra.mxu1 %vm1322_vm2, %v3590_v16 }
0x178d   : > { %4159 = vmatprep.mubr.bf16.mxu1 %v6408_v0  ;;  %v3698_v52 = vpop.permute.xlu1 %3697  ;;  %4128 = vmatpush1.bf16.msra.mxu1 %v5773_v27 }
0x178e   : > { %v3589_v22 = vpack.c.bf16 %v3586_v17, %v3585_v6  ;;  %v3714_v3 = vsel %vm2221_vm3, %v3710_v10, %v3698_v52  ;;  %v5805_v52 = vld [vmem:[#allocation17 + $0x44] ss:$16 sps:$4 sm:$0xff]  }
0x178f   : > { %v5811_v10 = vld [vmem:[#allocation17 + $0x24] ss:$16 sps:$4 sm:$0xff]  }
0x1790   : > { %5506 = vmatmul.mubr.msk.bf16.vlgmr.msra.gmra.mxu0 %vm1322_vm2, %v3589_v22 }
0x1791   : > { %5516 = vmatpush3.bf16.msra.mxu0 %v5765_v23 }
0x1792   : > { %5517 = vmatprep.subr.bf16.mxu0 %v5766_v7 }
0x1795   : > { %5518 = vmatpush3.bf16.msra.mxu0 %v5766_v7 }
0x1796   : > { %5519 = vmatprep.subr.bf16.mxu0 %v5767_v57 }
0x1799   : > { %5520 = vmatpush3.bf16.msra.mxu0 %v5767_v57 }
0x179a   : > { %5521 = vmatprep.subr.bf16.mxu0 %v5768_v31 }
0x179d   : > { %5522 = vmatpush3.bf16.msra.mxu0 %v5768_v31 }
0x179e   : > { %5523 = vmatprep.subr.bf16.mxu0 %v5769_v56 }
0x17a1   : > { %5524 = vmatpush3.bf16.msra.mxu0 %v5769_v56  ;;  %v5781_v56 = vld [vmem:[#allocation17 + $0xc4] ss:$16 sps:$4 sm:$0xff]  }
0x17a2   : > { %5525 = vmatprep.subr.bf16.mxu0 %v5770_v62  ;;  %4129 = vmatprep.subr.bf16.mxu1 %v5781_v56 }
0x17a5   : > { %5526 = vmatpush3.bf16.msra.mxu0 %v5770_v62  ;;  %v5784_v62 = vld [vmem:[#allocation17 + $0xcc] ss:$16 sps:$4 sm:$0xff]  }
0x17a6   : > { %5527 = vmatprep.subr.bf16.mxu0 %v5771_v47 }
0x17a9   : > { %5528 = vmatpush3.bf16.msra.mxu0 %v5771_v47  ;;  %v5779_v47 = vld [vmem:[#allocation17 + $0xc0] ss:$16 sps:$4 sm:$0xff]  }
0x17aa   : > { %5529 = vmatprep.subr.bf16.mxu0 %v5772_v19  ;;  %4130 = vmatpush1.bf16.msra.mxu1 %v5779_v47  ;;  %v5824_v47 = vld [vmem:[#allocation19 + $0xb8] sm:$0xff]  }
0x17ad   : > { %5530 = vmatpush3.bf16.msra.mxu0 %v5772_v19  ;;  %v5782_v19 = vld [vmem:[#allocation17 + $0xc8] ss:$16 sps:$4 sm:$0xff]  }
0x17ae   : > { %4180 = vmatprep.subr.bf16.mxu0 %v5778_v32 }
0x184c   : > { %v3678_v49 = vpop.f32.mrf.mxu1 }
0x184e   : > { %v5513_v50 = vpop.f32.mrf.mxu1 }
0x184f   : > { %v5790_v50 = vld [vmem:[#allocation17 + $0xac] ss:$16 sps:$4 sm:$0xff]  }
0x1850   : > { %v3631_v35 = vpop.f32.mrf.mxu0  ;;  %v3681_v36 = vpop.f32.mrf.mxu1 }
0x1851   : > { %v3686_v12 = vpack.c.bf16 %v3681_v36, %v3678_v49  ;;  %v5787_v49 = vld [vmem:[#allocation17 + $0xa4] ss:$16 sps:$4 sm:$0xff]   ;;  %v5788_v36 = vld [vmem:[#allocation17 + $0xa8] ss:$16 sps:$4 sm:$0xff]  }
0x1852   : > { %v5507_v39 = vpop.f32.mrf.mxu0  ;;  %v5514_v9 = vpop.f32.mrf.mxu1  ;;  %4131 = vmatprep.subr.bf16.mxu1 %v5787_v49  ;;  %v5826_v49 = vld [vmem:[#allocation19 + $0xf0] sm:$0xff]  }
0x1853   : > { %3703 = vrot.lane.b32.xlu1 %v3686_v12, %s6411_s23  ;;  %v5793_v12 = vld [vmem:[#allocation17 + $0x84] ss:$16 sps:$4 sm:$0xff]   ;;  %v5796_v39 = vld [vmem:[#allocation17 + $0x8c] ss:$16 sps:$4 sm:$0xff]   ;;  %v5791_v9 = vld [vmem:[#allocation17 + $0x80] ss:$16 sps:$4 sm:$0xff]  }
0x1854   : > { %v3634_v25 = vpop.f32.mrf.mxu0 }
0x1855   : > { %v3685_v40 = vpack.c.bf16 %v3634_v25, %v3631_v35  ;;  %v5785_v35 = vld [vmem:[#allocation17 + $0xa0] ss:$16 sps:$4 sm:$0xff]   ;;  %v5794_v25 = vld [vmem:[#allocation17 + $0x88] ss:$16 sps:$4 sm:$0xff]  }
0x1856   : > { %v5508_v42 = vpop.f32.mrf.mxu0  ;;  %4132 = vmatpush1.bf16.msra.mxu1 %v5785_v35 }
0x1857   : > { %3701 = vrot.lane.b32.xlu0 %v3685_v40, %s6411_s23  ;;  %4133 = vmatprep.subr.bf16.mxu1 %v5793_v12  ;;  %v5797_v40 = vld [vmem:[#allocation17 + $0x60] ss:$16 sps:$4 sm:$0xff]   ;;  %v5799_v42 = vld [vmem:[#allocation17 + $0x64] ss:$16 sps:$4 sm:$0xff]   ;;  %v5830_v12 = vld [vmem:[#allocation19 + $0xe8] sm:$0xff]   ;;  %s4707_s23 = sshll.u32 %s927_s30, 4  ;;  %s7456_s23 = int_to_ptr.vmem [resolvable:$true] %s4707_s23 }
0x1858   : > { %p6306_p3 = scmp.lt.s32.totalorder %s7456_s23, %s6304_s21 }
0x185a   : > { %4134 = vmatpush1.bf16.msra.mxu1 %v5791_v9 }
0x185b   : > { %4135 = vmatprep.subr.bf16.mxu1 %v5799_v42  ;;  %v5834_v42 = vld [vmem:[#allocation19 + $0xe0] sm:$0xff]  }
0x185e   : > { %4136 = vmatpush1.bf16.msra.mxu1 %v5797_v40  ;;  %v5832_v40 = vld [vmem:[#allocation19 + $0xa8] sm:$0xff]  }
0x185f   : > { %4137 = vmatprep.subr.bf16.mxu1 %v5805_v52  ;;  %v5837_v52 = vld [vmem:[#allocation19 + $0x58] sm:$0xff]  }
0x1862   : > { %4138 = vmatpush1.bf16.msra.mxu1 %v5803_v63  ;;  %v5839_v63 = vld [vmem:[#allocation19 + $0x18] sm:$0xff]  }
0x1863   : > { %4139 = vmatprep.subr.bf16.mxu1 %v5811_v10  ;;  %v5841_v10 = vld [vmem:[#allocation19 + $0x50] sm:$0xff]  }
0x18c5   : > { %v3704_v59 = vpop.permute.xlu1 %3703 }
0x18c6   : > { %v3719_v5 = vsel %vm2226_vm4, %v3714_v3, %v3704_v59  ;;  %v5806_v59 = vld [vmem:[#allocation17 + $0x48] ss:$16 sps:$4 sm:$0xff]  }
0x18c7   : > { %v5812_v3 = vld [vmem:[#allocation17 + $0x28] ss:$16 sps:$4 sm:$0xff]  }
0x18c9   : > { %v3702_v1 = vpop.permute.xlu0 %3701 }
0x18ca   : > { %v3716_v4 = vsel %vm2226_vm4, %v3712_v2, %v3702_v1  ;;  %v5814_v1 = vld [vmem:[#allocation17 + $0x2c] ss:$16 sps:$4 sm:$0xff]   ;;  %v5809_v2 = vld [vmem:[#allocation17 + $0x20] ss:$16 sps:$4 sm:$0xff]  }
0x18cb   : > { %5531 = vmatprep.mubr.bf16.mxu0 %v3716_v4  ;;  %v5817_v4 = vld [vmem:[#allocation17 + $0x4] ss:$16 sps:$4 sm:$0xff]   ;;  %4140 = vmatpush1.bf16.msra.mxu1 %v5809_v2 }
0x18cc   : > { %5532 = vmatmul.mubr.bf16.vlgmr.msra.gmra.mxu0 %v3719_v5  ;;  %v5820_v5 = vld [vmem:[#allocation17 + $0xc] ss:$16 sps:$4 sm:$0xff]   ;;  %4141 = vmatprep.subr.bf16.mxu1 %v5817_v4  ;;  %v5843_v2 = vld [vmem:[#allocation19 + $0x10] sm:$0xff]  }
0x18cd   : > { %4212 = vmatprep.mubr.bf16.mxu0 %v6408_v0  ;;  %4181 = vmatpush1.bf16.msra.mxu0 %v5776_v28  ;;  %v5845_v4 = vld [vmem:[#allocation19 + $0x48] sm:$0xff]  }
0x18ce   : > { %4182 = vmatprep.subr.bf16.mxu0 %v5784_v62  ;;  %v5823_v62 = vld [vmem:[#allocation19 + $0x38] sm:$0xff]  }
0x18d1   : > { %4183 = vmatpush1.bf16.msra.mxu0 %v5782_v19  ;;  %v5825_v19 = vld [vmem:[#allocation19 + $0x70] sm:$0xff]  }
0x18d2   : > { %4184 = vmatprep.subr.bf16.mxu0 %v5790_v50 }
0x18d5   : > { %4185 = vmatpush1.bf16.msra.mxu0 %v5788_v36  ;;  %v5829_v36 = vld [vmem:[#allocation19 + $0x68] sm:$0xff]  }
0x18d6   : > { %4186 = vmatprep.subr.bf16.mxu0 %v5796_v39 }
0x18d9   : > { %4187 = vmatpush1.bf16.msra.mxu0 %v5794_v25  ;;  %v5831_v25 = vld [vmem:[#allocation19 + $0x28] sm:$0xff]  }
0x18da   : > { %4188 = vmatprep.subr.bf16.mxu0 %v5802_v45  ;;  %v5836_v45 = vld [vmem:[#allocation19 + $0xa0] sm:$0xff]  }
0x18dd   : > { %4189 = vmatpush1.bf16.msra.mxu0 %v5800_v51  ;;  %v5835_v51 = vld [vmem:[#allocation19 + $0x20] sm:$0xff]  }
0x18de   : > { %4190 = vmatprep.subr.bf16.mxu0 %v5808_v55  ;;  %v5838_v55 = vld [vmem:[#allocation19 + $0xd8] sm:$0xff]  }
0x18e1   : > { %4191 = vmatpush1.bf16.msra.mxu0 %v5806_v59  ;;  %v5840_v59 = vld [vmem:[#allocation19 + $0x98] sm:$0xff]  }
0x18e2   : > { %4192 = vmatprep.subr.bf16.mxu0 %v5814_v1  ;;  %v5842_v1 = vld [vmem:[#allocation19 + $0xd0] sm:$0xff]  }
0x18e5   : > { %4193 = vmatpush1.bf16.msra.mxu0 %v5812_v3  ;;  %v5844_v3 = vld [vmem:[#allocation19 + $0x90] sm:$0xff]  }
0x18e6   : > { %4194 = vmatprep.subr.bf16.mxu0 %v5820_v5  ;;  %v5846_v5 = vld [vmem:[#allocation19 + $0xc8] sm:$0xff]  }
0x198c   : > { %v5533_v37 = vpop.f32.mrf.mxu0 }
0x198d   : > { %v3835_v58 = vadd.f32 %v5533_v37, %v5013_v43  ;;  %v5815_v37 = vld [vmem:[#allocation17] ss:$16 sps:$4 sm:$0xff]  }
0x198e   : > { %v3826_v44 = vpop.f32.mrf.mxu0  ;;  %4142 = vmatpush1.bf16.msra.mxu1 %v5815_v37  ;;  %v5847_v37 = vld [vmem:[#allocation19 + $0x8] sm:$0xff]  }
0x198f   : > { %v3827_v53 = vadd.f32 %v5013_v43, %v3826_v44  ;;  %v3843_v20 = vadd.f32 %v3835_v58, %v7140_v46  ;;  %v5821_v44 = vld [vmem:[#allocation19 + $0x78] sm:$0xff]  }
0x1990   : > { %v5534_v54 = vpop.f32.mrf.mxu0  ;;  %5207 = vmatprep.subr.bf16.mxu1 %v5821_v44  ;;  %v5849_v44 = vld [vmem:[#allocation19 + $0x40] sm:$0xff]  }
0x1991   : > { %v3841_v14 = vadd.f32 %v3827_v53, %v7133_v38  ;;  %v3838_v18 = vadd.f32 %v5534_v54, %v5013_v43  ;;  %v5822_v53 = vld [vmem:[#allocation19 + $0xf8] sm:$0xff]  }
0x1992   : > { %v3829_v8 = vpop.f32.mrf.mxu0 }
0x1993   : > { %v3830_v11 = vadd.f32 %v5013_v43, %v3829_v8  ;;  %3847 = vadd.xlane.f32.xlu0 %v3841_v14  ;;  %v3844_v60 = vadd.f32 %v3838_v18, %v7142_v48  ;;  %v5818_v43 = vld [vmem:[#allocation17 + $0x8] ss:$16 sps:$4 sm:$0xff]  }
0x1994   : > { %4195 = vmatpush1.bf16.msra.mxu0 %v5818_v43  ;;  %v5848_v43 = vld [vmem:[#allocation19 + $0x88] sm:$0xff]  }
0x1995   : > { %v3842_v21 = vadd.f32 %v3830_v11, %v7135_v24  ;;  %5235 = vmatprep.subr.bf16.mxu0 %v5822_v53  ;;  %v5850_v53 = vld [vmem:[#allocation19 + $0xc0] sm:$0xff]  }
0x1997   : > { %3849 = vadd.xlane.f32.xlu1 %v3842_v21  ;;  %3851 = vadd.xlane.f32.xlu0 %v3843_v20 }
0x199b   : > { %3853 = vadd.xlane.f32.xlu0 %v3844_v60 }
0x1a1c   : > { %v3848_v38 = vpop.xlane.xlu0 %3847 }
0x1a1d   : > { %v3855_v29 = vmul.f32 0.0078125, %v3848_v38 }
0x1a1f   : > { %v7388_v13 = vsub.f32 %v3841_v14, %v3855_v29  ;;  %v5022_v29 = vld [vmem:[%s7515_s16] ss:$0 sm:$0xff] }
0x1a20   : > { %v3850_v46 = vpop.xlane.xlu1 %3849  ;;  %v3852_v30 = vpop.xlane.xlu0 %3851 }
0x1a21   : > { %v3856_v24 = vmul.f32 0.0078125, %v3850_v46  ;;  %v3857_v15 = vmul.f32 0.0078125, %v3852_v30  ;;  %v3863_v48 = vmul.f32 %v7388_v13, %v7388_v13 }
0x1a23   : > { %v7392_v16 = vsub.f32 %v3842_v21, %v3856_v24  ;;  %v7394_v6 = vsub.f32 %v3843_v20, %v3857_v15  ;;  %3867 = vadd.xlane.f32.xlu0 %v3863_v48  ;;  %v5023_v48 = vld [vmem:[%s7516_s17] ss:$0 sm:$0xff] }
0x1a24   : > { %v3854_v17 = vpop.xlane.xlu0 %3853 }
0x1a25   : > { %v3858_v22 = vmul.f32 0.0078125, %v3854_v17  ;;  %v3864_v23 = vmul.f32 %v7392_v16, %v7392_v16  ;;  %v3865_v7 = vmul.f32 %v7394_v6, %v7394_v6 }
0x1a27   : > { %v7400_v57 = vsub.f32 %v3844_v60, %v3858_v22  ;;  %3869 = vadd.xlane.f32.xlu1 %v3864_v23  ;;  %3871 = vadd.xlane.f32.xlu0 %v3865_v7 }
0x1a29   : > { %v3866_v31 = vmul.f32 %v7400_v57, %v7400_v57 }
0x1a2b   : > { %3873 = vadd.xlane.f32.xlu1 %v3866_v31 }
0x1aac   : > { %v3868_v54 = vpop.xlane.xlu0 %3867 }
0x1aad   : > { %v3875_v58 = vmul.f32 0.0078125, %v3868_v54  ;;  %v5851_v54 = vld [vmem:[#allocation19] sm:$0xff]  }
0x1aaf   : > { %v3879_v14 = vadd.f32 1e-05, %v3875_v58  ;;  %v5852_v58 = vld [vmem:[#allocation19 + $0x80] sm:$0xff]  }
0x1ab0   : > { %v3870_v8 = vpop.xlane.xlu1 %3869  ;;  %v3872_v11 = vpop.xlane.xlu0 %3871 }
0x1ab1   : > { %5989 = vrsqrt.f32 %v3879_v14  ;;  %v3876_v20 = vmul.f32 0.0078125, %v3870_v8  ;;  %v3877_v18 = vmul.f32 0.0078125, %v3872_v11  ;;  %v3961_v14 = vsub.s32 3, %v6852_v33  ;;  %v3945_v8 = vld [vmem:[%s7606_s25] sm:$0xf]  ;;  %s6299_s25 = scalar_lea.vmem %s7456_s23, 512 }
0x1ab2   : > { %p6300_p1 = scmp.ne.s32.totalorder %s7456_s23, %s6299_s25  ;;  %p6307_p13 = scmp.lt.s32.totalorder %s6305_s1, %s6299_s25 }
0x1ab3   : > { %v3880_v21 = vadd.f32 1e-05, %v3876_v20  ;;  %v3881_v60 = vadd.f32 1e-05, %v3877_v18  ;;  %v3954_v18 = vrot.slane %v3945_v8, %v6855_v34 }
0x1ab4   : > { %v3874_v27 = vpop.xlane.xlu1 %3873  ;;  %p6301_p0 = pnand %p6300_p1, %p7612_p4  ;;  %p6308_p6 = por %p6307_p13, %p6306_p3 }
0x1ab5   : > { %5991 = vrsqrt.f32 %v3880_v21  ;;  %v3878_v26 = vmul.f32 0.0078125, %v3874_v27  ;;  %v3962_v21 = vrot.slane %v3945_v8, %v3961_v14  ;;  %v3958_v27 = vrot.slane %v3945_v8, %v986_v61 }
0x1ab6   : > { %5993 = vrsqrt.f32 %v3881_v60  ;;  %v3950_v60 = vrot.slane %v3945_v8, %v6862_v41  ;;  %p6302_p2 = pneg %p6301_p0 }
0x1ab7   : > { %v3882_v28 = vadd.f32 1e-05, %v3878_v26 }
0x1ab8   : > { %p6309_p5 = pnand %p6308_p6, %p6302_p2 }
0x1ab9   : > { %5995 = vrsqrt.f32 %v3882_v28 }
0x1abe   : > { %v5990_v32 = vpop.eup %5989 }
0x1abf   : > { %v3887_v38 = vmul.f32 %v5990_v32, %v7388_v13 }
0x1ac1   : > { %v3897_v24 = vmul.f32 %v5022_v29, %v3887_v38 }
0x1ac2   : > { %v5992_v46 = vpop.eup %5991 }
0x1ac3   : > { %v3888_v30 = vmul.f32 %v5992_v46, %v7392_v16  ;;  %v5994_v15 = vpop.eup %5993  ;;  %v7412_v23 = vadd.f32 %v5023_v48, %v3897_v24 }
0x1ac4   : > { %v3889_v13 = vmul.f32 %v5994_v15, %v7394_v6  ;;  %v5827_v6 = vld [vmem:[#allocation19 + $0x30] sm:$0xff]  }
0x1ac5   : > { %v3898_v17 = vmul.f32 %v5022_v29, %v3888_v30 }
0x1ac6   : > { %v5996_v22 = vpop.eup %5995  ;;  %v3899_v50 = vmul.f32 %v5022_v29, %v3889_v13 }
0x1ac7   : > { %v7414_v7 = vadd.f32 %v5023_v48, %v3898_v17  ;;  %v3890_v31 = vmul.f32 %v5996_v22, %v7400_v57  ;;  %v5828_v57 = vld [vmem:[#allocation19 + $0xb0] sm:$0xff]  }
0x1ac8   : > { %v7424_v39 = vadd.f32 %v5023_v48, %v3899_v50 }
0x1ac9   : > { %v3911_v56 = vpack.c.bf16 %v7414_v7, %v7412_v23  ;;  %v3900_v16 = vmul.f32 %v5022_v29, %v3890_v31 }
0x1acb   : > { %4160 = vmatmul.mubr.bf16.vlgmr.msra.gmra.mxu1 %v3911_v56  ;;  %4213 = vmatmul.mubr.bf16.vlgmr.msra.gmra.mxu0 %v3911_v56  ;;  %v7422_v35 = vadd.f32 %v5023_v48, %v3900_v16 }
0x1acc   : > { %4169 = vmatprep.mubr.bf16.mxu1 %v6408_v0  ;;  %4222 = vmatprep.mubr.bf16.mxu0 %v6408_v0  ;;  %v5833_v0 = vld [vmem:[#allocation19 + $0x60] sm:$0xff]  }
0x1acd   : > { %5208 = vmatpush3.bf16.msra.mxu1 %v5823_v62  ;;  %5236 = vmatpush3.bf16.msra.mxu0 %v5824_v47  ;;  %v3912_v9 = vpack.c.bf16 %v7422_v35, %v7424_v39 }
0x1ace   : > { %5209 = vmatprep.subr.bf16.mxu1 %v5825_v19  ;;  %5237 = vmatprep.subr.bf16.mxu0 %v5826_v49 }
0x1ad1   : > { %5210 = vmatpush3.bf16.msra.mxu1 %v5827_v6  ;;  %5238 = vmatpush3.bf16.msra.mxu0 %v5828_v57 }
0x1ad2   : > { %5211 = vmatprep.subr.bf16.mxu1 %v5829_v36  ;;  %5239 = vmatprep.subr.bf16.mxu0 %v5830_v12 }
0x1ad3   : > { %4170 = vmatmul.mubr.bf16.gmra.mxu1 %v3912_v9  ;;  %4223 = vmatmul.mubr.bf16.gmra.mxu0 %v3912_v9 }
0x1ad5   : > { %5212 = vmatpush3.bf16.msra.mxu1 %v5831_v25  ;;  %5240 = vmatpush3.bf16.msra.mxu0 %v5832_v40 }
0x1ad6   : > { %5213 = vmatprep.subr.bf16.mxu1 %v5833_v0  ;;  %5241 = vmatprep.subr.bf16.mxu0 %v5834_v42 }
0x1ad9   : > { %5214 = vmatpush3.bf16.msra.mxu1 %v5835_v51  ;;  %5242 = vmatpush3.bf16.msra.mxu0 %v5836_v45 }
0x1ada   : > { %5215 = vmatprep.subr.bf16.mxu1 %v5837_v52  ;;  %5243 = vmatprep.subr.bf16.mxu0 %v5838_v55 }
0x1add   : > { %5216 = vmatpush3.bf16.msra.mxu1 %v5839_v63  ;;  %5244 = vmatpush3.bf16.msra.mxu0 %v5840_v59 }
0x1ade   : > { %5217 = vmatprep.subr.bf16.mxu1 %v5841_v10  ;;  %5245 = vmatprep.subr.bf16.mxu0 %v5842_v1 }
0x1ae1   : > { %5218 = vmatpush3.bf16.msra.mxu1 %v5843_v2  ;;  %5246 = vmatpush3.bf16.msra.mxu0 %v5844_v3 }
0x1ae2   : > { %5219 = vmatprep.subr.bf16.mxu1 %v5845_v4  ;;  %5247 = vmatprep.subr.bf16.mxu0 %v5846_v5 }
0x1ae5   : > { %5220 = vmatpush3.bf16.msra.mxu1 %v5847_v37  ;;  %5248 = vmatpush3.bf16.msra.mxu0 %v5848_v43 }
0x1ae6   : > { %5221 = vmatprep.subr.bf16.mxu1 %v5849_v44  ;;  %5249 = vmatprep.subr.bf16.mxu0 %v5850_v53 }
0x1ae9   : > { %5222 = vmatpush3.bf16.msra.mxu1 %v5851_v54  ;;  %5250 = vmatpush3.bf16.msra.mxu0 %v5852_v58 }
0x1b8b   : > { %v4161_v11 = vpop.f32.mrf.mxu1  ;;  %v4214_v20 = vpop.f32.mrf.mxu0 }
0x1b8c   : > { %v4162_v15 = vadd.f32 %v4161_v11, %v3950_v60  ;;  %v4215_v48 = vadd.f32 %v4214_v20, %v3958_v27 }
0x1b8d   : > { %v4163_v26 = vpop.f32.mrf.mxu1  ;;  %v4216_v28 = vpop.f32.mrf.mxu0 }
0x1b8e   : > { %v4164_v29 = vadd.f32 %v4163_v26, %v3954_v18  ;;  %v4217_v46 = vadd.f32 %v4216_v28, %v3962_v21  ;;  %v4233_v19 = vmax.f32 %v4162_v15, 0.0  ;;  %v4235_v49 = vmax.f32 %v4215_v48, 0.0 }
0x1b8f   : > { %v4165_v32 = vpop.f32.mrf.mxu1  ;;  %v4218_v38 = vpop.f32.mrf.mxu0 }
0x1b90   : > { %v4166_v30 = vadd.f32 %v4165_v32, %v3950_v60  ;;  %v4219_v24 = vadd.f32 %v4218_v38, %v3958_v27  ;;  %v4234_v33 = vmax.f32 %v4164_v29, 0.0  ;;  %v4236_v61 = vmax.f32 %v4217_v46, 0.0 }
0x1b91   : > { %v4167_v17 = vpop.f32.mrf.mxu1  ;;  %v4220_v22 = vpop.f32.mrf.mxu0 }
0x1b92   : > { %v4168_v13 = vadd.f32 %v4167_v17, %v3954_v18  ;;  %v4221_v34 = vadd.f32 %v4220_v22, %v3962_v21  ;;  %v4237_v31 = vmax.f32 %v4166_v30, 0.0  ;;  %v4239_v56 = vmax.f32 %v4219_v24, 0.0 }
0x1b93   : > { %v4171_v41 = vpop.f32.mrf.mxu1  ;;  %v4224_v16 = vpop.f32.mrf.mxu0 }
0x1b94   : > { %v4238_v62 = vmax.f32 %v4168_v13, 0.0  ;;  %v4240_v47 = vmax.f32 %v4221_v34, 0.0  ;;  %v4249_v12 = vpack.c.bf16 %v4237_v31, %v4233_v19  ;;  %v4251_v9 = vpack.c.bf16 %v4239_v56, %v4235_v49 }
0x1b95   : > { %v4173_v50 = vpop.f32.mrf.mxu1  ;;  %v4226_v6 = vpop.f32.mrf.mxu0  ;;  %v4172_v52 = vadd.f32 %v4171_v41, %v3950_v60  ;;  %v4225_v55 = vadd.f32 %v4224_v16, %v3958_v27 }
0x1b96   : > { %v4250_v57 = vpack.c.bf16 %v4238_v62, %v4234_v33  ;;  %v4252_v36 = vpack.c.bf16 %v4240_v47, %v4236_v61  ;;  %v4174_v25 = vadd.f32 %v4173_v50, %v3954_v18  ;;  %v4227_v42 = vadd.f32 %v4226_v6, %v3962_v21 }
0x1b97   : > { %v4175_v40 = vpop.f32.mrf.mxu1  ;;  %v4228_v0 = vpop.f32.mrf.mxu0  ;;  %v4241_v44 = vmax.f32 %v4172_v52, 0.0  ;;  %v4243_v53 = vmax.f32 %v4225_v55, 0.0 }
0x1b98   : > { %v4176_v51 = vadd.f32 %v4175_v40, %v3950_v60  ;;  %v4229_v45 = vadd.f32 %v4228_v0, %v3958_v27  ;;  %4552 = vmatprep.mubr.bf16.mxu1 %v4250_v57  ;;  %4601 = vmatprep.mubr.bf16.mxu0 %v4252_v36  ;;  %v4242_v4 = vmax.f32 %v4174_v25, 0.0  ;;  %v4244_v5 = vmax.f32 %v4227_v42, 0.0 }
0x1b99   : > { %v4177_v63 = vpop.f32.mrf.mxu1  ;;  %v4230_v59 = vpop.f32.mrf.mxu0  ;;  %4553 = vmatmul.mubr.bf16.vlgmr.msra.gmra.mxu1 %v4249_v12  ;;  %4602 = vmatmul.mubr.bf16.vlgmr.msra.gmra.mxu0 %v4251_v9 }
0x1b9a   : > { %v4178_v10 = vadd.f32 %v4177_v63, %v3954_v18  ;;  %v4231_v1 = vadd.f32 %v4230_v59, %v3962_v21  ;;  %v4245_v2 = vmax.f32 %v4176_v51, 0.0  ;;  %v4247_v3 = vmax.f32 %v4229_v45, 0.0  ;;  %v5056_v18 = vld [vmem:[%s7607_s3] ss:$0 sm:$0xff] }
0x1b9c   : > { %v4246_v37 = vmax.f32 %v4178_v10, 0.0  ;;  %v4248_v43 = vmax.f32 %v4231_v1, 0.0  ;;  %v4253_v14 = vpack.c.bf16 %v4245_v2, %v4241_v44  ;;  %v4255_v8 = vpack.c.bf16 %v4247_v3, %v4243_v53 }
0x1b9e   : > { %v4254_v54 = vpack.c.bf16 %v4246_v37, %v4242_v4  ;;  %v4256_v58 = vpack.c.bf16 %v4248_v43, %v4244_v5 }
0x1ba0   : > { %4560 = vmatprep.mubr.bf16.mxu1 %v4254_v54  ;;  %4609 = vmatprep.mubr.bf16.mxu0 %v4256_v58 }
0x1ba1   : > { %4561 = vmatmul.mubr.bf16.gmra.mxu1 %v4253_v14  ;;  %4610 = vmatmul.mubr.bf16.gmra.mxu0 %v4255_v8 }
0x1c59   : > { %v5223_v11 = vpop.f32.mrf.mxu1  ;;  %v5251_v20 = vpop.f32.mrf.mxu0 }
0x1c5b   : > { %v5224_v21 = vpop.f32.mrf.mxu1  ;;  %v5252_v60 = vpop.f32.mrf.mxu0 }
0x1c5c   : > { %v5225_v27 = vadd.f32 %v5224_v21, %v5223_v11  ;;  %v5253_v38 = vadd.f32 %v5252_v60, %v5251_v20  ;;  %v5090_v60 = vld [vmem:[%s7609_s0] ss:$0 sm:$0xff] }
0x1c5d   : > { %v5226_v26 = vpop.f32.mrf.mxu1  ;;  %v5254_v28 = vpop.f32.mrf.mxu0 }
0x1c5e   : > { %v4555_v32 = vadd.f32 %v5225_v27, %v5056_v18 }
0x1c5f   : > { %v5227_v29 = vpop.f32.mrf.mxu1  ;;  %v5255_v46 = vpop.f32.mrf.mxu0 }
0x1c60   : > { %v4604_v30 = vadd.f32 %v5253_v38, %v4555_v32  ;;  %v5228_v24 = vadd.f32 %v5227_v29, %v5226_v26  ;;  %v5256_v22 = vadd.f32 %v5255_v46, %v5254_v28 }
0x1c61   : > { %v5229_v15 = vpop.f32.mrf.mxu1  ;;  %v5257_v48 = vpop.f32.mrf.mxu0 }
0x1c62   : > { %v4558_v17 = vadd.f32 %v5228_v24, %v5056_v18  ;;  %v4618_v13 = vadd.f32 %v4604_v30, %v7412_v23 }
0x1c63   : > { %v5230_v34 = vpop.f32.mrf.mxu1  ;;  %v5258_v31 = vpop.f32.mrf.mxu0 }
0x1c64   : > { %v4607_v56 = vadd.f32 %v5256_v22, %v4558_v17  ;;  %v5231_v41 = vadd.f32 %v5230_v34, %v5229_v15  ;;  %4624 = vadd.xlane.f32.xlu0 %v4618_v13  ;;  %v5259_v62 = vadd.f32 %v5258_v31, %v5257_v48 }
0x1c65   : > { %v5232_v16 = vpop.f32.mrf.mxu1  ;;  %v5260_v33 = vpop.f32.mrf.mxu0 }
0x1c66   : > { %v4563_v61 = vadd.f32 %v5231_v41, %v5056_v18  ;;  %v4619_v47 = vadd.f32 %v4607_v56, %v7414_v7 }
0x1c67   : > { %v5233_v19 = vpop.f32.mrf.mxu1  ;;  %v5261_v49 = vpop.f32.mrf.mxu0 }
0x1c68   : > { %v4612_v50 = vadd.f32 %v5259_v62, %v4563_v61  ;;  %v5234_v6 = vadd.f32 %v5233_v19, %v5232_v16  ;;  %4626 = vadd.xlane.f32.xlu1 %v4619_v47  ;;  %v5262_v36 = vadd.f32 %v5261_v49, %v5260_v33 }
0x1c6a   : > { %v4566_v57 = vadd.f32 %v5234_v6, %v5056_v18  ;;  %v4620_v23 = vadd.f32 %v4612_v50, %v7424_v39  ;;  %v5089_v18 = vld [vmem:[%s7608_s10] ss:$0 sm:$0xff] }
0x1c6c   : > { %v4615_v12 = vadd.f32 %v5262_v36, %v4566_v57  ;;  %4628 = vadd.xlane.f32.xlu0 %v4620_v23 }
0x1c6e   : > { %v4621_v9 = vadd.f32 %v4615_v12, %v7422_v35 }
0x1c70   : > { %4630 = vadd.xlane.f32.xlu1 %v4621_v9 }
0x1ced   : > { %v4625_v25 = vpop.xlane.xlu0 %4624 }
0x1cee   : > { %v4632_v40 = vmul.f32 0.0078125, %v4625_v25 }
0x1cf0   : > { %v4636_v0 = vsub.f32 %v4618_v13, %v4632_v40 }
0x1cf1   : > { %v4627_v42 = vpop.xlane.xlu1 %4626 }
0x1cf2   : > { %v4633_v51 = vmul.f32 0.0078125, %v4627_v42  ;;  %v4640_v7 = vmul.f32 %v4636_v0, %v4636_v0 }
0x1cf4   : > { %v4637_v45 = vsub.f32 %v4619_v47, %v4633_v51  ;;  %4644 = vadd.xlane.f32.xlu0 %v4640_v7 }
0x1cf5   : > { %v4629_v52 = vpop.xlane.xlu0 %4628 }
0x1cf6   : > { %v4634_v55 = vmul.f32 0.0078125, %v4629_v52  ;;  %v4641_v63 = vmul.f32 %v4637_v45, %v4637_v45 }
0x1cf8   : > { %v4638_v59 = vsub.f32 %v4620_v23, %v4634_v55  ;;  %4646 = vadd.xlane.f32.xlu1 %v4641_v63 }
0x1cf9   : > { %v4631_v10 = vpop.xlane.xlu1 %4630 }
0x1cfa   : > { %v4635_v39 = vmul.f32 0.0078125, %v4631_v10  ;;  %v4642_v1 = vmul.f32 %v4638_v59, %v4638_v59 }
0x1cfc   : > { %v4639_v2 = vsub.f32 %v4621_v9, %v4635_v39  ;;  %4648 = vadd.xlane.f32.xlu0 %v4642_v1 }
0x1cfe   : > { %v4643_v35 = vmul.f32 %v4639_v2, %v4639_v2 }
0x1d00   : > { %4650 = vadd.xlane.f32.xlu1 %v4643_v35 }
0x1d7d   : > { %v4645_v3 = vpop.xlane.xlu0 %4644 }
0x1d7e   : > { %v4652_v4 = vmul.f32 0.0078125, %v4645_v3 }
0x1d80   : > { %v4656_v5 = vadd.f32 1e-05, %v4652_v4 }
0x1d81   : > { %v4647_v37 = vpop.xlane.xlu1 %4646 }
0x1d82   : > { %5997 = vrsqrt.f32 %v4656_v5  ;;  %v4653_v43 = vmul.f32 0.0078125, %v4647_v37 }
0x1d84   : > { %v4657_v44 = vadd.f32 1e-05, %v4653_v43 }
0x1d85   : > { %v4649_v53 = vpop.xlane.xlu0 %4648 }
0x1d86   : > { %5999 = vrsqrt.f32 %v4657_v44  ;;  %v4654_v54 = vmul.f32 0.0078125, %v4649_v53 }
0x1d88   : > { %v4658_v58 = vadd.f32 1e-05, %v4654_v54 }
0x1d89   : > { %v4651_v14 = vpop.xlane.xlu1 %4650 }
0x1d8a   : > { %6001 = vrsqrt.f32 %v4658_v58  ;;  %v4655_v8 = vmul.f32 0.0078125, %v4651_v14 }
0x1d8c   : > { %v4659_v11 = vadd.f32 1e-05, %v4655_v8 }
0x1d8e   : > { %6003 = vrsqrt.f32 %v4659_v11 }
0x1d8f   : > { %v5998_v20 = vpop.eup %5997 }
0x1d90   : > { %v4664_v21 = vmul.f32 %v5998_v20, %v4636_v0 }
0x1d92   : > { %v4674_v27 = vmul.f32 %v5089_v18, %v4664_v21 }
0x1d93   : > { %v6000_v26 = vpop.eup %5999 }
0x1d94   : > { %v4684_v28 = vadd.f32 %v5090_v60, %v4674_v27  ;;  %v4665_v32 = vmul.f32 %v6000_v26, %v4637_v45 }
0x1d96   : > { %4688 = vst [vmem:[%s927_s30] sm:$0xff] %v4684_v28  ;;  %v4675_v38 = vmul.f32 %v5089_v18, %v4665_v32 }
0x1d97   : > { %v6002_v29 = vpop.eup %6001 }
0x1d98   : > { %v4685_v46 = vadd.f32 %v5090_v60, %v4675_v38  ;;  %v4666_v30 = vmul.f32 %v6002_v29, %v4638_v59 }
0x1d9a   : > { %4689 = vst [vmem:[%s927_s30 + $0x8] sm:$0xff] %v4685_v46  ;;  %v4676_v24 = vmul.f32 %v5089_v18, %v4666_v30 }
0x1d9b   : > { %v6004_v15 = vpop.eup %6003 }
0x1d9c   : > { %v4686_v48 = vadd.f32 %v5090_v60, %v4676_v24  ;;  %v4667_v17 = vmul.f32 %v6004_v15, %v4639_v2 }
0x1d9e   : > { %4690 = vst [vmem:[%s927_s30 + $0x10] sm:$0xff] %v4686_v48  ;;  %v4677_v22 = vmul.f32 %v5089_v18, %v4667_v17 }
0x1da0   : > { %v4687_v13 = vadd.f32 %v5090_v60, %v4677_v22 }
0x1da2   : > { %4691 = vst [vmem:[%s927_s30 + $0x18] sm:$0xff] %v4687_v13 }
0x1da3   : > { %6312 = shalt.err (!%p6309_p5)
}
0x1da4   : > { %s6313_s3 = scalar_lea.hbm %s7454_s7, 512  ;;  %s6317_s10 = scalar_lea.hbm %s7611_s20, 1024 }
0x1da5   : > { %p6314_p10 = scmp.ne.s32.totalorder %s7454_s7, %s6313_s3  ;;  %p6318_p7 = scmp.lt.s32.totalorder %s7454_s7, %s7611_s20 }
0x1da6   : > { %p6319_p8 = scmp.lt.s32.totalorder %s6317_s10, %s6313_s3 }
0x1da7   : > { %p6315_p11 = pnand %p6314_p10, %p7612_p4 }
0x1da8   : > { %p6320_p9 = por %p6319_p8, %p6318_p7 }
0x1da9   : > { %p6316_p12 = pneg %p6315_p11 }
0x1dab   : > { %p6321_p1 = pnand %p6320_p9, %p6316_p12 }
0x1dad   : > { %6324 = shalt.err (!%p6321_p1)
}
0x1dae   : > { %s6415_s0 = smov 128   ;;  %s6416_s30 = smov 8  }
0x1daf   : > { %5575 = dma.vmem_to_hbm [thread:$0]  (%p7612_p4), %s7456_s23, 512, %s7454_s7, %s4693_s4, %s6415_s0, %s6415_s0, %s6416_s30  }
0x1db0 PF: > { %s7613_s22 = sld [smem:[#allocation29_spill]]  ;;  %p7616_p2 = scmp.ge.s32.totalorder %s6387_s28, 2 }
0x1db1   : > { %s7614_s24 = sld [smem:[#allocation34_spill]] }
0x1db6   : > { %s4722_s14 = sand.u32 1, %s7613_s22  }
0x1db7   : > { %p7615_p0 = scmp.ne.s32.totalorder %s7614_s24, 0  ;;  %s4723_s25 = scalar_lea.sflag [#allocation4], %s4722_s14 }
0x1db9   : > { %p5613_p3 = pnand %p7616_p2, %p7615_p0 }
0x1dbb   : > { %p5614_p13 = pneg %p5613_p3 }
0x1dbd   : > { %6370 = dma.done.wait (%p5614_p13), %s4723_s25, 512  }
0x1dbe   : > { %6372 = vsyncadd (%p5614_p13), %s4723_s25, 4294966784  ;;  %s7617_s28 = sld [smem:[#allocation31_spill]]  ;;  %s7620_s5 = smov %s6379_s26 }
0x1dbf   : > { %s7618_s29 = sld [smem:[#allocation30_spill]] }
0x1dc0   : > { %s7619_s27 = sld [smem:[#allocation32_spill]] }
0x1dc4   : > { %p44_p6 = scmp.ge.s32.totalorder %s7617_s28, 4  }
0x1dc5   : > { %s7621_s26 = smov %s7618_s29 }
0x1dc6   :  { %46 = sbr.rel (!%p44_p6) target bundleno = 31 (0x1f), region = 210 }
0x1dcb   :  { %4728 = vsyncpa [#allocation3], 1 }
0x1dcc   :  { %4730 = vsyncpa [#allocation3 + $0x1], 1 }
0x1dcd   :  { %4731 = vsyncpa [#allocation6], 1 }
0x1dce   :  { %4733 = vsyncpa [#allocation6 + $0x1], 1 }
0x1dcf   :  { %4734 = vsyncpa [#allocation9], 1 }
0x1dd0   :  { %4735 = vsyncpa [#allocation12], 1 }
0x1dd1   :  { %4736 = vsyncpa [#allocation15], 1 }
0x1dd2   :  { %4737 = vsyncpa [#allocation18], 1 }
0x1dd3   :  { %4738 = vsyncpa [#allocation4], 1 }
0x1dd4   :  { %4740 = vsyncpa [#allocation4 + $0x1], 1 }

</bundles_post_ra>
